<compile_context>
chip_gen: v7x
topology: tpu7x:2x2x1
jax: 0.10.0
libtpu: 0.0.40
codegen_flags: <defaults>
</compile_context>

<pallas_src>
import functools

import jax
import jax.numpy as jnp
from jax.experimental import pallas as pl
from jax.experimental.pallas import tpu as pltpu

BN_EPS = 1e-5
LANE = 128
_HI = jax.lax.Precision.HIGHEST


def _round_up(x, m):
    return -(-x // m) * m


def _gelu_exact(x):
    # PyTorch nn.GELU() default: 0.5 * x * (1 + erf(x / sqrt(2)))
    return 0.5 * x * (1.0 + jax.lax.erf(x * (1.0 / jnp.sqrt(2.0).astype(x.dtype))))


def ff_kernel(x_ref, w1_ref, b1_ref, w2_ref, b2_ref, w3_ref, b3_ref, o_ref):
    x = x_ref[...]                                     # (bb, D) batch-major input

    # block1: (d1, bb) = w1t @ x^T -- contract x's feature dim in the dot
    # (transposed-RHS contraction, same as the q@k^T attention pattern); no
    # HBM/wrapper transpose of x is needed.
    h = jax.lax.dot_general(
        w1_ref[...], x, (((1,), (1,)), ((), ())),
        precision=_HI, preferred_element_type=jnp.float32) + b1_ref[...]
    h = _gelu_exact(h)                                 # (d1, bb), lane-dense

    # block2: plain matmul in the feature-major layout.
    h = jnp.dot(w2_ref[...], h, precision=_HI,
                preferred_element_type=jnp.float32) + b2_ref[...]
    h = _gelu_exact(h)                                 # (d2, bb), lane-dense

    # final layer (BN-free, just bias).
    out = jnp.dot(w3_ref[...], h, precision=_HI,
                  preferred_element_type=jnp.float32) + b3_ref[...]
    o_ref[...] = out.astype(o_ref.dtype)               # (out_dim, bb) lane-dense store


def _tensorcores_per_chip():
    """Best-effort TensorCores-per-chip (2 on v7x, 1 on v5e/v6e)."""
    try:
        info = pltpu.get_tpu_info()
        for name in ("num_cores", "core_count", "tensorcore_count", "num_tensorcores"):
            v = getattr(info, name, None)
            if isinstance(v, int) and v > 0:
                return v
    except Exception:
        pass
    try:
        d = jax.devices()[0]
        for name in ("num_cores", "core_count"):
            v = getattr(d, name, None)
            if isinstance(v, int) and v > 0:
                return v
        if "7" in str(getattr(d, "device_kind", "")):
            return 2
    except Exception:
        pass
    return 1


def _plan_batch_tiling(B, num_cores, max_block_rows=8192):
    """Batch rows live in lanes of the transposed intermediates, so the tile is
    a multiple of 128.  One grid step per TensorCore (single step on v5e/v6e,
    two balanced parallel steps on v7x) unless the tile would get huge, in
    which case add steps in multiples of the core count."""
    steps = max(1, num_cores)
    bb = _round_up(pl.cdiv(B, steps), LANE)
    while bb > max_block_rows:
        steps += max(1, num_cores)
        bb = _round_up(pl.cdiv(B, steps), LANE)
    return bb, _round_up(B, bb)


@functools.partial(jax.jit, static_argnames=("block_b",))
def _ff_forward(x, params, *, block_b):
    B, D = x.shape
    d1 = params["w1"].shape[1]
    d2 = params["w2"].shape[1]
    out_dim = params["w3"].shape[1]

    # ---- fold BatchNorm (eval running stats) + Linear bias into the weights,
    # and pre-transpose to (out_features, in_features) for the feature-major chain.
    # y = ((x@W + b) - m) * g * rsqrt(v+eps) + be  ==  x @ (W*s) + ((b-m)*s + be)
    s1 = params["g1"] * jax.lax.rsqrt(params["v1"] + BN_EPS)               # (d1,)
    w1t = (params["w1"] * s1[None, :]).T                                    # (d1, D)
    b1c = ((params["b1"] - params["m1"]) * s1 + params["be1"])[:, None]     # (d1, 1)
    s2 = params["g2"] * jax.lax.rsqrt(params["v2"] + BN_EPS)
    w2t = (params["w2"] * s2[None, :]).T                                    # (d2, d1)
    b2c = ((params["b2"] - params["m2"]) * s2 + params["be2"])[:, None]     # (d2, 1)
    w3t = params["w3"].T                                                    # (out, d2)
    b3c = params["b3"][:, None]                                             # (out, 1)

    bb = block_b
    b_pad = _round_up(B, bb)
    if b_pad != B:
        # TODO(synk): handle a ragged last tile with an in-kernel masked store
        # instead of this extra XLA pad pass (only hit when B % block_b != 0).
        x = jnp.pad(x, ((0, b_pad - B), (0, 0)))

    grid = (b_pad // bb,)
    param_list = [w1t, b1c, w2t, b2c, w3t, b3c]
    in_specs = [pl.BlockSpec((bb, D), lambda i: (i, 0))] + [
        pl.BlockSpec(p.shape, lambda i: (0, 0)) for p in param_list
    ]
    # Lane-dense, unpadded (out_dim, batch) output: no 128-col zero padding and
    # no wrapper-side slice copy.
    out_specs = pl.BlockSpec((out_dim, bb), lambda i: (0, i))

    flops = 2 * b_pad * (D * d1 + d1 * d2 + d2 * out_dim)
    transcendentals = b_pad * (d1 + d2)
    bytes_accessed = 4 * (
        b_pad * D + b_pad * out_dim
        + D * d1 + d1 * d2 + d2 * out_dim + d1 + d2 + out_dim
    )

    out_t = pl.pallas_call(
        ff_kernel,
        out_shape=jax.ShapeDtypeStruct((out_dim, b_pad), x.dtype),
        grid_spec=pltpu.PrefetchScalarGridSpec(
            num_scalar_prefetch=0,
            grid=grid,
            in_specs=in_specs,
            out_specs=out_specs,
        ),
        compiler_params=pltpu.CompilerParams(
            dimension_semantics=("parallel",),
        ),
        cost_estimate=pl.CostEstimate(
            flops=flops,
            transcendentals=transcendentals,
            bytes_accessed=bytes_accessed,
        ),
    )(x, *param_list)

    if b_pad != B:
        out_t = out_t[:, :B]
    # Tiny (out_dim, B) -> (B, out_dim) transpose restores the PyTorch layout.
    return out_t.T


def ff_model_forward(x, params, block_b=None):
    if block_b is None:
        block_b, _ = _plan_batch_tiling(x.shape[0], _tensorcores_per_chip())
    return _ff_forward(x, params, block_b=block_b)


def init_params(key, input_dim, output_dim):
    """Deterministic init matching FFModel._initialize_weights: xavier_uniform_
    on Linear weights, zeros for biases; BatchNorm1d defaults (gamma=1, beta=0,
    running_mean=0, running_var=1).  Weights stored [in, out] (transpose of
    PyTorch's [out, in])."""
    d1 = input_dim // 2
    d2 = input_dim // 4

    def xavier(key, fan_in, fan_out):
        limit = jnp.sqrt(6.0 / (fan_in + fan_out))
        return jax.random.uniform(
            key, (fan_in, fan_out), jnp.float32, minval=-limit, maxval=limit)

    k1, k2, k3 = jax.random.split(key, 3)
    return {
        "w1": xavier(k1, input_dim, d1),
        "b1": jnp.zeros((d1,), jnp.float32),
        "g1": jnp.ones((d1,), jnp.float32),
        "be1": jnp.zeros((d1,), jnp.float32),
        "m1": jnp.zeros((d1,), jnp.float32),
        "v1": jnp.ones((d1,), jnp.float32),
        "w2": xavier(k2, d1, d2),
        "b2": jnp.zeros((d2,), jnp.float32),
        "g2": jnp.ones((d2,), jnp.float32),
        "be2": jnp.zeros((d2,), jnp.float32),
        "m2": jnp.zeros((d2,), jnp.float32),
        "v2": jnp.ones((d2,), jnp.float32),
        "w3": xavier(k3, d2, output_dim),
        "b3": jnp.zeros((output_dim,), jnp.float32),
    }


def ff_model_reference(x, params):
    """Pure-JAX reference (un-folded BN, batch-major), f32-accurate matmuls."""
    h = jnp.dot(x, params["w1"], precision=_HI) + params["b1"]
    h = (h - params["m1"]) * jax.lax.rsqrt(params["v1"] + BN_EPS) * params["g1"] + params["be1"]
    h = _gelu_exact(h)
    h = jnp.dot(h, params["w2"], precision=_HI) + params["b2"]
    h = (h - params["m2"]) * jax.lax.rsqrt(params["v2"] + BN_EPS) * params["g2"] + params["be2"]
    h = _gelu_exact(h)
    return jnp.dot(h, params["w3"], precision=_HI) + params["b3"]


if __name__ == "__main__":
    INPUT_DIM = 32    # -> hidden dims 16, 8
    OUTPUT_DIM = 4
    BATCH = 1024      # multiple of 128 lanes and of 2*128 (balanced on v7x's 2 TCs)

    key = jax.random.PRNGKey(0)
    k_x, k_p = jax.random.split(key)
    x = jax.random.normal(k_x, (BATCH, INPUT_DIM), jnp.float32)
    params = init_params(k_p, INPUT_DIM, OUTPUT_DIM)

    out = ff_model_forward(x, params)
    out = jax.block_until_ready(out)

    ref = ff_model_reference(x, params)
    assert out.shape == (BATCH, OUTPUT_DIM), out.shape
    assert jnp.allclose(out, ref, atol=1e-5, rtol=1e-5), "mismatch vs reference"

    print("KERNEL_OK")
</pallas_src>

<mosaic_0001>
module attributes {stable_mosaic.version = 11 : i64} {
  func.func @ff_kernel(%arg0: i32, %arg1: memref<1024x32xf32, #tpu.memory_space<vmem>>, %arg2: memref<16x32xf32, #tpu.memory_space<vmem>>, %arg3: memref<16x1xf32, #tpu.memory_space<vmem>>, %arg4: memref<8x16xf32, #tpu.memory_space<vmem>>, %arg5: memref<8x1xf32, #tpu.memory_space<vmem>>, %arg6: memref<4x8xf32, #tpu.memory_space<vmem>>, %arg7: memref<4x1xf32, #tpu.memory_space<vmem>>, %arg8: memref<4x1024xf32, #tpu.memory_space<vmem>>) attributes {dimension_semantics = [#tpu.dimension_semantics<parallel>], iteration_bounds = array<i64: 1>, scalar_prefetch = 0 : i64, scratch_operands = 0 : i64, tpu.core_type = #tpu.core_type<tc>, window_params = [{transform_indices = @transform_0, window_bounds = array<i64: 1024, 32>}, {pipeline_mode = #tpu.pipeline_mode<synchronous>, transform_indices = @transform_1, window_bounds = array<i64: 16, 32>}, {pipeline_mode = #tpu.pipeline_mode<synchronous>, transform_indices = @transform_2, window_bounds = array<i64: 16, 1>}, {pipeline_mode = #tpu.pipeline_mode<synchronous>, transform_indices = @transform_3, window_bounds = array<i64: 8, 16>}, {pipeline_mode = #tpu.pipeline_mode<synchronous>, transform_indices = @transform_4, window_bounds = array<i64: 8, 1>}, {pipeline_mode = #tpu.pipeline_mode<synchronous>, transform_indices = @transform_5, window_bounds = array<i64: 4, 8>}, {pipeline_mode = #tpu.pipeline_mode<synchronous>, transform_indices = @transform_6, window_bounds = array<i64: 4, 1>}, {transform_indices = @transform_7, window_bounds = array<i64: 4, 1024>}]} {
    %c0 = arith.constant 0 : index
    %c0_0 = arith.constant 0 : index
    %0 = vector.load %arg1[%c0, %c0_0] : memref<1024x32xf32, #tpu.memory_space<vmem>>, vector<1024x32xf32>
    %c0_1 = arith.constant 0 : index
    %c0_2 = arith.constant 0 : index
    %1 = vector.load %arg2[%c0_1, %c0_2] : memref<16x32xf32, #tpu.memory_space<vmem>>, vector<16x32xf32>
    %cst = arith.constant dense<0.000000e+00> : vector<16x1024xf32>
    %2 = tpu.matmul %1, %0, %cst {dimension_numbers = #tpu.dot_dimension_numbers<[1], [1], [0], [0], [0, 0, 1, 0], [], []>, precision = #tpu.contract_precision<fp32>} : vector<16x32xf32>, vector<1024x32xf32>, vector<16x1024xf32> -> vector<16x1024xf32>
    %c0_3 = arith.constant 0 : index
    %c0_4 = arith.constant 0 : index
    %3 = vector.load %arg3[%c0_3, %c0_4] : memref<16x1xf32, #tpu.memory_space<vmem>>, vector<16x1xf32>
    %4 = vector.broadcast %3 : vector<16x1xf32> to vector<16x1024xf32>
    %5 = arith.addf %2, %4 : vector<16x1024xf32>
    %cst_5 = arith.constant 5.000000e-01 : f32
    %6 = vector.broadcast %cst_5 : f32 to vector<16x1024xf32>
    %7 = arith.mulf %6, %5 : vector<16x1024xf32>
    %cst_6 = arith.constant 2.000000e+00 : f32
    %8 = math.sqrt %cst_6 : f32
    %cst_7 = arith.constant 1.000000e+00 : f32
    %9 = arith.divf %cst_7, %8 : f32
    %10 = vector.broadcast %9 : f32 to vector<16x1024xf32>
    %11 = arith.mulf %5, %10 : vector<16x1024xf32>
    %12 = math.erf %11 : vector<16x1024xf32>
    %cst_8 = arith.constant 1.000000e+00 : f32
    %13 = vector.broadcast %cst_8 : f32 to vector<16x1024xf32>
    %14 = arith.addf %13, %12 : vector<16x1024xf32>
    %15 = arith.mulf %7, %14 : vector<16x1024xf32>
    %c0_9 = arith.constant 0 : index
    %c0_10 = arith.constant 0 : index
    %16 = vector.load %arg4[%c0_9, %c0_10] : memref<8x16xf32, #tpu.memory_space<vmem>>, vector<8x16xf32>
    %cst_11 = arith.constant dense<0.000000e+00> : vector<8x1024xf32>
    %17 = tpu.matmul %16, %15, %cst_11 {dimension_numbers = #tpu.dot_dimension_numbers<[1], [0], [0], [1], [0, 0, 1, 1], [], []>, precision = #tpu.contract_precision<fp32>} : vector<8x16xf32>, vector<16x1024xf32>, vector<8x1024xf32> -> vector<8x1024xf32>
    %c0_12 = arith.constant 0 : index
    %c0_13 = arith.constant 0 : index
    %18 = vector.load %arg5[%c0_12, %c0_13] : memref<8x1xf32, #tpu.memory_space<vmem>>, vector<8x1xf32>
    %19 = vector.broadcast %18 : vector<8x1xf32> to vector<8x1024xf32>
    %20 = arith.addf %17, %19 : vector<8x1024xf32>
    %cst_14 = arith.constant 5.000000e-01 : f32
    %21 = vector.broadcast %cst_14 : f32 to vector<8x1024xf32>
    %22 = arith.mulf %21, %20 : vector<8x1024xf32>
    %cst_15 = arith.constant 2.000000e+00 : f32
    %23 = math.sqrt %cst_15 : f32
    %cst_16 = arith.constant 1.000000e+00 : f32
    %24 = arith.divf %cst_16, %23 : f32
    %25 = vector.broadcast %24 : f32 to vector<8x1024xf32>
    %26 = arith.mulf %20, %25 : vector<8x1024xf32>
    %27 = math.erf %26 : vector<8x1024xf32>
    %cst_17 = arith.constant 1.000000e+00 : f32
    %28 = vector.broadcast %cst_17 : f32 to vector<8x1024xf32>
    %29 = arith.addf %28, %27 : vector<8x1024xf32>
    %30 = arith.mulf %22, %29 : vector<8x1024xf32>
    %c0_18 = arith.constant 0 : index
    %c0_19 = arith.constant 0 : index
    %31 = vector.load %arg6[%c0_18, %c0_19] : memref<4x8xf32, #tpu.memory_space<vmem>>, vector<4x8xf32>
    %cst_20 = arith.constant dense<0.000000e+00> : vector<4x1024xf32>
    %32 = tpu.matmul %31, %30, %cst_20 {dimension_numbers = #tpu.dot_dimension_numbers<[1], [0], [0], [1], [0, 0, 1, 1], [], []>, precision = #tpu.contract_precision<fp32>} : vector<4x8xf32>, vector<8x1024xf32>, vector<4x1024xf32> -> vector<4x1024xf32>
    %c0_21 = arith.constant 0 : index
    %c0_22 = arith.constant 0 : index
    %33 = vector.load %arg7[%c0_21, %c0_22] : memref<4x1xf32, #tpu.memory_space<vmem>>, vector<4x1xf32>
    %34 = vector.broadcast %33 : vector<4x1xf32> to vector<4x1024xf32>
    %35 = arith.addf %32, %34 : vector<4x1024xf32>
    %c0_23 = arith.constant 0 : index
    %c0_24 = arith.constant 0 : index
    %36 = vector.load %arg8[%c0_23, %c0_24] : memref<4x1024xf32, #tpu.memory_space<vmem>>, vector<4x1024xf32>
    tpu.vector_store %arg8[%c0_23, %c0_24], %35 {strides = array<i32>} : memref<4x1024xf32, #tpu.memory_space<vmem>>, vector<4x1024xf32>,
    return
  }
  func.func @transform_0(%arg0: i32) -> (i32, i32) {
    %c0_i32 = arith.constant 0 : i32
    %c0_i32_0 = arith.constant 0 : i32
    return %arg0, %c0_i32 : i32, i32
  }
  func.func @transform_1(%arg0: i32) -> (i32, i32) {
    %c0_i32 = arith.constant 0 : i32
    %c0_i32_0 = arith.constant 0 : i32
    %c0_i32_1 = arith.constant 0 : i32
    return %c0_i32, %c0_i32_0 : i32, i32
  }
  func.func @transform_2(%arg0: i32) -> (i32, i32) {
    %c0_i32 = arith.constant 0 : i32
    %c0_i32_0 = arith.constant 0 : i32
    %c0_i32_1 = arith.constant 0 : i32
    return %c0_i32, %c0_i32_0 : i32, i32
  }
  func.func @transform_3(%arg0: i32) -> (i32, i32) {
    %c0_i32 = arith.constant 0 : i32
    %c0_i32_0 = arith.constant 0 : i32
    %c0_i32_1 = arith.constant 0 : i32
    return %c0_i32, %c0_i32_0 : i32, i32
  }
  func.func @transform_4(%arg0: i32) -> (i32, i32) {
    %c0_i32 = arith.constant 0 : i32
    %c0_i32_0 = arith.constant 0 : i32
    %c0_i32_1 = arith.constant 0 : i32
    return %c0_i32, %c0_i32_0 : i32, i32
  }
  func.func @transform_5(%arg0: i32) -> (i32, i32) {
    %c0_i32 = arith.constant 0 : i32
    %c0_i32_0 = arith.constant 0 : i32
    %c0_i32_1 = arith.constant 0 : i32
    return %c0_i32, %c0_i32_0 : i32, i32
  }
  func.func @transform_6(%arg0: i32) -> (i32, i32) {
    %c0_i32 = arith.constant 0 : i32
    %c0_i32_0 = arith.constant 0 : i32
    %c0_i32_1 = arith.constant 0 : i32
    return %c0_i32, %c0_i32_0 : i32, i32
  }
  func.func @transform_7(%arg0: i32) -> (i32, i32) {
    %c0_i32 = arith.constant 0 : i32
    %c0_i32_0 = arith.constant 0 : i32
    return %c0_i32, %arg0 : i32, i32
  }
}

</mosaic_0001>

<bundles_post_ra>
// kernel: _ff_forward.1
= control target key start
LH: loop header
LB: loop body
LE: loop exit
PB: predicated region body
PF: predicated region fallthrough
CT: control target
= control target key end

     0   :  { %vm169_vm0 = vcmask 261120   ;;  %s13155_s0 = inlined_call_operand.vmem [shape: f32[1024,32], index: 0, kind: input, shape index: {}]   ;;  %s13156_s1 = inlined_call_operand.vmem [shape: f32[16,32], index: 1, kind: input, shape index: {}]   ;;  %s13157_s2 = inlined_call_operand.vmem [shape: f32[16,1], index: 2, kind: input, shape index: {}]   ;;  %s13158_s3 = inlined_call_operand.vmem [shape: f32[8,16], index: 3, kind: input, shape index: {}]   ;;  %s13159_s4 = inlined_call_operand.vmem [shape: f32[8,1], index: 4, kind: input, shape index: {}]   ;;  %s13160_s5 = inlined_call_operand.vmem [shape: f32[4,8], index: 5, kind: input, shape index: {}]   ;;  %s13161_s6 = inlined_call_operand.vmem [shape: f32[4,1], index: 6, kind: input, shape index: {}]   ;;  %s13162_s7 = inlined_call_operand.hbm [shape: f32[4,1024], index: 7, kind: output, shape index: {}]  }
   0x1   :  { %v43_v0 = vld [vmem:[%s13155_s0 + $0x80] sm:$0xff]  ;;  %v44_v1 = vld [vmem:[%s13155_s0 + $0x88] sm:$0xff]  ;;  %v45_v19 = vld [vmem:[%s13155_s0 + $0x90] sm:$0xff] }
   0x2   :  { %v75_v2 = vld [vmem:[%s13155_s0 + $0x180] sm:$0xff]  ;;  %v225_v3 = vsel %vm169_vm0, %v43_v0, 0  ;;  %v228_v4 = vsel %vm169_vm0, %v44_v1, 0  ;;  %v76_v5 = vld [vmem:[%s13155_s0 + $0x188] sm:$0xff]  ;;  %v46_v20 = vld [vmem:[%s13155_s0 + $0x98] sm:$0xff]  ;;  %v231_v29 = vsel %vm169_vm0, %v45_v19, 0 }
   0x3   :  { %v321_v6 = vsel %vm169_vm0, %v75_v2, 0  ;;  %v27_v7 = vld [vmem:[%s13155_s0] sm:$0xff]  ;;  %v28_v8 = vld [vmem:[%s13155_s0 + $0x8] sm:$0xff]  ;;  %v609_v9 = vand.u32 4294901760, %v225_v3  ;;  %v612_v10 = vand.u32 4294901760, %v228_v4  ;;  %v324_v11 = vsel %vm169_vm0, %v76_v5, 0 }
   0x4   :  { %v1513_v12 = vand.u32 4294901760, %v321_v6  ;;  %v59_v13 = vld [vmem:[%s13155_s0 + $0x100] sm:$0xff]  ;;  %v60_v14 = vld [vmem:[%s13155_s0 + $0x108] sm:$0xff]  ;;  %v1516_v15 = vand.u32 4294901760, %v324_v11  ;;  %v177_v16 = vsel %vm169_vm0, %v27_v7, 0  ;;  %v180_v17 = vsel %vm169_vm0, %v28_v8, 0 }
   0x5   :  { %v273_v18 = vsel %vm169_vm0, %v59_v13, 0  ;;  %v10253_v21 = vpack.c.bf16 %v612_v10, %v609_v9  ;;  %v10255_v22 = vsub.f32 %v225_v3, %v609_v9  ;;  %v561_v24 = vand.u32 4294901760, %v177_v16  ;;  %v77_v26 = vld [vmem:[%s13155_s0 + $0x190] sm:$0xff]  ;;  %v78_v31 = vld [vmem:[%s13155_s0 + $0x198] sm:$0xff]  ;;  %v47_v52 = vld [vmem:[%s13155_s0 + $0xa0] sm:$0xff] }
   0x6   :  { %v10257_v23 = vpack.c.bf16 %v1516_v15, %v1513_v12  ;;  %v564_v25 = vand.u32 4294901760, %v180_v17  ;;  %v276_v27 = vsel %vm169_vm0, %v60_v14, 0  ;;  %v1465_v28 = vand.u32 4294901760, %v273_v18  ;;  %v29_v40 = vld [vmem:[%s13155_s0 + $0x10] sm:$0xff]  ;;  %v30_v41 = vld [vmem:[%s13155_s0 + $0x18] sm:$0xff]  ;;  %v48_v53 = vld [vmem:[%s13155_s0 + $0xa8] sm:$0xff] }
   0x7   :  { %13630 = vst [vmem:[#allocation5_spill] sm:$0xff] %v10253_v21  ;;  %9041 = vmatprep.subr.bf16.mxu0 %v10253_v21  ;;  %v234_v30 = vsel %vm169_vm0, %v46_v20, 0  ;;  %v10269_v32 = vsub.f32 %v228_v4, %v612_v10  ;;  %v10272_v33 = vsub.f32 %v321_v6, %v1513_v12  ;;  %v1468_v35 = vand.u32 4294901760, %v276_v27  ;;  %v61_v42 = vld [vmem:[%s13155_s0 + $0x110] sm:$0xff]  ;;  %v62_v51 = vld [vmem:[%s13155_s0 + $0x118] sm:$0xff]  ;;  %v79_v62 = vld [vmem:[%s13155_s0 + $0x1a0] sm:$0xff] }
   0x8   :  { %13631 = vst [vmem:[#allocation6_spill] sm:$0xff] %v10257_v23  ;;  %9233 = vmatprep.subr.bf16.mxu1 %v10257_v23  ;;  %v10274_v34 = vpack.c.bf16 %v564_v25, %v561_v24  ;;  %v10276_v36 = vsub.f32 %v324_v11, %v1516_v15  ;;  %v615_v37 = vand.u32 4294901760, %v231_v29  ;;  %v618_v38 = vand.u32 4294901760, %v234_v30  ;;  %v80_v3 = vld [vmem:[%s13155_s0 + $0x1a8] sm:$0xff]  ;;  %v31_v12 = vld [vmem:[%s13155_s0 + $0x20] sm:$0xff] }
   0x9   :  { %13632 = vst [vmem:[#allocation7_spill] sm:$0xff] %v10269_v32  ;;  %13633 = vst [vmem:[#allocation8_spill] sm:$0xff] %v10272_v33  ;;  %v327_v39 = vsel %vm169_vm0, %v77_v26, 0  ;;  %v10289_v43 = vsub.f32 %v177_v16, %v561_v24  ;;  %v10291_v44 = vpack.c.bf16 %v1468_v35, %v1465_v28  ;;  %v330_v45 = vsel %vm169_vm0, %v78_v31, 0  ;;  %v32_v13 = vld [vmem:[%s13155_s0 + $0x28] sm:$0xff]  ;;  %v63_v14 = vld [vmem:[%s13155_s0 + $0x120] sm:$0xff] }
   0xa   :  { %13634 = vst [vmem:[#allocation9_spill] sm:$0xff] %v10274_v34  ;;  %13635 = vst [vmem:[#allocation10_spill] sm:$0xff] %v10276_v36  ;;  %9043 = vmatpush3.bf16.xpose.msra.mxu0 %v10274_v34  ;;  %v1519_v46 = vand.u32 4294901760, %v327_v39  ;;  %v10294_v47 = vsub.f32 %v180_v17, %v564_v25  ;;  %v10296_v48 = vsub.f32 %v273_v18, %v1465_v28  ;;  %v1522_v50 = vand.u32 4294901760, %v330_v45  ;;  %v64_v26 = vld [vmem:[%s13155_s0 + $0x128] sm:$0xff]  ;;  %v50_v28 = vld [vmem:[%s13155_s0 + $0xb8] sm:$0xff] }
   0xb   :  { %13636 = vst [vmem:[#allocation11_spill] sm:$0xff] %v10289_v43  ;;  %13637 = vst [vmem:[#allocation12_spill] sm:$0xff] %v10291_v44  ;;  %v10298_v49 = vpack.c.bf16 %v618_v38, %v615_v37  ;;  %9235 = vmatpush3.bf16.xpose.msra.mxu1 %v10291_v44  ;;  %v10310_v54 = vsub.f32 %v276_v27, %v1468_v35  ;;  %v183_v55 = vsel %vm169_vm0, %v29_v40, 0  ;;  %v186_v56 = vsel %vm169_vm0, %v30_v41, 0  ;;  %v49_v27 = vld [vmem:[%s13155_s0 + $0xb0] sm:$0xff] }
   0xc   :  { %13638 = vst [vmem:[#allocation13_spill] sm:$0xff] %v10294_v47  ;;  %13639 = vst [vmem:[#allocation14_spill] sm:$0xff] %v10296_v48  ;;  %v279_v57 = vsel %vm169_vm0, %v61_v42, 0  ;;  %v10316_v58 = vsub.f32 %v231_v29, %v615_v37  ;;  %v10318_v59 = vpack.c.bf16 %v1522_v50, %v1519_v46  ;;  %v567_v60 = vand.u32 4294901760, %v183_v55  ;;  %v81_v41 = vld [vmem:[%s13155_s0 + $0x1b0] sm:$0xff] }
   0xd   :  { %13640 = vst [vmem:[#allocation15_spill] sm:$0xff] %v10298_v49  ;;  %13641 = vst [vmem:[#allocation16_spill] sm:$0xff] %v10310_v54  ;;  %9045 = vmatprep.subr.bf16.mxu0 %v10298_v49  ;;  %v570_v61 = vand.u32 4294901760, %v186_v56  ;;  %v282_v63 = vsel %vm169_vm0, %v62_v51, 0  ;;  %v1471_v0 = vand.u32 4294901760, %v279_v57  ;;  %v237_v1 = vsel %vm169_vm0, %v47_v52, 0 }
   0xe   :  { %13642 = vst [vmem:[#allocation17_spill] sm:$0xff] %v10316_v58  ;;  %13643 = vst [vmem:[#allocation18_spill] sm:$0xff] %v10318_v59  ;;  %v240_v2 = vsel %vm169_vm0, %v48_v53, 0  ;;  %v10329_v4 = vsub.f32 %v234_v30, %v618_v38  ;;  %9237 = vmatprep.subr.bf16.mxu1 %v10318_v59  ;;  %v10332_v5 = vsub.f32 %v327_v39, %v1519_v46  ;;  %v1474_v7 = vand.u32 4294901760, %v282_v63  ;;  %v82_v51 = vld [vmem:[%s13155_s0 + $0x1b8] sm:$0xff] }
   0xf   :  { %v10334_v6 = vpack.c.bf16 %v570_v61, %v567_v60  ;;  %v10336_v8 = vsub.f32 %v330_v45, %v1522_v50  ;;  %v621_v9 = vand.u32 4294901760, %v237_v1  ;;  %v624_v10 = vand.u32 4294901760, %v240_v2 }
  0x10   :  { %13644 = vst [vmem:[#allocation19_spill] sm:$0xff] %v10329_v4  ;;  %13645 = vst [vmem:[#allocation20_spill] sm:$0xff] %v10332_v5  ;;  %v333_v11 = vsel %vm169_vm0, %v79_v62, 0  ;;  %v10348_v15 = vsub.f32 %v183_v55, %v567_v60  ;;  %v10350_v16 = vpack.c.bf16 %v1474_v7, %v1471_v0  ;;  %v336_v17 = vsel %vm169_vm0, %v80_v3, 0 }
  0x11   :  { %13646 = vst [vmem:[#allocation21_spill] sm:$0xff] %v10334_v6  ;;  %13647 = vst [vmem:[#allocation22_spill] sm:$0xff] %v10336_v8  ;;  %v1525_v18 = vand.u32 4294901760, %v333_v11  ;;  %v10354_v19 = vsub.f32 %v186_v56, %v570_v61  ;;  %v10356_v20 = vsub.f32 %v279_v57, %v1471_v0  ;;  %v10358_v24 = vpack.c.bf16 %v624_v10, %v621_v9  ;;  %v34_v0 = vld [vmem:[%s13155_s0 + $0x38] sm:$0xff] }
  0x12   :  { %13648 = vst [vmem:[#allocation23_spill] sm:$0xff] %v10348_v15  ;;  %13649 = vst [vmem:[#allocation24_spill] sm:$0xff] %v10350_v16  ;;  %9047 = vmatpush3.bf16.xpose.msra.mxu0 %v10334_v6  ;;  %v1528_v25 = vand.u32 4294901760, %v336_v17  ;;  %v10369_v29 = vsub.f32 %v282_v63, %v1474_v7  ;;  %v189_v30 = vsel %vm169_vm0, %v31_v12, 0  ;;  %v192_v31 = vsel %vm169_vm0, %v32_v13, 0  ;;  %v33_v63 = vld [vmem:[%s13155_s0 + $0x30] sm:$0xff] }
  0x13   :  { %13650 = vst [vmem:[#allocation25_spill] sm:$0xff] %v10354_v19  ;;  %13651 = vst [vmem:[#allocation26_spill] sm:$0xff] %v10356_v20  ;;  %v285_v35 = vsel %vm169_vm0, %v63_v14, 0  ;;  %9239 = vmatpush3.bf16.xpose.msra.mxu1 %v10350_v16  ;;  %9049 = vmatprep.subr.bf16.mxu0 %v10358_v24  ;;  %v10376_v37 = vsub.f32 %v237_v1, %v621_v9  ;;  %v573_v39 = vand.u32 4294901760, %v189_v30  ;;  %v576_v40 = vand.u32 4294901760, %v192_v31  ;;  %v65_v1 = vld [vmem:[%s13155_s0 + $0x130] sm:$0xff] }
  0x14   :  { %13652 = vst [vmem:[#allocation27_spill] sm:$0xff] %v10358_v24  ;;  %13653 = vst [vmem:[#allocation28_spill] sm:$0xff] %v10369_v29  ;;  %v10378_v38 = vpack.c.bf16 %v1528_v25, %v1525_v18  ;;  %v288_v42 = vsel %vm169_vm0, %v64_v26, 0  ;;  %v1477_v45 = vand.u32 4294901760, %v285_v35  ;;  %v243_v46 = vsel %vm169_vm0, %v49_v27, 0 }
  0x15   :  { %13654 = vst [vmem:[#allocation29_spill] sm:$0xff] %v10376_v37  ;;  %v246_v50 = vsel %vm169_vm0, %v50_v28, 0  ;;  %v10389_v52 = vsub.f32 %v240_v2, %v624_v10  ;;  %v10392_v53 = vsub.f32 %v333_v11, %v1525_v18  ;;  %v10394_v55 = vpack.c.bf16 %v576_v40, %v573_v39 }
  0x16   :  { %13655 = vst [vmem:[#allocation30_spill] sm:$0xff] %v10378_v38  ;;  %9241 = vmatprep.subr.bf16.mxu1 %v10378_v38  ;;  %v1480_v56 = vand.u32 4294901760, %v288_v42  ;;  %v10396_v57 = vsub.f32 %v336_v17, %v1528_v25  ;;  %v627_v60 = vand.u32 4294901760, %v243_v46  ;;  %v630_v61 = vand.u32 4294901760, %v246_v50 }
  0x17   :  { %13656 = vst [vmem:[#allocation31_spill] sm:$0xff] %v10389_v52  ;;  %13657 = vst [vmem:[#allocation32_spill] sm:$0xff] %v10392_v53  ;;  %v339_v62 = vsel %vm169_vm0, %v81_v41, 0  ;;  %v10408_v2 = vsub.f32 %v189_v30, %v573_v39  ;;  %v342_v7 = vsel %vm169_vm0, %v82_v51, 0 }
  0x18   :  { %13658 = vst [vmem:[#allocation33_spill] sm:$0xff] %v10394_v55  ;;  %13659 = vst [vmem:[#allocation34_spill] sm:$0xff] %v10396_v57  ;;  %v10410_v3 = vpack.c.bf16 %v1480_v56, %v1477_v45  ;;  %v1531_v9 = vand.u32 4294901760, %v339_v62 }
  0x19   :  { %13660 = vst [vmem:[#allocation35_spill] sm:$0xff] %v10408_v2 }
  0x1a   :  { %13661 = vst [vmem:[#allocation36_spill] sm:$0xff] %v10410_v3 }
  0x1b   :  { %12 = vsyncpa [#allocation3], 0  ;;  %v10413_v10 = vsub.f32 %v192_v31, %v576_v40  ;;  %v10415_v11 = vsub.f32 %v285_v35, %v1477_v45  ;;  %v10417_v12 = vpack.c.bf16 %v630_v61, %v627_v60  ;;  %v1534_v13 = vand.u32 4294901760, %v342_v7  ;;  %v66_v14 = vld [vmem:[%s13155_s0 + $0x138] sm:$0xff]  ;;  %v51_v17 = vld [vmem:[%s13155_s0 + $0xc0] sm:$0xff]  ;;  %9051 = vmatpush3.bf16.xpose.msra.mxu0 %v10394_v55  ;;  %9243 = vmatpush3.bf16.xpose.msra.mxu1 %v10410_v3 }
  0x1c   :  { %v52_v18 = vld [vmem:[%s13155_s0 + $0xc8] sm:$0xff]  ;;  %v10429_v25 = vsub.f32 %v288_v42, %v1480_v56  ;;  %v195_v26 = vsel %vm169_vm0, %v33_v63, 0  ;;  %v198_v27 = vsel %vm169_vm0, %v34_v0, 0  ;;  %v291_v28 = vsel %vm169_vm0, %v65_v1, 0  ;;  %v83_v40 = vld [vmem:[%s13155_s0 + $0x1c0] sm:$0xff]  ;;  %v85_v59 = vld [vmem:[%s13155_s0 + $0x1d0] sm:$0xff] }
  0x1d   :  { %13662 = vst [vmem:[#allocation37_spill] sm:$0xff] %v10413_v10  ;;  %13663 = vst [vmem:[#allocation38_spill] sm:$0xff] %v10415_v11  ;;  %9053 = vmatprep.subr.bf16.mxu0 %v10417_v12  ;;  %v10435_v30 = vsub.f32 %v243_v46, %v627_v60  ;;  %v10437_v31 = vpack.c.bf16 %v1534_v13, %v1531_v9  ;;  %v579_v35 = vand.u32 4294901760, %v195_v26  ;;  %v582_v39 = vand.u32 4294901760, %v198_v27  ;;  %v84_v46 = vld [vmem:[%s13155_s0 + $0x1c8] sm:$0xff]  ;;  %v37_v49 = vld [vmem:[%s13155_s0 + $0x50] sm:$0xff] }
  0x1e   :  { %13664 = vst [vmem:[#allocation39_spill] sm:$0xff] %v10417_v12  ;;  %13665 = vst [vmem:[#allocation40_spill] sm:$0xff] %v10429_v25  ;;  %v294_v41 = vsel %vm169_vm0, %v66_v14, 0  ;;  %v1483_v42 = vand.u32 4294901760, %v291_v28  ;;  %v249_v45 = vsel %vm169_vm0, %v51_v17, 0  ;;  %v252_v51 = vsel %vm169_vm0, %v52_v18, 0 }
  0x1f   :  { %13666 = vst [vmem:[#allocation41_spill] sm:$0xff] %v10435_v30  ;;  %13667 = vst [vmem:[#allocation42_spill] sm:$0xff] %v10437_v31  ;;  %v10449_v56 = vsub.f32 %v246_v50, %v630_v61  ;;  %9245 = vmatprep.subr.bf16.mxu1 %v10437_v31  ;;  %v10452_v60 = vsub.f32 %v339_v62, %v1531_v9  ;;  %v10454_v63 = vsub.f32 %v342_v7, %v1534_v13  ;;  %v35_v18 = vld [vmem:[%s13155_s0 + $0x40] sm:$0xff]  ;;  %v36_v50 = vld [vmem:[%s13155_s0 + $0x48] sm:$0xff]  ;;  %vm4263_vm1 = vcmask 130048  }
  0x20   :  { %v1486_v0 = vand.u32 4294901760, %v294_v41  ;;  %v10456_v1 = vpack.c.bf16 %v582_v39, %v579_v35  ;;  %v633_v14 = vand.u32 4294901760, %v249_v45  ;;  %v636_v3 = vand.u32 4294901760, %v252_v51  ;;  %v67_v61 = vld [vmem:[%s13155_s0 + $0x140] sm:$0xff]  ;;  %v68_v38 = vld [vmem:[%s13155_s0 + $0x148] sm:$0xff]  ;;  %v70_v23 = vld [vmem:[%s13155_s0 + $0x158] sm:$0xff] }
  0x21   :  { %13668 = vst [vmem:[#allocation43_spill] sm:$0xff] %v10449_v56  ;;  %13669 = vst [vmem:[#allocation44_spill] sm:$0xff] %v10452_v60  ;;  %v345_v17 = vsel %vm169_vm0, %v83_v40, 0  ;;  %v10468_v62 = vsub.f32 %v195_v26, %v579_v35  ;;  %v10470_v7 = vsub.f32 %v198_v27, %v582_v39  ;;  %v348_v9 = vsel %vm169_vm0, %v84_v46, 0  ;;  %v53_v26 = vld [vmem:[%s13155_s0 + $0xd0] sm:$0xff]  ;;  %v54_v27 = vld [vmem:[%s13155_s0 + $0xd8] sm:$0xff] }
  0x22   :  { %13670 = vst [vmem:[#allocation45_spill] sm:$0xff] %v10454_v63  ;;  %13671 = vst [vmem:[#allocation46_spill] sm:$0xff] %v10456_v1  ;;  %v1537_v13 = vand.u32 4294901760, %v345_v17  ;;  %v10473_v40 = vpack.c.bf16 %v1486_v0, %v1483_v42  ;;  %v10475_v31 = vsub.f32 %v291_v28, %v1483_v42  ;;  %v10477_v12 = vpack.c.bf16 %v636_v3, %v633_v14 }
  0x23   :  { %13672 = vst [vmem:[#allocation47_spill] sm:$0xff] %v10468_v62  ;;  %13673 = vst [vmem:[#allocation48_spill] sm:$0xff] %v10470_v7  ;;  %v1540_v55 = vand.u32 4294901760, %v348_v9  ;;  %v10488_v35 = vsub.f32 %v294_v41, %v1486_v0  ;;  %v201_v28 = vsel %vm169_vm0, %v35_v18, 0  ;;  %v204_v39 = vsel %vm169_vm0, %v36_v50, 0  ;;  %9055 = vmatpush3.bf16.xpose.msra.mxu0 %v10456_v1 }
  0x24   :  { %13674 = vst [vmem:[#allocation49_spill] sm:$0xff] %v10473_v40  ;;  %13675 = vst [vmem:[#allocation50_spill] sm:$0xff] %v10475_v31  ;;  %v297_v42 = vsel %vm169_vm0, %v67_v61, 0  ;;  %v10494_v46 = vsub.f32 %v249_v45, %v633_v14  ;;  %v585_v24 = vand.u32 4294901760, %v201_v28  ;;  %v588_v6 = vand.u32 4294901760, %v204_v39  ;;  %9057 = vmatprep.subr.bf16.mxu0 %v10477_v12  ;;  %v86_v45 = vld [vmem:[%s13155_s0 + $0x1d8] sm:$0xff]  ;;  %9247 = vmatpush3.bf16.xpose.msra.mxu1 %v10473_v40 }
  0x25   :  { %13676 = vst [vmem:[#allocation51_spill] sm:$0xff] %v10477_v12  ;;  %13677 = vst [vmem:[#allocation52_spill] sm:$0xff] %v10488_v35  ;;  %v10496_v16 = vpack.c.bf16 %v1540_v55, %v1537_v13  ;;  %v300_v41 = vsel %vm169_vm0, %v68_v38, 0  ;;  %v1489_v0 = vand.u32 4294901760, %v297_v42  ;;  %v255_v18 = vsel %vm169_vm0, %v53_v26, 0 }
  0x26   :  { %13678 = vst [vmem:[#allocation53_spill] sm:$0xff] %v10494_v46  ;;  %v258_v50 = vsel %vm169_vm0, %v54_v27, 0  ;;  %v10509_v14 = vsub.f32 %v252_v51, %v636_v3  ;;  %v10511_v61 = vsub.f32 %v345_v17, %v1537_v13  ;;  %v10513_v1 = vsub.f32 %v348_v9, %v1540_v55  ;;  %v38_v3 = vld [vmem:[%s13155_s0 + $0x58] sm:$0xff]  ;;  %v69_v55 = vld [vmem:[%s13155_s0 + $0x150] sm:$0xff] }
  0x27   :  { %13679 = vst [vmem:[#allocation54_spill] sm:$0xff] %v10496_v16  ;;  %v1492_v12 = vand.u32 4294901760, %v300_v41  ;;  %9249 = vmatprep.subr.bf16.mxu1 %v10496_v16  ;;  %v10516_v38 = vpack.c.bf16 %v588_v6, %v585_v24  ;;  %v639_v26 = vand.u32 4294901760, %v255_v18  ;;  %v642_v44 = vand.u32 4294901760, %v258_v50 }
  0x28   :  { %13680 = vst [vmem:[#allocation55_spill] sm:$0xff] %v10509_v14  ;;  %13681 = vst [vmem:[#allocation56_spill] sm:$0xff] %v10511_v61  ;;  %v351_v27 = vsel %vm169_vm0, %v85_v59, 0  ;;  %v10528_v51 = vsub.f32 %v201_v28, %v585_v24  ;;  %v10530_v17 = vsub.f32 %v204_v39, %v588_v6  ;;  %v354_v9 = vsel %vm169_vm0, %v86_v45, 0  ;;  %v55_v24 = vld [vmem:[%s13155_s0 + $0xe0] sm:$0xff]  ;;  %v56_v6 = vld [vmem:[%s13155_s0 + $0xe8] sm:$0xff] }
  0x29   :  { %13682 = vst [vmem:[#allocation57_spill] sm:$0xff] %v10513_v1  ;;  %13683 = vst [vmem:[#allocation58_spill] sm:$0xff] %v10516_v38  ;;  %v1543_v13 = vand.u32 4294901760, %v351_v27  ;;  %v10533_v59 = vpack.c.bf16 %v1492_v12, %v1489_v0  ;;  %v10535_v16 = vsub.f32 %v297_v42, %v1489_v0  ;;  %v10537_v40 = vpack.c.bf16 %v642_v44, %v639_v26  ;;  %v39_v1 = vld [vmem:[%s13155_s0 + $0x60] sm:$0xff]  ;;  %v41_v61 = vld [vmem:[%s13155_s0 + $0x70] sm:$0xff] }
  0x2a   :  { %13684 = vst [vmem:[#allocation59_spill] sm:$0xff] %v10528_v51  ;;  %13685 = vst [vmem:[#allocation60_spill] sm:$0xff] %v10530_v17  ;;  %v1546_v34 = vand.u32 4294901760, %v354_v9  ;;  %v10548_v28 = vsub.f32 %v300_v41, %v1492_v12  ;;  %v207_v39 = vsel %vm169_vm0, %v37_v49, 0  ;;  %v210_v42 = vsel %vm169_vm0, %v38_v3, 0  ;;  %v87_v51 = vld [vmem:[%s13155_s0 + $0x1e0] sm:$0xff] }
  0x2b   :  { %13686 = vst [vmem:[#allocation61_spill] sm:$0xff] %v10533_v59  ;;  %13687 = vst [vmem:[#allocation62_spill] sm:$0xff] %v10535_v16  ;;  %v303_v0 = vsel %vm169_vm0, %v69_v55, 0  ;;  %v10553_v45 = vsub.f32 %v255_v18, %v639_v26  ;;  %v591_v16 = vand.u32 4294901760, %v207_v39  ;;  %v594_v17 = vand.u32 4294901760, %v210_v42  ;;  %9059 = vmatpush3.bf16.xpose.msra.mxu0 %v10516_v38  ;;  %v88_v18 = vld [vmem:[%s13155_s0 + $0x1e8] sm:$0xff] }
  0x2c   :  { %13688 = vst [vmem:[#allocation63_spill] sm:$0xff] %v10537_v40  ;;  %13689 = vst [vmem:[#allocation64_spill] sm:$0xff] %v10548_v28  ;;  %v10555_v21 = vpack.c.bf16 %v1546_v34, %v1543_v13  ;;  %v306_v12 = vsel %vm169_vm0, %v70_v23, 0  ;;  %v1495_v41 = vand.u32 4294901760, %v303_v0  ;;  %v261_v49 = vsel %vm169_vm0, %v55_v24, 0  ;;  %9061 = vmatprep.subr.bf16.mxu0 %v10537_v40  ;;  %9251 = vmatpush3.bf16.xpose.msra.mxu1 %v10533_v59 }
  0x2d   :  { %13690 = vst [vmem:[#allocation65_spill] sm:$0xff] %v10553_v45  ;;  %v264_v3 = vsel %vm169_vm0, %v56_v6, 0  ;;  %v10568_v26 = vsub.f32 %v258_v50, %v642_v44  ;;  %v10570_v55 = vsub.f32 %v351_v27, %v1543_v13  ;;  %v10572_v45 = vsub.f32 %v354_v9, %v1546_v34  ;;  %v40_v44 = vld [vmem:[%s13155_s0 + $0x68] sm:$0xff]  ;;  %v71_v34 = vld [vmem:[%s13155_s0 + $0x160] sm:$0xff] }
  0x2e   :  { %13691 = vst [vmem:[#allocation66_spill] sm:$0xff] %v10555_v21  ;;  %v1498_v38 = vand.u32 4294901760, %v306_v12  ;;  %v10575_v23 = vpack.c.bf16 %v594_v17, %v591_v16  ;;  %v645_v24 = vand.u32 4294901760, %v261_v49  ;;  %v648_v28 = vand.u32 4294901760, %v264_v3  ;;  %9253 = vmatprep.subr.bf16.mxu1 %v10555_v21 }
  0x2f   :  { %13692 = vst [vmem:[#allocation67_spill] sm:$0xff] %v10568_v26  ;;  %13693 = vst [vmem:[#allocation68_spill] sm:$0xff] %v10570_v55  ;;  %v357_v6 = vsel %vm169_vm0, %v87_v51, 0  ;;  %v10588_v50 = vsub.f32 %v207_v39, %v591_v16  ;;  %v10590_v27 = vsub.f32 %v210_v42, %v594_v17  ;;  %v360_v51 = vsel %vm169_vm0, %v88_v18, 0  ;;  %v72_v55 = vld [vmem:[%s13155_s0 + $0x168] sm:$0xff]  ;;  %v57_v16 = vld [vmem:[%s13155_s0 + $0xf0] sm:$0xff] }
  0x30   :  { %13694 = vst [vmem:[#allocation69_spill] sm:$0xff] %v10572_v45  ;;  %13695 = vst [vmem:[#allocation70_spill] sm:$0xff] %v10575_v23  ;;  %v1549_v9 = vand.u32 4294901760, %v357_v6  ;;  %v10593_v13 = vpack.c.bf16 %v1498_v38, %v1495_v41  ;;  %v10595_v59 = vsub.f32 %v303_v0, %v1495_v41  ;;  %v10597_v40 = vsub.f32 %v306_v12, %v1498_v38  ;;  %v58_v17 = vld [vmem:[%s13155_s0 + $0xf8] sm:$0xff] }
  0x31   :  { %13696 = vst [vmem:[#allocation71_spill] sm:$0xff] %v10588_v50  ;;  %13697 = vst [vmem:[#allocation72_spill] sm:$0xff] %v10590_v27  ;;  %v1552_v45 = vand.u32 4294901760, %v360_v51  ;;  %v10608_v39 = vpack.c.bf16 %v648_v28, %v645_v24  ;;  %v213_v42 = vsel %vm169_vm0, %v39_v1, 0  ;;  %v216_v38 = vsel %vm169_vm0, %v40_v44, 0 }
  0x32   :  { %13698 = vst [vmem:[#allocation73_spill] sm:$0xff] %v10593_v13  ;;  %13699 = vst [vmem:[#allocation74_spill] sm:$0xff] %v10595_v59  ;;  %v309_v0 = vsel %vm169_vm0, %v71_v34, 0  ;;  %v10613_v12 = vsub.f32 %v261_v49, %v645_v24  ;;  %v597_v18 = vand.u32 4294901760, %v213_v42  ;;  %v600_v21 = vand.u32 4294901760, %v216_v38  ;;  %v90_v49 = vld [vmem:[%s13155_s0 + $0x1f8] sm:$0xff] }
  0x33   :  { %13700 = vst [vmem:[#allocation75_spill] sm:$0xff] %v10597_v40  ;;  %13701 = vst [vmem:[#allocation76_spill] sm:$0xff] %v10608_v39  ;;  %v10615_v41 = vpack.c.bf16 %v1552_v45, %v1549_v9  ;;  %v89_v40 = vld [vmem:[%s13155_s0 + $0x1f0] sm:$0xff]  ;;  %v312_v59 = vsel %vm169_vm0, %v72_v55, 0  ;;  %v1501_v27 = vand.u32 4294901760, %v309_v0  ;;  %v267_v50 = vsel %vm169_vm0, %v57_v16, 0  ;;  %9063 = vmatpush3.bf16.xpose.msra.mxu0 %v10575_v23 }
  0x34   :  { %13702 = vst [vmem:[#allocation77_spill] sm:$0xff] %v10613_v12  ;;  %v270_v1 = vsel %vm169_vm0, %v58_v17, 0  ;;  %v10627_v24 = vsub.f32 %v264_v3, %v648_v28  ;;  %v10629_v44 = vsub.f32 %v357_v6, %v1549_v9  ;;  %v10631_v34 = vsub.f32 %v360_v51, %v1552_v45  ;;  %9065 = vmatprep.subr.bf16.mxu0 %v10608_v39  ;;  %v42_v28 = vld [vmem:[%s13155_s0 + $0x78] sm:$0xff]  ;;  %v73_v45 = vld [vmem:[%s13155_s0 + $0x170] sm:$0xff] }
  0x35   :  { %13703 = vst [vmem:[#allocation78_spill] sm:$0xff] %v10615_v41  ;;  %v1504_v12 = vand.u32 4294901760, %v312_v59  ;;  %v10634_v55 = vpack.c.bf16 %v600_v21, %v597_v18  ;;  %v651_v16 = vand.u32 4294901760, %v267_v50  ;;  %v654_v26 = vand.u32 4294901760, %v270_v1  ;;  %9255 = vmatpush3.bf16.xpose.msra.mxu1 %v10593_v13  ;;  %v74_v13 = vld [vmem:[%s13155_s0 + $0x178] sm:$0xff] }
  0x36   :  { %13704 = vst [vmem:[#allocation79_spill] sm:$0xff] %v10627_v24  ;;  %13705 = vst [vmem:[#allocation80_spill] sm:$0xff] %v10629_v44  ;;  %v363_v17 = vsel %vm169_vm0, %v89_v40, 0  ;;  %v10647_v3 = vsub.f32 %v213_v42, %v597_v18  ;;  %v10649_v6 = vsub.f32 %v216_v38, %v600_v21  ;;  %v10651_v51 = vsub.f32 %v309_v0, %v1501_v27  ;;  %v155_v21 = vld [vmem:[%s13156_s1] sm:$0xff] }
  0x37   :  { %13706 = vst [vmem:[#allocation81_spill] sm:$0xff] %v10631_v34  ;;  %13707 = vst [vmem:[#allocation82_spill] sm:$0xff] %v10634_v55  ;;  %v366_v40 = vsel %vm169_vm0, %v90_v49, 0  ;;  %9257 = vmatprep.subr.bf16.mxu1 %v10615_v41  ;;  %v10655_v9 = vpack.c.bf16 %v1504_v12, %v1501_v27  ;;  %v10657_v39 = vsub.f32 %v312_v59, %v1504_v12  ;;  %v1555_v23 = vand.u32 4294901760, %v363_v17 }
  0x38   :  { %13708 = vst [vmem:[#allocation83_spill] sm:$0xff] %v10649_v6  ;;  %13709 = vst [vmem:[#allocation84_spill] sm:$0xff] %v10651_v51  ;;  %v1558_v34 = vand.u32 4294901760, %v366_v40  ;;  %v10665_v42 = vpack.c.bf16 %v654_v26, %v651_v16  ;;  %v219_v38 = vsel %vm169_vm0, %v41_v61, 0  ;;  %v10669_v0 = vsel %vm169_vm0, %v42_v28, 0 }
  0x39   :  { %13710 = vst [vmem:[#allocation85_spill] sm:$0xff] %v10655_v9  ;;  %13711 = vst [vmem:[#allocation86_spill] sm:$0xff] %v10657_v39  ;;  %v10672_v59 = vsel %vm169_vm0, %v73_v45, 0  ;;  %v10674_v27 = vsub.f32 %v267_v50, %v651_v16  ;;  %v10676_v12 = vsub.f32 %v270_v1, %v654_v26  ;;  %v603_v18 = vand.u32 4294901760, %v219_v38 }
  0x3a   :  { %13712 = vst [vmem:[#allocation87_spill] sm:$0xff] %v10665_v42  ;;  %v13234_v49 = vand.u32 4294901760, %v10669_v0  ;;  %v10680_v41 = vsel %vm169_vm0, %v74_v13, 0  ;;  %v13236_v39 = vand.u32 4294901760, %v10672_v59  ;;  %v171_v61 = vsel %vm169_vm0, %v155_v21, 0 }
  0x3b   :  { %v13233_v28 = vand.u32 4294901760, %v10255_v22  ;;  %v10685_v51 = vpack.c.bf16 %v1558_v34, %v1555_v23  ;;  %v10687_v45 = vsub.f32 %v363_v17, %v1555_v23  ;;  %v10689_v50 = vsub.f32 %v366_v40, %v1558_v34  ;;  %9067 = vmatpush3.bf16.xpose.msra.mxu0 %v10634_v55 }
  0x3c   :  { %v13235_v26 = vand.u32 4294901760, %v10680_v41  ;;  %v10695_v13 = vpack.c.bf16 %v13234_v49, %v603_v18  ;;  %v10697_v1 = vand.u32 4294901760, %v171_v61  ;;  %v13239_v21 = vand.u32 4294901760, %v10269_v32  ;;  %9069 = vmatprep.subr.bf16.mxu0 %v10665_v42 }
  0x3d   :  { %13713 = vst [vmem:[#allocation88_spill] sm:$0xff] %v10685_v51  ;;  %13714 = vst [vmem:[#allocation89_spill] sm:$0xff] %v10687_v45  ;;  %v795_v16 = vsub.f32 %v10255_v22, %v13233_v28  ;;  %v10704_v23 = vsub.f32 %v219_v38, %v603_v18  ;;  %v13246_v17 = vand.u32 4294901760, %v10272_v33  ;;  %v13247_v40 = vand.u32 4294901760, %v10276_v36  ;;  %9259 = vmatpush3.bf16.xpose.msra.mxu1 %v10655_v9 }
  0x3e   :  { %13715 = vst [vmem:[#allocation90_spill] sm:$0xff] %v10689_v50  ;;  %13716 = vst [vmem:[#allocation91_spill] sm:$0xff] %v10695_v13  ;;  %v10710_v34 = vpack.c.bf16 %v13235_v26, %v13236_v39  ;;  %v10716_v28 = vsub.f32 %v171_v61, %v10697_v1  ;;  %v802_v38 = vsub.f32 %v10269_v32, %v13239_v21  ;;  %v13254_v18 = vand.u32 4294901760, %v10289_v43 }
  0x3f   :  { %13717 = vst [vmem:[#allocation92_spill] sm:$0xff] %v10697_v1  ;;  %13718 = vst [vmem:[#allocation93_spill] sm:$0xff] %v10704_v23  ;;  %v796_v49 = vand.u32 4294901760, %v795_v16  ;;  %9261 = vmatprep.subr.bf16.mxu1 %v10685_v51  ;;  %v1699_v26 = vsub.f32 %v10272_v33, %v13246_v17  ;;  %v1706_v39 = vsub.f32 %v10276_v36, %v13247_v40  ;;  %v13259_v61 = vand.u32 4294901760, %v10294_v47 }
  0x40   :  { %13719 = vst [vmem:[#allocation94_spill] sm:$0xff] %v10710_v34  ;;  %13720 = vst [vmem:[#allocation95_spill] sm:$0xff] %v10716_v28  ;;  %v13262_v16 = vand.u32 4294901760, %v10296_v48  ;;  %v10732_v9 = vand.u32 4294901760, %v10716_v28  ;;  %v803_v21 = vand.u32 4294901760, %v802_v38  ;;  %v683_v51 = vsub.f32 %v10289_v43, %v13254_v18 }
  0x41   :  { %v13266_v42 = vand.u32 4294901760, %v10310_v54  ;;  %v1700_v55 = vand.u32 4294901760, %v1699_v26  ;;  %v1707_v17 = vand.u32 4294901760, %v1706_v39  ;;  %v690_v40 = vsub.f32 %v10294_v47, %v13259_v61 }
  0x42   :  { %13721 = vst [vmem:[#allocation96_spill] sm:$0xff] %v10732_v9  ;;  %v1587_v1 = vsub.f32 %v10296_v48, %v13262_v16  ;;  %v660_v36 = vsub.f32 %v10716_v28, %v10732_v9  ;;  %v9072_v38 = vpack.c.bf16 %v803_v21, %v796_v49  ;;  %v684_v33 = vand.u32 4294901760, %v683_v51 }
  0x43   :  { %v1594_v18 = vsub.f32 %v10310_v54, %v13266_v42  ;;  %v9264_v43 = vpack.c.bf16 %v1707_v17, %v1700_v55  ;;  %v691_v26 = vand.u32 4294901760, %v690_v40  ;;  %v13269_v32 = vand.u32 4294901760, %v10316_v58  ;;  %9071 = vmatpush3.bf16.xpose.msra.mxu0 %v10695_v13 }
  0x44   :  { %v1588_v39 = vand.u32 4294901760, %v1587_v1  ;;  %v10751_v61 = vand.u32 4294901760, %v660_v36  ;;  %v13268_v16 = vand.u32 4294901760, %v10329_v4  ;;  %v13265_v9 = vand.u32 4294901760, %v10332_v5  ;;  %9073 = vmatprep.subr.bf16.mxu0 %v9072_v38 }
  0x45   :  { %v1595_v47 = vand.u32 4294901760, %v1594_v18  ;;  %v9074_v51 = vpack.c.bf16 %v691_v26, %v684_v33  ;;  %v809_v49 = vsub.f32 %v10316_v58, %v13269_v32  ;;  %v13267_v55 = vand.u32 4294901760, %v10336_v8  ;;  %9263 = vmatpush3.bf16.xpose.msra.mxu1 %v10710_v34 }
  0x46   :  { %13722 = vst [vmem:[#allocation97_spill] sm:$0xff] %v10751_v61  ;;  %v13270_v1 = vand.u32 4294901760, %v10348_v15  ;;  %8208 = vmatprep.mubr.f32.mxu0 %v10751_v61  ;;  %v816_v21 = vsub.f32 %v10329_v4, %v13268_v16  ;;  %v1713_v33 = vsub.f32 %v10332_v5, %v13265_v9  ;;  %v13271_v17 = vand.u32 4294901760, %v10354_v19  ;;  %8424 = vmatprep.mubr.f32.mxu1 %v10751_v61 }
  0x47   :  { %v9266_v36 = vpack.c.bf16 %v1595_v47, %v1588_v39  ;;  %9265 = vmatprep.subr.bf16.mxu1 %v9264_v43  ;;  %v810_v40 = vand.u32 4294901760, %v809_v49  ;;  %v1720_v18 = vsub.f32 %v10336_v8, %v13267_v55  ;;  %v13275_v38 = vand.u32 4294901760, %v10356_v20 }
  0x48   :  { %v697_v47 = vsub.f32 %v10348_v15, %v13270_v1  ;;  %v817_v26 = vand.u32 4294901760, %v816_v21  ;;  %v1714_v39 = vand.u32 4294901760, %v1713_v33  ;;  %v704_v9 = vsub.f32 %v10354_v19, %v13271_v17 }
  0x49   :  { %v13274_v42 = vand.u32 4294901760, %v10369_v29  ;;  %v1721_v43 = vand.u32 4294901760, %v1720_v18  ;;  %v1601_v55 = vsub.f32 %v10356_v20, %v13275_v38  ;;  %v13280_v16 = vand.u32 4294901760, %v10376_v37 }
  0x4a   :  { %v698_v49 = vand.u32 4294901760, %v697_v47  ;;  %v9076_v32 = vpack.c.bf16 %v817_v26, %v810_v40  ;;  %v705_v1 = vand.u32 4294901760, %v704_v9  ;;  %v13276_v33 = vand.u32 4294901760, %v10389_v52  ;;  %8209 = vmatmul.mubr.f32.vlgmr.msra.gmra.mrb[0].mxu0 %v10751_v61 }
  0x4b   :  { %v1608_v21 = vsub.f32 %v10369_v29, %v13274_v42  ;;  %v13723_v17 = vand.u32 4294901760, %v10669_v0  ;;  %v9268_v18 = vpack.c.bf16 %v1721_v43, %v1714_v39  ;;  %v823_v47 = vsub.f32 %v10376_v37, %v13280_v16  ;;  %9075 = vmatpush3.bf16.xpose.msra.mxu0 %v9074_v51 }
  0x4c   :  { %v13277_v9 = vand.u32 4294901760, %v10392_v53  ;;  %v1602_v40 = vand.u32 4294901760, %v1601_v55  ;;  %v830_v42 = vsub.f32 %v10389_v52, %v13276_v33  ;;  %v13278_v38 = vand.u32 4294901760, %v10396_v57  ;;  %8425 = vmatmul.mubr.f32.vlgmr.msra.gmra.mrb[0].mxu1 %v10751_v61  ;;  %9077 = vmatprep.subr.bf16.mxu0 %v9076_v32 }
  0x4d   :  { %v10792_v34 = vsub.f32 %v10669_v0, %v13723_v17  ;;  %v1609_v26 = vand.u32 4294901760, %v1608_v21  ;;  %v824_v0 = vand.u32 4294901760, %v823_v47  ;;  %v13279_v39 = vand.u32 4294901760, %v10408_v2  ;;  %9267 = vmatpush3.bf16.xpose.msra.mxu1 %v9266_v36 }
  0x4e   :  { %v1727_v17 = vsub.f32 %v10392_v53, %v13277_v9  ;;  %v13283_v51 = vand.u32 4294901760, %v10413_v10  ;;  %v9078_v55 = vpack.c.bf16 %v705_v1, %v698_v49  ;;  %v831_v43 = vand.u32 4294901760, %v830_v42  ;;  %9269 = vmatprep.subr.bf16.mxu1 %v9268_v18 }
  0x4f   :  { %13724 = vst [vmem:[#allocation98_spill] sm:$0xff] %v10792_v34  ;;  %v1734_v21 = vsub.f32 %v10396_v57, %v13278_v38  ;;  %v13284_v33 = vand.u32 4294901760, %v10415_v11  ;;  %v711_v47 = vsub.f32 %v10408_v2, %v13279_v39  ;;  %v13285_v36 = vand.u32 4294901760, %v10429_v25 }
  0x50   :  { %v1728_v32 = vand.u32 4294901760, %v1727_v17  ;;  %v718_v9 = vsub.f32 %v10413_v10, %v13283_v51  ;;  %v9270_v1 = vpack.c.bf16 %v1609_v26, %v1602_v40  ;;  %v13288_v38 = vand.u32 4294901760, %v10435_v30 }
  0x51   :  { %v1735_v42 = vand.u32 4294901760, %v1734_v21  ;;  %v1615_v49 = vsub.f32 %v10415_v11, %v13284_v33  ;;  %v9080_v18 = vpack.c.bf16 %v831_v43, %v824_v0  ;;  %v712_v17 = vand.u32 4294901760, %v711_v47 }
  0x52   :  { %v1622_v39 = vsub.f32 %v10429_v25, %v13285_v36  ;;  %v13286_v16 = vand.u32 4294901760, %v10449_v56  ;;  %v719_v51 = vand.u32 4294901760, %v718_v9  ;;  %v837_v40 = vsub.f32 %v10435_v30, %v13288_v38 }
  0x53   :  { %v9272_v61 = vpack.c.bf16 %v1735_v42, %v1728_v32  ;;  %v13287_v26 = vand.u32 4294901760, %v10452_v60  ;;  %v1616_v21 = vand.u32 4294901760, %v1615_v49  ;;  %v13289_v43 = vand.u32 4294901760, %v10454_v63  ;;  %9079 = vmatpush3.bf16.xpose.msra.mxu0 %v9078_v55 }
  0x54   :  { %v1623_v33 = vand.u32 4294901760, %v1622_v39  ;;  %v844_v0 = vsub.f32 %v10449_v56, %v13286_v16  ;;  %v838_v47 = vand.u32 4294901760, %v837_v40  ;;  %v13290_v32 = vand.u32 4294901760, %v10468_v62  ;;  %9081 = vmatprep.subr.bf16.mxu0 %v9080_v18 }
  0x55   :  { %v1741_v9 = vsub.f32 %v10452_v60, %v13287_v26  ;;  %v13293_v42 = vand.u32 4294901760, %v10470_v7  ;;  %v13725_v36 = vand.u32 4294901760, %v10672_v59  ;;  %v1748_v55 = vsub.f32 %v10454_v63, %v13289_v43  ;;  %9271 = vmatpush3.bf16.xpose.msra.mxu1 %v9270_v1 }
  0x56   :  { %v845_v49 = vand.u32 4294901760, %v844_v0  ;;  %v13296_v40 = vand.u32 4294901760, %v10475_v31  ;;  %v725_v26 = vsub.f32 %v10468_v62, %v13290_v32  ;;  %9273 = vmatprep.subr.bf16.mxu1 %v9272_v61  ;;  %v13302_v1 = vand.u32 4294901760, %v10494_v46 }
  0x57   :  { %v10844_v39 = vsub.f32 %v10672_v59, %v13725_v36  ;;  %v1742_v16 = vand.u32 4294901760, %v1741_v9  ;;  %v732_v38 = vsub.f32 %v10470_v7, %v13293_v42  ;;  %v13297_v59 = vand.u32 4294901760, %v10488_v35 }
  0x58   :  { %v9082_v36 = vpack.c.bf16 %v719_v51, %v712_v17  ;;  %v1749_v18 = vand.u32 4294901760, %v1748_v55  ;;  %v1629_v0 = vsub.f32 %v10475_v31, %v13296_v40  ;;  %v9274_v9 = vpack.c.bf16 %v1623_v33, %v1616_v21  ;;  %v13726_v51 = vld [vmem:[#allocation56_spill] sm:$0xff]  ;;  %v13727_v21 = vld [vmem:[#allocation57_spill] sm:$0xff] }
  0x59   :  { %v9084_v43 = vpack.c.bf16 %v845_v49, %v838_v47  ;;  %v1636_v32 = vsub.f32 %v10488_v35, %v13297_v59  ;;  %v13305_v13 = vand.u32 4294901760, %v10509_v14  ;;  %v726_v42 = vand.u32 4294901760, %v725_v26  ;;  %v13729_v35 = vld [vmem:[#allocation60_spill] sm:$0xff] }
  0x5a   :  { %v733_v28 = vand.u32 4294901760, %v732_v38  ;;  %v851_v61 = vsub.f32 %v10494_v46, %v13302_v1  ;;  %v13306_v17 = vand.u32 4294901760, %v13726_v51  ;;  %v9276_v55 = vpack.c.bf16 %v1749_v18, %v1742_v16  ;;  %v13728_v38 = vld [vmem:[#allocation59_spill] sm:$0xff]  ;;  %v13730_v18 = vld [vmem:[#allocation62_spill] sm:$0xff] }
  0x5b   :  { %v1630_v40 = vand.u32 4294901760, %v1629_v0  ;;  %v858_v33 = vsub.f32 %v10509_v14, %v13305_v13  ;;  %v13308_v47 = vand.u32 4294901760, %v13727_v21  ;;  %v1637_v49 = vand.u32 4294901760, %v1636_v32  ;;  %9083 = vmatpush3.bf16.xpose.msra.mxu0 %v9082_v36 }
  0x5c   :  { %v1755_v26 = vsub.f32 %v13726_v51, %v13306_v17  ;;  %v13310_v59 = vand.u32 4294901760, %v13728_v38  ;;  %v13312_v31 = vand.u32 4294901760, %v13729_v35  ;;  %v852_v1 = vand.u32 4294901760, %v851_v61  ;;  %9085 = vmatprep.subr.bf16.mxu0 %v9084_v43  ;;  %v13731_v51 = vld [vmem:[#allocation64_spill] sm:$0xff] }
  0x5d   :  { %v859_v46 = vand.u32 4294901760, %v858_v33  ;;  %v1762_v16 = vsub.f32 %v13727_v21, %v13308_v47  ;;  %v13318_v0 = vand.u32 4294901760, %v13730_v18  ;;  %v13320_v36 = vand.u32 4294901760, %v13731_v51  ;;  %9275 = vmatpush3.bf16.xpose.msra.mxu1 %v9274_v9 }
  0x5e   :  { %v1756_v13 = vand.u32 4294901760, %v1755_v26  ;;  %v739_v32 = vsub.f32 %v13728_v38, %v13310_v59  ;;  %v746_v17 = vsub.f32 %v13729_v35, %v13312_v31  ;;  %v13732_v61 = vand.u32 4294901760, %v10680_v41  ;;  %v13733_v26 = vld [vmem:[#allocation65_spill] sm:$0xff]  ;;  %9277 = vmatprep.subr.bf16.mxu1 %v9276_v55  ;;  %v13734_v35 = vld [vmem:[#allocation67_spill] sm:$0xff] }
  0x5f   :  { %v1763_v47 = vand.u32 4294901760, %v1762_v16  ;;  %v1643_v43 = vsub.f32 %v13730_v18, %v13318_v0  ;;  %v13321_v21 = vand.u32 4294901760, %v13733_v26  ;;  %v9086_v59 = vpack.c.bf16 %v733_v28, %v726_v42  ;;  %v13735_v16 = vld [vmem:[#allocation68_spill] sm:$0xff]  ;;  %v13736_v42 = vld [vmem:[#allocation69_spill] sm:$0xff] }
  0x60   :  { %v10892_v33 = vsub.f32 %v10680_v41, %v13732_v61  ;;  %v9278_v38 = vpack.c.bf16 %v1637_v49, %v1630_v40  ;;  %v1650_v31 = vsub.f32 %v13731_v51, %v13320_v36  ;;  %v13323_v14 = vand.u32 4294901760, %v13734_v35 }
  0x61   :  { %v9088_v7 = vpack.c.bf16 %v859_v46, %v852_v1  ;;  %v740_v41 = vand.u32 4294901760, %v739_v32  ;;  %v865_v9 = vsub.f32 %v13733_v26, %v13321_v21  ;;  %v13324_v61 = vand.u32 4294901760, %v13735_v16  ;;  %v13737_v1 = vld [vmem:[#allocation71_spill] sm:$0xff]  ;;  %v13738_v32 = vld [vmem:[#allocation72_spill] sm:$0xff] }
  0x62   :  { %v9280_v0 = vpack.c.bf16 %v1763_v47, %v1756_v13  ;;  %v747_v18 = vand.u32 4294901760, %v746_v17  ;;  %v872_v28 = vsub.f32 %v13734_v35, %v13323_v14  ;;  %v13327_v40 = vand.u32 4294901760, %v13736_v42  ;;  %v13739_v17 = vld [vmem:[#allocation74_spill] sm:$0xff] }
  0x63   :  { %v1644_v55 = vand.u32 4294901760, %v1643_v43  ;;  %v1769_v46 = vsub.f32 %v13735_v16, %v13324_v61  ;;  %v13330_v49 = vand.u32 4294901760, %v13737_v1  ;;  %v13331_v36 = vand.u32 4294901760, %v13738_v32  ;;  %9087 = vmatpush3.bf16.xpose.msra.mxu0 %v9086_v59  ;;  %v13740_v16 = vld [vmem:[#allocation75_spill] sm:$0xff] }
  0x64   :  { %v1651_v21 = vand.u32 4294901760, %v1650_v31  ;;  %v866_v26 = vand.u32 4294901760, %v865_v9  ;;  %v1776_v13 = vsub.f32 %v13736_v42, %v13327_v40  ;;  %v13333_v47 = vand.u32 4294901760, %v13739_v17  ;;  %9089 = vmatprep.subr.bf16.mxu0 %v9088_v7  ;;  %v13741_v42 = vld [vmem:[#allocation77_spill] sm:$0xff] }
  0x65   :  { %v873_v14 = vand.u32 4294901760, %v872_v28  ;;  %v753_v43 = vsub.f32 %v13737_v1, %v13330_v49  ;;  %v760_v61 = vsub.f32 %v13738_v32, %v13331_v36  ;;  %v13335_v35 = vand.u32 4294901760, %v13740_v16  ;;  %9279 = vmatpush3.bf16.xpose.msra.mxu1 %v9278_v38 }
  0x66   :  { %v1770_v31 = vand.u32 4294901760, %v1769_v46  ;;  %v1777_v9 = vand.u32 4294901760, %v1776_v13  ;;  %v1657_v40 = vsub.f32 %v13739_v17, %v13333_v47  ;;  %v13336_v59 = vand.u32 4294901760, %v13741_v42  ;;  %9281 = vmatprep.subr.bf16.mxu1 %v9280_v0 }
  0x67   :  { %v754_v28 = vand.u32 4294901760, %v753_v43  ;;  %v761_v51 = vand.u32 4294901760, %v760_v61  ;;  %v1664_v49 = vsub.f32 %v13740_v16, %v13335_v35  ;;  %v13337_v36 = vand.u32 4294901760, %v10627_v24  ;;  %v13742_v61 = vld [vmem:[#allocation81_spill] sm:$0xff] }
  0x68   :  { %v9090_v32 = vpack.c.bf16 %v747_v18, %v740_v41  ;;  %v9282_v7 = vpack.c.bf16 %v1651_v21, %v1644_v55  ;;  %v879_v46 = vsub.f32 %v13741_v42, %v13336_v59  ;;  %v13338_v13 = vand.u32 4294901760, %v10629_v44 }
  0x69   :  { %v1658_v47 = vand.u32 4294901760, %v1657_v40  ;;  %v1665_v17 = vand.u32 4294901760, %v1664_v49  ;;  %v886_v38 = vsub.f32 %v10627_v24, %v13337_v36  ;;  %v13341_v43 = vand.u32 4294901760, %v13742_v61  ;;  %v13743_v49 = vld [vmem:[#allocation84_spill] sm:$0xff] }
  0x6a   :  { %v9092_v35 = vpack.c.bf16 %v873_v14, %v866_v26  ;;  %v1783_v18 = vsub.f32 %v10629_v44, %v13338_v13  ;;  %v13342_v21 = vand.u32 4294901760, %v10647_v3  ;;  %v13343_v0 = vand.u32 4294901760, %v10649_v6  ;;  %v13744_v13 = vld [vmem:[#allocation86_spill] sm:$0xff] }
  0x6b   :  { %v9284_v41 = vpack.c.bf16 %v1777_v9, %v1770_v31  ;;  %v9094_v55 = vpack.c.bf16 %v761_v51, %v754_v28  ;;  %v1790_v40 = vsub.f32 %v13742_v61, %v13341_v43  ;;  %v13347_v59 = vand.u32 4294901760, %v13743_v49  ;;  %9091 = vmatpush3.bf16.xpose.msra.mxu0 %v9090_v32 }
  0x6c   :  { %v880_v36 = vand.u32 4294901760, %v879_v46  ;;  %v767_v14 = vsub.f32 %v10647_v3, %v13342_v21  ;;  %v774_v26 = vsub.f32 %v10649_v6, %v13343_v0  ;;  %v13346_v44 = vand.u32 4294901760, %v13744_v13  ;;  %9093 = vmatprep.subr.bf16.mxu0 %v9092_v35 }
  0x6d   :  { %v9286_v31 = vpack.c.bf16 %v1665_v17, %v1658_v47  ;;  %v887_v51 = vand.u32 4294901760, %v886_v38  ;;  %v1671_v9 = vsub.f32 %v13743_v49, %v13347_v59  ;;  %v13350_v28 = vand.u32 4294901760, %v10674_v27  ;;  %9283 = vmatpush3.bf16.xpose.msra.mxu1 %v9282_v7 }
  0x6e   :  { %v1784_v46 = vand.u32 4294901760, %v1783_v18  ;;  %v1791_v43 = vand.u32 4294901760, %v1790_v40  ;;  %v1678_v21 = vsub.f32 %v13744_v13, %v13346_v44  ;;  %v13348_v0 = vand.u32 4294901760, %v10676_v12  ;;  %9285 = vmatprep.subr.bf16.mxu1 %v9284_v41  ;;  %v156_v41 = vld [vmem:[%s13156_s1 + $0x8] sm:$0xff] }
  0x6f   :  { %v768_v6 = vand.u32 4294901760, %v767_v14  ;;  %v775_v32 = vand.u32 4294901760, %v774_v26  ;;  %v893_v17 = vsub.f32 %v10674_v27, %v13350_v28  ;;  %v13349_v47 = vand.u32 4294901760, %v10687_v45 }
  0x70   :  { %v1672_v38 = vand.u32 4294901760, %v1671_v9  ;;  %v1679_v35 = vand.u32 4294901760, %v1678_v21  ;;  %v900_v18 = vsub.f32 %v10676_v12, %v13348_v0  ;;  %v13353_v40 = vand.u32 4294901760, %v10689_v50 }
  0x71   :  { %v894_v44 = vand.u32 4294901760, %v893_v17  ;;  %v1797_v7 = vsub.f32 %v10687_v45, %v13349_v47  ;;  %v13356_v14 = vand.u32 4294901760, %v10704_v23  ;;  %v13359_v26 = vand.u32 4294901760, %v10792_v34 }
  0x72   :  { %v9096_v21 = vpack.c.bf16 %v887_v51, %v880_v36  ;;  %v901_v9 = vand.u32 4294901760, %v900_v18  ;;  %v1804_v59 = vsub.f32 %v10689_v50, %v13353_v40  ;;  %v13362_v36 = vand.u32 4294901760, %v10892_v33 }
  0x73   :  { %v1798_v0 = vand.u32 4294901760, %v1797_v7  ;;  %v10989_v47 = vsub.f32 %v10704_v23, %v13356_v14  ;;  %v10994_v28 = vsub.f32 %v10792_v34, %v13359_v26  ;;  %v9288_v51 = vpack.c.bf16 %v1791_v43, %v1784_v46  ;;  %9095 = vmatpush3.bf16.xpose.msra.mxu0 %v9094_v55  ;;  %v13747_v43 = vld [vmem:[#allocation7_spill] sm:$0xff]  ;;  %v13749_v46 = vld [vmem:[#allocation10_spill] sm:$0xff] }
  0x74   :  { %v9098_v18 = vpack.c.bf16 %v775_v32, %v768_v6  ;;  %v1805_v45 = vand.u32 4294901760, %v1804_v59  ;;  %v174_v40 = vsel %vm169_vm0, %v156_v41, 0  ;;  %v9290_v17 = vpack.c.bf16 %v1679_v35, %v1672_v38  ;;  %9097 = vmatprep.subr.bf16.mxu0 %v9096_v21  ;;  %v13748_v59 = vld [vmem:[#allocation8_spill] sm:$0xff]  ;;  %v13751_v38 = vld [vmem:[#allocation11_spill] sm:$0xff]  ;;  %v13752_v35 = vld [vmem:[#allocation13_spill] sm:$0xff] }
  0x75   :  { %v9100_v7 = vpack.c.bf16 %v901_v9, %v894_v44  ;;  %v13745_v50 = vand.u32 4294901760, %v10844_v39  ;;  %v11001_v23 = vand.u32 4294901760, %v174_v40  ;;  %v782_v26 = vand.u32 4294901760, %v10989_v47  ;;  %9287 = vmatpush3.bf16.xpose.msra.mxu1 %v9286_v31 }
  0x76   :  { %v789_v34 = vand.u32 4294901760, %v10994_v28  ;;  %v9104_v6 = vpack.c.bf16 %v13747_v43, %v10255_v22  ;;  %v9296_v32 = vpack.c.bf16 %v13749_v46, %v13748_v59  ;;  %v9292_v55 = vpack.c.bf16 %v1805_v45, %v1798_v0  ;;  %9289 = vmatprep.subr.bf16.mxu1 %v9288_v51 }
  0x77   :  { %v1685_v14 = vsub.f32 %v10844_v39, %v13745_v50  ;;  %13746 = vst [vmem:[#allocation77_spill] sm:$0xff] %v11001_v23  ;;  %v1692_v44 = vsub.f32 %v10892_v33, %v13362_v36  ;;  %v11013_v50 = vsub.f32 %v174_v40, %v11001_v23  ;;  %v9106_v47 = vpack.c.bf16 %v13752_v35, %v13751_v38 }
  0x78   :  { %v9298_v28 = vpack.c.bf16 %v10310_v54, %v10296_v48  ;;  %v9108_v41 = vpack.c.bf16 %v10329_v4, %v10316_v58  ;;  %v9300_v45 = vpack.c.bf16 %v10336_v8, %v10332_v5  ;;  %v9110_v0 = vpack.c.bf16 %v10354_v19, %v10348_v15  ;;  %v13757_v15 = vld [vmem:[#allocation53_spill] sm:$0xff]  ;;  %v13759_v5 = vld [vmem:[#allocation56_spill] sm:$0xff]  ;;  %v13761_v54 = vld [vmem:[#allocation59_spill] sm:$0xff] }
  0x79   :  { %13750 = vst [vmem:[#allocation7_spill] sm:$0xff] %v11013_v50  ;;  %v1686_v31 = vand.u32 4294901760, %v1685_v14  ;;  %v11026_v40 = vand.u32 4294901760, %v11013_v50  ;;  %v9302_v21 = vpack.c.bf16 %v10369_v29, %v10356_v20  ;;  %v9112_v9 = vpack.c.bf16 %v10389_v52, %v10376_v37  ;;  %v13754_v20 = vld [vmem:[#allocation48_spill] sm:$0xff]  ;;  %v13755_v37 = vld [vmem:[#allocation50_spill] sm:$0xff] }
  0x7a   :  { %v9304_v51 = vpack.c.bf16 %v10396_v57, %v10392_v53  ;;  %v9114_v36 = vpack.c.bf16 %v10413_v10, %v10408_v2  ;;  %v9306_v8 = vpack.c.bf16 %v10429_v25, %v10415_v11  ;;  %v9116_v14 = vpack.c.bf16 %v10449_v56, %v10435_v30  ;;  %v13756_v57 = vld [vmem:[#allocation52_spill] sm:$0xff]  ;;  %v13758_v10 = vld [vmem:[#allocation55_spill] sm:$0xff]  ;;  %v13760_v25 = vld [vmem:[#allocation57_spill] sm:$0xff] }
  0x7b   :  { %13753 = vst [vmem:[#allocation8_spill] sm:$0xff] %v11026_v40  ;;  %v671_v19 = vsub.f32 %v11013_v50, %v11026_v40  ;;  %v9308_v29 = vpack.c.bf16 %v10454_v63, %v10452_v60  ;;  %v9118_v52 = vpack.c.bf16 %v13754_v20, %v10468_v62  ;;  %v9310_v53 = vpack.c.bf16 %v13756_v57, %v13755_v37  ;;  %v13762_v56 = vld [vmem:[#allocation60_spill] sm:$0xff]  ;;  %v13763_v48 = vld [vmem:[#allocation62_spill] sm:$0xff]  ;;  %v13766_v60 = vld [vmem:[#allocation65_spill] sm:$0xff] }
  0x7c   :  { %v9120_v2 = vpack.c.bf16 %v13758_v10, %v13757_v15  ;;  %v9312_v11 = vpack.c.bf16 %v13760_v25, %v13759_v5  ;;  %v9122_v30 = vpack.c.bf16 %v13762_v56, %v13761_v54  ;;  %v13764_v40 = vld [vmem:[#allocation64_spill] sm:$0xff]  ;;  %9099 = vmatpush3.bf16.xpose.msra.mxu0 %v9098_v18  ;;  %v13767_v20 = vld [vmem:[#allocation67_spill] sm:$0xff]  ;;  %v13769_v57 = vld [vmem:[#allocation69_spill] sm:$0xff]  ;;  %v9128_v56 = vpack.c.bf16 %v10627_v24, %v13741_v42 }
  0x7d   :  { %v9314_v4 = vpack.c.bf16 %v13764_v40, %v13763_v48  ;;  %v11056_v63 = vand.u32 4294901760, %v671_v19  ;;  %v9124_v62 = vpack.c.bf16 %v13767_v20, %v13766_v60  ;;  %v13768_v58 = vld [vmem:[#allocation68_spill] sm:$0xff]  ;;  %9101 = vmatprep.subr.bf16.mxu0 %v9100_v7  ;;  %v13771_v25 = vld [vmem:[#allocation74_spill] sm:$0xff]  ;;  %v13773_v18 = vld [vmem:[#allocation83_spill] sm:$0xff]  ;;  %9291 = vmatpush3.bf16.xpose.msra.mxu1 %v9290_v17  ;;  %v1693_v20 = vand.u32 4294901760, %v1692_v44 }
  0x7e   :  { %v9316_v37 = vpack.c.bf16 %v13769_v57, %v13768_v58  ;;  %v13770_v10 = vld [vmem:[#allocation72_spill] sm:$0xff]  ;;  %v9318_v5 = vpack.c.bf16 %v13740_v16, %v13771_v25  ;;  %v9130_v48 = vpack.c.bf16 %v13773_v18, %v10647_v3  ;;  %v9132_v7 = vpack.c.bf16 %v10676_v12, %v10674_v27  ;;  %v13774_v16 = vld [vmem:[#allocation89_spill] sm:$0xff]  ;;  %v13775_v25 = vld [vmem:[#allocation90_spill] sm:$0xff]  ;;  %9293 = vmatprep.subr.bf16.mxu1 %v9292_v55 }
  0x7f   :  { %13765 = vst [vmem:[#allocation10_spill] sm:$0xff] %v11056_v63  ;;  %v9126_v15 = vpack.c.bf16 %v13770_v10, %v13737_v1  ;;  %v13772_v40 = vld [vmem:[#allocation80_spill] sm:$0xff]  ;;  %8210 = vmatprep.mubr.f32.mxu0 %v11056_v63  ;;  %v9322_v10 = vpack.c.bf16 %v13744_v13, %v13743_v49  ;;  %v9324_v1 = vpack.c.bf16 %v13775_v25, %v13774_v16  ;;  %v13803_v55 = vld [vmem:[#allocation70_spill] sm:$0xff]  ;;  %vm6278_vm2 = vcmask 64512  }
  0x80   :  { %v9320_v19 = vpack.c.bf16 %v13742_v61, %v13772_v40  ;;  %8426 = vmatprep.mubr.f32.mxu1 %v11056_v63  ;;  %v13776_v61 = vld [vmem:[#allocation93_spill] sm:$0xff]  ;;  %v13777_v40 = vld [vmem:[#allocation98_spill] sm:$0xff]  ;;  %v9326_v17 = vpack.c.bf16 %v10892_v33, %v10844_v39  ;;  %v9102_v44 = vpack.c.bf16 %v789_v34, %v782_v26  ;;  %8211 = vmatmul.mubr.f32.gmra.mrb[2].mxu0 %v11056_v63  ;;  %v13778_v13 = vld [vmem:[#allocation92_spill] sm:$0xff] }
  0x81   :  { %v9134_v24 = vpack.c.bf16 %v13777_v40, %v13776_v61  ;;  %8427 = vmatmul.mubr.f32.gmra.mrb[2].mxu1 %v11056_v63  ;;  %8244 = vmatprep.mubr.f32.mxu0 %v13778_v13  ;;  %v9294_v49 = vpack.c.bf16 %v1693_v20, %v1686_v31  ;;  %v13779_v34 = vld [vmem:[#allocation95_spill] sm:$0xff]  ;;  %v13780_v20 = vld [vmem:[#allocation5_spill] sm:$0xff]  ;;  %v13799_v26 = vld [vmem:[#allocation58_spill] sm:$0xff]  ;;  %v13818_v63 = vand.u32 4294901760, %v13752_v35 }
  0x82   :  { %8460 = vmatprep.mubr.f32.mxu1 %v13778_v13  ;;  %v13809_v31 = vld [vmem:[#allocation85_spill] sm:$0xff]  ;;  %v13831_v35 = vld [vmem:[#allocation8_spill] sm:$0xff] }
  0x84   :  { %9103 = vmatpush3.bf16.xpose.msra.mxu0 %v9102_v44  ;;  %v13815_v44 = vld [vmem:[#allocation91_spill] sm:$0xff] }
  0x85   :  { %9105 = vmatprep.subr.bf16.mxu0 %v9104_v6  ;;  %9295 = vmatpush3.bf16.xpose.msra.mxu1 %v9294_v49  ;;  %v13798_v49 = vld [vmem:[#allocation54_spill] sm:$0xff]  ;;  %v13801_v6 = vld [vmem:[#allocation61_spill] sm:$0xff] }
  0x86   :  { %9297 = vmatprep.subr.bf16.mxu1 %v9296_v32  ;;  %v13802_v32 = vld [vmem:[#allocation66_spill] sm:$0xff] }
  0x8b   :  { %8245 = vmatmul.mubr.f32.vlgmr.msra.gmra.mrb[0].mxu0 %v13778_v13 }
  0x8c   :  { %9107 = vmatpush3.bf16.xpose.msra.mxu0 %v9106_v47  ;;  %8246 = vmatprep.mubr.f32.mxu0 %v11001_v23  ;;  %v13804_v47 = vld [vmem:[#allocation76_spill] sm:$0xff] }
  0x8d   :  { %8461 = vmatmul.mubr.f32.vlgmr.msra.gmra.mrb[0].mxu1 %v13778_v13  ;;  %9109 = vmatprep.subr.bf16.mxu0 %v9108_v41  ;;  %v13806_v41 = vld [vmem:[#allocation78_spill] sm:$0xff] }
  0x8e   :  { %9299 = vmatpush3.bf16.xpose.msra.mxu1 %v9298_v28  ;;  %8462 = vmatprep.mubr.f32.mxu1 %v11001_v23  ;;  %v13805_v28 = vld [vmem:[#allocation73_spill] sm:$0xff] }
  0x8f   :  { %9301 = vmatprep.subr.bf16.mxu1 %v9300_v45  ;;  %8247 = vmatmul.mubr.f32.gmra.mrb[2].mxu0 %v11001_v23  ;;  %v13807_v45 = vld [vmem:[#allocation82_spill] sm:$0xff] }
  0x90   :  { %8280 = vmatprep.mubr.f32.mxu0 %v13779_v34 }
  0x91   :  { %8463 = vmatmul.mubr.f32.gmra.mrb[2].mxu1 %v11001_v23 }
  0x92   :  { %8496 = vmatprep.mubr.f32.mxu1 %v13779_v34 }
  0x94   :  { %9111 = vmatpush3.bf16.xpose.msra.mxu0 %v9110_v0  ;;  %v13808_v0 = vld [vmem:[#allocation87_spill] sm:$0xff] }
  0x95   :  { %9113 = vmatprep.subr.bf16.mxu0 %v9112_v9  ;;  %v13811_v9 = vand.u32 4294901760, %v10255_v22  ;;  %v13819_v22 = vld [vmem:[#allocation17_spill] sm:$0xff] }
  0x96   :  { %9303 = vmatpush3.bf16.xpose.msra.mxu1 %v9302_v21  ;;  %v13810_v21 = vld [vmem:[#allocation88_spill] sm:$0xff] }
  0x97   :  { %9305 = vmatprep.subr.bf16.mxu1 %v9304_v51  ;;  %v13812_v51 = vand.u32 4294901760, %v13747_v43  ;;  %v13821_v43 = vld [vmem:[#allocation19_spill] sm:$0xff] }
  0x9c   :  { %9115 = vmatpush3.bf16.xpose.msra.mxu0 %v9114_v36  ;;  %v13800_v36 = vld [vmem:[#allocation63_spill] sm:$0xff] }
  0x9d   :  { %9117 = vmatprep.subr.bf16.mxu0 %v9116_v14  ;;  %v9168_v14 = vpack.c.bf16 %v13812_v51, %v13811_v9  ;;  %v13822_v9 = vand.u32 4294901760, %v13821_v43 }
  0x9e   :  { %9307 = vmatpush3.bf16.xpose.msra.mxu1 %v9306_v8  ;;  %v13781_v8 = vld [vmem:[#allocation6_spill] sm:$0xff] }
  0x9f   :  { %9309 = vmatprep.subr.bf16.mxu1 %v9308_v29  ;;  %v13782_v29 = vld [vmem:[#allocation9_spill] sm:$0xff] }
  0xa4   :  { %9119 = vmatpush3.bf16.xpose.msra.mxu0 %v9118_v52  ;;  %v13788_v52 = vld [vmem:[#allocation27_spill] sm:$0xff] }
  0xa5   :  { %9121 = vmatprep.subr.bf16.mxu0 %v9120_v2  ;;  %v13790_v2 = vld [vmem:[#allocation30_spill] sm:$0xff] }
  0xa6   :  { %9311 = vmatpush3.bf16.xpose.msra.mxu1 %v9310_v53  ;;  %v13789_v53 = vld [vmem:[#allocation24_spill] sm:$0xff] }
  0xa7   :  { %9313 = vmatprep.subr.bf16.mxu1 %v9312_v11  ;;  %v13792_v11 = vld [vmem:[#allocation39_spill] sm:$0xff] }
  0xac   :  { %9123 = vmatpush3.bf16.xpose.msra.mxu0 %v9122_v30  ;;  %v13793_v30 = vld [vmem:[#allocation36_spill] sm:$0xff] }
  0xad   :  { %9125 = vmatprep.subr.bf16.mxu0 %v9124_v62  ;;  %v13795_v62 = vld [vmem:[#allocation46_spill] sm:$0xff] }
  0xae   :  { %9315 = vmatpush3.bf16.xpose.msra.mxu1 %v9314_v4  ;;  %v13783_v4 = vld [vmem:[#allocation15_spill] sm:$0xff] }
  0xaf   :  { %9317 = vmatprep.subr.bf16.mxu1 %v9316_v37  ;;  %v13787_v37 = vld [vmem:[#allocation21_spill] sm:$0xff] }
  0xb4   :  { %9127 = vmatpush3.bf16.xpose.msra.mxu0 %v9126_v15  ;;  %v13786_v15 = vld [vmem:[#allocation96_spill] sm:$0xff] }
  0xb5   :  { %9129 = vmatprep.subr.bf16.mxu0 %v9128_v56  ;;  %v13794_v56 = vld [vmem:[#allocation42_spill] sm:$0xff] }
  0xb6   :  { %9319 = vmatpush3.bf16.xpose.msra.mxu1 %v9318_v5  ;;  %v13785_v5 = vld [vmem:[#allocation18_spill] sm:$0xff] }
  0xb7   :  { %9321 = vmatprep.subr.bf16.mxu1 %v9320_v19  ;;  %v13813_v19 = vand.u32 4294901760, %v13748_v59  ;;  %v13823_v59 = vld [vmem:[#allocation14_spill] sm:$0xff] }
  0xbc   :  { %9131 = vmatpush3.bf16.xpose.msra.mxu0 %v9130_v48  ;;  %v13784_v48 = vld [vmem:[#allocation12_spill] sm:$0xff] }
  0xbd   :  { %9133 = vmatprep.subr.bf16.mxu0 %v9132_v7  ;;  %v13814_v7 = vand.u32 4294901760, %v13749_v46  ;;  %v13825_v46 = vld [vmem:[#allocation16_spill] sm:$0xff] }
  0xbe   :  { %9323 = vmatpush3.bf16.xpose.msra.mxu1 %v9322_v10  ;;  %v13791_v10 = vld [vmem:[#allocation33_spill] sm:$0xff] }
  0xbf   :  { %9325 = vmatprep.subr.bf16.mxu1 %v9324_v1  ;;  %v13797_v1 = vld [vmem:[#allocation49_spill] sm:$0xff] }
  0xc4   :  { %9135 = vmatpush3.bf16.xpose.msra.mxu0 %v9134_v24  ;;  %v13796_v24 = vld [vmem:[#allocation51_spill] sm:$0xff] }
  0xc5   :  { %9137 = vmatprep.subr.bf16.mxu0 %v13780_v20 }
  0xc6   :  { %9327 = vmatpush3.bf16.xpose.msra.mxu1 %v9326_v17  ;;  %v9360_v17 = vpack.c.bf16 %v13814_v7, %v13813_v19  ;;  %v13826_v19 = vand.u32 4294901760, %v13825_v46  ;;  %v13842_v46 = vld [vmem:[#allocation28_spill] sm:$0xff] }
  0xc7   :  { %9329 = vmatprep.subr.bf16.mxu1 %v13781_v8 }
  0xcb   :  { %8281 = vmatmul.mubr.f32.vlgmr.msra.gmra.mrb[0].mxu0 %v13779_v34 }
  0xcc   :  { %9139 = vmatpush3.bf16.xpose.msra.mxu0 %v13782_v29  ;;  %8282 = vmatprep.mubr.f32.mxu0 %v11013_v50 }
  0xcd   :  { %8497 = vmatmul.mubr.f32.vlgmr.msra.gmra.mrb[0].mxu1 %v13779_v34  ;;  %9141 = vmatprep.subr.bf16.mxu0 %v13783_v4  ;;  %v13817_v34 = vand.u32 4294901760, %v13751_v38 }
  0xce   :  { %9331 = vmatpush3.bf16.xpose.msra.mxu1 %v13784_v48  ;;  %8498 = vmatprep.mubr.f32.mxu1 %v11013_v50 }
  0xcf   :  { %9333 = vmatprep.subr.bf16.mxu1 %v13785_v5  ;;  %8283 = vmatmul.mubr.f32.gmra.mrb[2].mxu0 %v11013_v50 }
  0xd0   :  { %8316 = vmatprep.mubr.f32.mxu0 %v13786_v15 }
  0xd1   :  { %8499 = vmatmul.mubr.f32.gmra.mrb[2].mxu1 %v11013_v50  ;;  %v13816_v50 = vld [vmem:[#allocation94_spill] sm:$0xff] }
  0xd2   :  { %8532 = vmatprep.mubr.f32.mxu1 %v13786_v15 }
  0xd4   :  { %9143 = vmatpush3.bf16.xpose.msra.mxu0 %v13787_v37 }
  0xd5   :  { %9145 = vmatprep.subr.bf16.mxu0 %v13788_v52 }
  0xd6   :  { %9335 = vmatpush3.bf16.xpose.msra.mxu1 %v13789_v53 }
  0xd7   :  { %9337 = vmatprep.subr.bf16.mxu1 %v13790_v2 }
  0xdc   :  { %9147 = vmatpush3.bf16.xpose.msra.mxu0 %v13791_v10 }
  0xdd   :  { %9149 = vmatprep.subr.bf16.mxu0 %v13792_v11 }
  0xde   :  { %9339 = vmatpush3.bf16.xpose.msra.mxu1 %v13793_v30 }
  0xdf   :  { %9341 = vmatprep.subr.bf16.mxu1 %v13794_v56 }
  0xe4   :  { %9151 = vmatpush3.bf16.xpose.msra.mxu0 %v13795_v62 }
  0xe5   :  { %9153 = vmatprep.subr.bf16.mxu0 %v13796_v24 }
  0xe6   :  { %9343 = vmatpush3.bf16.xpose.msra.mxu1 %v13797_v1 }
  0xe7   :  { %9345 = vmatprep.subr.bf16.mxu1 %v13798_v49 }
  0xec   :  { %9155 = vmatpush3.bf16.xpose.msra.mxu0 %v13799_v26 }
  0xed   :  { %9157 = vmatprep.subr.bf16.mxu0 %v13800_v36 }
  0xee   :  { %9347 = vmatpush3.bf16.xpose.msra.mxu1 %v13801_v6 }
  0xef   :  { %9349 = vmatprep.subr.bf16.mxu1 %v13802_v32 }
  0xf4   :  { %9159 = vmatpush3.bf16.xpose.msra.mxu0 %v13803_v55 }
  0xf5   :  { %9161 = vmatprep.subr.bf16.mxu0 %v13804_v47 }
  0xf6   :  { %9351 = vmatpush3.bf16.xpose.msra.mxu1 %v13805_v28 }
  0xf7   :  { %9353 = vmatprep.subr.bf16.mxu1 %v13806_v41 }
  0xfc   :  { %9163 = vmatpush3.bf16.xpose.msra.mxu0 %v13807_v45 }
  0xfd   :  { %9165 = vmatprep.subr.bf16.mxu0 %v13808_v0  ;;  %v13824_v0 = vand.u32 4294901760, %v13823_v59 }
  0xfe   :  { %9355 = vmatpush3.bf16.xpose.msra.mxu1 %v13809_v31  ;;  %v13820_v31 = vand.u32 4294901760, %v13819_v22 }
  0xff   :  { %9357 = vmatprep.subr.bf16.mxu1 %v13810_v21  ;;  %v9170_v21 = vpack.c.bf16 %v13818_v63, %v13817_v34  ;;  %v9362_v7 = vpack.c.bf16 %v13826_v19, %v13824_v0  ;;  %v13832_v63 = vld [vmem:[#allocation23_spill] sm:$0xff]  ;;  %v13834_v0 = vld [vmem:[#allocation25_spill] sm:$0xff]  ;;  %v13843_v19 = vand.u32 4294901760, %v13842_v46 }
 0x100   :  { %v9172_v51 = vpack.c.bf16 %v13822_v9, %v13820_v31  ;;  %v13833_v34 = vand.u32 4294901760, %v13832_v63  ;;  %v13835_v31 = vand.u32 4294901760, %v13834_v0  ;;  %v13848_v0 = vld [vmem:[#allocation35_spill] sm:$0xff] }
 0x101   :  { %v13854_v46 = vld [vmem:[#allocation43_spill] sm:$0xff] }
 0x102   :  { %v9174_v22 = vpack.c.bf16 %v13835_v31, %v13833_v34  ;;  %v13849_v31 = vand.u32 4294901760, %v13848_v0 }
 0x104   :  { %9167 = vmatpush3.bf16.xpose.msra.mxu0 %v13815_v44 }
 0x105   :  { %9169 = vmatprep.subr.bf16.mxu0 %v9168_v14  ;;  %v13827_v14 = vld [vmem:[#allocation20_spill] sm:$0xff] }
 0x106   :  { %9359 = vmatpush3.bf16.xpose.msra.mxu1 %v13816_v50  ;;  %v13828_v50 = vand.u32 4294901760, %v13827_v14  ;;  %v13844_v14 = vld [vmem:[#allocation32_spill] sm:$0xff] }
 0x107   :  { %9361 = vmatprep.subr.bf16.mxu1 %v9360_v17  ;;  %v13829_v17 = vld [vmem:[#allocation22_spill] sm:$0xff] }
 0x108   :  { %v13830_v44 = vand.u32 4294901760, %v13829_v17  ;;  %v13845_v17 = vand.u32 4294901760, %v13844_v14  ;;  %v13858_v14 = vld [vmem:[#allocation40_spill] sm:$0xff] }
 0x109   :  { %v13859_v45 = vand.u32 4294901760, %v13858_v14  ;;  %v13874_v14 = vld [vmem:[#allocation52_spill] sm:$0xff] }
 0x10a   :  { %v9364_v38 = vpack.c.bf16 %v13830_v44, %v13828_v50  ;;  %v13836_v50 = vld [vmem:[#allocation29_spill] sm:$0xff]  ;;  %v13838_v44 = vld [vmem:[#allocation31_spill] sm:$0xff] }
 0x10b   :  { %8317 = vmatmul.mubr.f32.vlgmr.msra.gmra.mrb[0].mxu0 %v13786_v15  ;;  %v13839_v43 = vand.u32 4294901760, %v13838_v44 }
 0x10c   :  { %9171 = vmatpush3.bf16.xpose.msra.mxu0 %v9170_v21  ;;  %8318 = vmatprep.mubr.f32.mxu0 %v13831_v35  ;;  %v13837_v21 = vand.u32 4294901760, %v13836_v50  ;;  %v13850_v50 = vld [vmem:[#allocation37_spill] sm:$0xff] }
 0x10d   :  { %8533 = vmatmul.mubr.f32.vlgmr.msra.gmra.mrb[0].mxu1 %v13786_v15  ;;  %9173 = vmatprep.subr.bf16.mxu0 %v9172_v51  ;;  %v13840_v51 = vld [vmem:[#allocation26_spill] sm:$0xff] }
 0x10e   :  { %9363 = vmatpush3.bf16.xpose.msra.mxu1 %v9362_v7  ;;  %8534 = vmatprep.mubr.f32.mxu1 %v13831_v35  ;;  %v9176_v9 = vpack.c.bf16 %v13839_v43, %v13837_v21  ;;  %v13841_v59 = vand.u32 4294901760, %v13840_v51  ;;  %v13851_v21 = vand.u32 4294901760, %v13850_v50  ;;  %v13852_v43 = vld [vmem:[#allocation41_spill] sm:$0xff] }
 0x10f   :  { %9365 = vmatprep.subr.bf16.mxu1 %v9364_v38  ;;  %8319 = vmatmul.mubr.f32.gmra.mrb[2].mxu0 %v13831_v35  ;;  %v13846_v38 = vld [vmem:[#allocation34_spill] sm:$0xff]  ;;  %v13853_v51 = vand.u32 4294901760, %v13852_v43  ;;  %v13868_v43 = vld [vmem:[#allocation53_spill] sm:$0xff] }
 0x110   :  { %8352 = vmatprep.mubr.f32.mxu0 %v13778_v13  ;;  %v9366_v7 = vpack.c.bf16 %v13843_v19, %v13841_v59  ;;  %v13847_v63 = vand.u32 4294901760, %v13846_v38  ;;  %v9178_v44 = vpack.c.bf16 %v13851_v21, %v13849_v31  ;;  %v13855_v59 = vand.u32 4294901760, %v13854_v46  ;;  %v13866_v31 = vld [vmem:[#allocation48_spill] sm:$0xff] }
 0x111   :  { %8535 = vmatmul.mubr.f32.gmra.mrb[2].mxu1 %v13831_v35  ;;  %v13856_v35 = vld [vmem:[#allocation38_spill] sm:$0xff]  ;;  %v13867_v50 = vand.u32 4294901760, %v13866_v31 }
 0x112   :  { %8568 = vmatprep.mubr.f32.mxu1 %v13778_v13  ;;  %v9368_v34 = vpack.c.bf16 %v13847_v63, %v13845_v17  ;;  %v9180_v19 = vpack.c.bf16 %v13855_v59, %v13853_v51  ;;  %v13857_v15 = vand.u32 4294901760, %v13856_v35  ;;  %v13860_v17 = vld [vmem:[#allocation44_spill] sm:$0xff]  ;;  %v13869_v51 = vand.u32 4294901760, %v13868_v43  ;;  %v13870_v35 = vld [vmem:[#allocation55_spill] sm:$0xff] }
 0x113   :  { %v13871_v46 = vand.u32 4294901760, %v13870_v35  ;;  %v13884_v43 = vld [vmem:[#allocation67_spill] sm:$0xff] }
 0x114   :  { %9175 = vmatpush3.bf16.xpose.msra.mxu0 %v9174_v22  ;;  %v9370_v38 = vpack.c.bf16 %v13859_v45, %v13857_v15  ;;  %v13861_v22 = vand.u32 4294901760, %v13860_v17  ;;  %v13872_v15 = vld [vmem:[#allocation50_spill] sm:$0xff]  ;;  %v13875_v17 = vand.u32 4294901760, %v13874_v14 }
 0x115   :  { %9177 = vmatprep.subr.bf16.mxu0 %v9176_v9  ;;  %v13862_v9 = vld [vmem:[#allocation45_spill] sm:$0xff]  ;;  %v9184_v59 = vpack.c.bf16 %v13871_v46, %v13869_v51  ;;  %v13873_v45 = vand.u32 4294901760, %v13872_v15  ;;  %v13885_v51 = vand.u32 4294901760, %v13884_v43  ;;  %v13886_v46 = vld [vmem:[#allocation62_spill] sm:$0xff] }
 0x116   :  { %9367 = vmatpush3.bf16.xpose.msra.mxu1 %v9366_v7  ;;  %v13863_v7 = vand.u32 4294901760, %v13862_v9  ;;  %v13887_v15 = vand.u32 4294901760, %v13886_v46 }
 0x117   :  { %9369 = vmatprep.subr.bf16.mxu1 %v9368_v34  ;;  %v13864_v34 = vld [vmem:[#allocation47_spill] sm:$0xff]  ;;  %v9374_v9 = vpack.c.bf16 %v13875_v17, %v13873_v45  ;;  %v13888_v45 = vld [vmem:[#allocation64_spill] sm:$0xff] }
 0x118   :  { %v9372_v63 = vpack.c.bf16 %v13863_v7, %v13861_v22  ;;  %v13865_v0 = vand.u32 4294901760, %v13864_v34  ;;  %v13876_v22 = vld [vmem:[#allocation56_spill] sm:$0xff]  ;;  %v13889_v14 = vand.u32 4294901760, %v13888_v45  ;;  %v13907_v45 = vand.u32 4294901760, %v10647_v3 }
 0x119   :  { %v13881_v34 = vld [vmem:[#allocation60_spill] sm:$0xff]  ;;  %v13917_v3 = vand.u32 4294901760, %v13776_v61  ;;  %v108_v61 = vld [vmem:[%s13155_s0 + $0x288] sm:$0xff] }
 0x11a   :  { %v9182_v21 = vpack.c.bf16 %v13867_v50, %v13865_v0  ;;  %v13882_v0 = vand.u32 4294901760, %v13881_v34  ;;  %v13883_v50 = vand.u32 4294901760, %v13766_v60  ;;  %v9378_v17 = vpack.c.bf16 %v13889_v14, %v13887_v15  ;;  %v13894_v60 = vld [vmem:[#allocation72_spill] sm:$0xff] }
 0x11c   :  { %9179 = vmatpush3.bf16.xpose.msra.mxu0 %v9178_v44  ;;  %v13877_v44 = vand.u32 4294901760, %v13876_v22  ;;  %v9188_v35 = vpack.c.bf16 %v13885_v51, %v13883_v50  ;;  %v13903_v51 = vld [vmem:[#allocation80_spill] sm:$0xff] }
 0x11d   :  { %9181 = vmatprep.subr.bf16.mxu0 %v9180_v19  ;;  %v13878_v19 = vld [vmem:[#allocation57_spill] sm:$0xff] }
 0x11e   :  { %9371 = vmatpush3.bf16.xpose.msra.mxu1 %v9370_v38  ;;  %v13879_v38 = vand.u32 4294901760, %v13878_v19 }
 0x11f   :  { %9373 = vmatprep.subr.bf16.mxu1 %v9372_v63  ;;  %v13880_v63 = vand.u32 4294901760, %v13761_v54  ;;  %v13892_v54 = vld [vmem:[#allocation71_spill] sm:$0xff] }
 0x120   :  { %v9376_v7 = vpack.c.bf16 %v13879_v38, %v13877_v44  ;;  %v13893_v22 = vand.u32 4294901760, %v13892_v54  ;;  %v13895_v44 = vand.u32 4294901760, %v13894_v60  ;;  %v13896_v38 = vand.u32 4294901760, %v13741_v42 }
 0x121   :  { %v9186_v31 = vpack.c.bf16 %v13882_v0, %v13880_v63  ;;  %v13899_v0 = vld [vmem:[#allocation74_spill] sm:$0xff]  ;;  %v13908_v42 = vand.u32 4294901760, %v13773_v18  ;;  %v13919_v18 = vand.u32 4294901760, %v10844_v39  ;;  %v10173_v39 = vmov 0  }
 0x122   :  { %v9190_v19 = vpack.c.bf16 %v13895_v44, %v13893_v22  ;;  %v13900_v50 = vand.u32 4294901760, %v13899_v0  ;;  %v13913_v22 = vld [vmem:[#allocation86_spill] sm:$0xff]  ;;  %10099 = vset.pattern.permute.xlu0 %v10173_v39  ;;  %10100 = vset.pattern.permute.xlu1 %v10173_v39 }
 0x123   :  { %v9194_v14 = vpack.c.bf16 %v13908_v42, %v13907_v45  ;;  %v13914_v60 = vand.u32 4294901760, %v13913_v22 }
 0x124   :  { %9183 = vmatpush3.bf16.xpose.msra.mxu0 %v9182_v21  ;;  %v13890_v21 = vand.u32 4294901760, %v13768_v58  ;;  %v13901_v58 = vld [vmem:[#allocation75_spill] sm:$0xff] }
 0x125   :  { %9185 = vmatprep.subr.bf16.mxu0 %v9184_v59  ;;  %v13891_v59 = vand.u32 4294901760, %v13769_v57  ;;  %v13902_v43 = vand.u32 4294901760, %v13901_v58 }
 0x126   :  { %9375 = vmatpush3.bf16.xpose.msra.mxu1 %v9374_v9 }
 0x127   :  { %9377 = vmatprep.subr.bf16.mxu1 %v9376_v7  ;;  %v9380_v9 = vpack.c.bf16 %v13891_v59, %v13890_v21  ;;  %v13897_v7 = vld [vmem:[#allocation79_spill] sm:$0xff]  ;;  %v9382_v57 = vpack.c.bf16 %v13902_v43, %v13900_v50  ;;  %v13910_v21 = vand.u32 4294901760, %v10676_v12 }
 0x128   :  { %v13898_v63 = vand.u32 4294901760, %v13897_v7 }
 0x12a   :  { %v9192_v34 = vpack.c.bf16 %v13898_v63, %v13896_v38  ;;  %v13916_v38 = vand.u32 4294901760, %v13775_v25  ;;  %v13920_v63 = vand.u32 4294901760, %v10892_v33  ;;  %v157_v25 = vld [vmem:[%s13157_s2] sm:$0xff]  ;;  %v158_v33 = vld [vmem:[%s13157_s2 + $0x8] sm:$0xff] }
 0x12b   :  { %161 = vperm.xlu0 %10099, %v157_v25  }
 0x12c   :  { %9187 = vmatpush3.bf16.xpose.msra.mxu0 %v9186_v31  ;;  %v13904_v31 = vand.u32 4294901760, %v13903_v51  ;;  %v13927_v51 = vld [vmem:[#allocation91_spill] sm:$0xff] }
 0x12d   :  { %9189 = vmatprep.subr.bf16.mxu0 %v9188_v35  ;;  %v13905_v35 = vld [vmem:[#allocation81_spill] sm:$0xff] }
 0x12e   :  { %9379 = vmatpush3.bf16.xpose.msra.mxu1 %v9378_v17  ;;  %v13906_v46 = vand.u32 4294901760, %v13905_v35  ;;  %v13909_v17 = vand.u32 4294901760, %v10674_v27  ;;  %v13918_v27 = vand.u32 4294901760, %v13777_v40  ;;  %v139_v40 = vld [vmem:[%s13155_s0 + $0x380] sm:$0xff] }
 0x12f   :  { %9381 = vmatprep.subr.bf16.mxu1 %v9380_v9  ;;  %v13911_v9 = vld [vmem:[#allocation84_spill] sm:$0xff]  ;;  %166 = vperm.xlu0 %10099, %v158_v33  }
 0x130   :  { %v9384_v15 = vpack.c.bf16 %v13906_v46, %v13904_v31  ;;  %v9196_v59 = vpack.c.bf16 %v13910_v21, %v13909_v17  ;;  %v13912_v54 = vand.u32 4294901760, %v13911_v9  ;;  %v9198_v12 = vpack.c.bf16 %v13918_v27, %v13917_v3  ;;  %v94_v9 = vld [vmem:[%s13155_s0 + $0x218] sm:$0xff] }
 0x131   :  { %v126_v3 = vld [vmem:[%s13155_s0 + $0x318] sm:$0xff] }
 0x132   :  { %v9386_v44 = vpack.c.bf16 %v13914_v60, %v13912_v54 }
 0x134   :  { %9191 = vmatpush3.bf16.xpose.msra.mxu0 %v9190_v19  ;;  %v13915_v19 = vand.u32 4294901760, %v13774_v16  ;;  %v107_v16 = vld [vmem:[%s13155_s0 + $0x280] sm:$0xff] }
 0x135   :  { %9193 = vmatprep.subr.bf16.mxu0 %v9192_v34  ;;  %v9390_v34 = vpack.c.bf16 %v13920_v63, %v13919_v18  ;;  %v11440_v18 = vsel %vm169_vm0, %v94_v9, 0  ;;  %v143_v63 = vld [vmem:[%s13155_s0 + $0x3a0] sm:$0xff] }
 0x136   :  { %9383 = vmatpush3.bf16.xpose.msra.mxu1 %v9382_v57  ;;  %v9388_v7 = vpack.c.bf16 %v13916_v38, %v13915_v19  ;;  %v111_v19 = vld [vmem:[%s13155_s0 + $0x2a0] sm:$0xff]  ;;  %v112_v38 = vld [vmem:[%s13155_s0 + $0x2a8] sm:$0xff] }
 0x137   :  { %9385 = vmatprep.subr.bf16.mxu1 %v9384_v15  ;;  %v11458_v33 = vsel %vm169_vm0, %v111_v19, 0 }
 0x13c   :  { %9195 = vmatpush3.bf16.xpose.msra.mxu0 %v9194_v14  ;;  %v13929_v14 = vld [vmem:[#allocation94_spill] sm:$0xff] }
 0x13d   :  { %9197 = vmatprep.subr.bf16.mxu0 %v9196_v59  ;;  %v93_v59 = vld [vmem:[%s13155_s0 + $0x210] sm:$0xff] }
 0x13e   :  { %9387 = vmatpush3.bf16.xpose.msra.mxu1 %v9386_v44  ;;  %v125_v44 = vld [vmem:[%s13155_s0 + $0x310] sm:$0xff] }
 0x13f   :  { %9389 = vmatprep.subr.bf16.mxu1 %v9388_v7  ;;  %v11455_v39 = vsel %vm169_vm0, %v125_v44, 0  ;;  %v146_v44 = vld [vmem:[%s13155_s0 + $0x3b8] sm:$0xff] }
 0x140   :  { %v534_v54 = vsel %vm169_vm0, %v146_v44, 0 }
 0x144   :  { %9199 = vmatpush3.bf16.xpose.msra.mxu0 %v9198_v12  ;;  %v11437_v12 = vsel %vm169_vm0, %v93_v59, 0  ;;  %v13936_v59 = vld [vmem:[#allocation97_spill] sm:$0xff] }
 0x145   :  { %9201 = vmatprep.subr.bf16.mxu0 %v13780_v20  ;;  %v140_v20 = vld [vmem:[%s13155_s0 + $0x388] sm:$0xff] }
 0x146   :  { %9391 = vmatpush3.bf16.xpose.msra.mxu1 %v9390_v34  ;;  %v144_v34 = vld [vmem:[%s13155_s0 + $0x3a8] sm:$0xff] }
 0x147   :  { %9393 = vmatprep.subr.bf16.mxu1 %v13781_v8  ;;  %v11325_v8 = vsel %vm169_vm0, %v107_v16, 0  ;;  %v11461_v16 = vsel %vm169_vm0, %v112_v38, 0 }
 0x14b   :  { %8353 = vmatmul.mubr.f32.vlgmr.msra.gmra.mrb[0].mxu0 %v13778_v13 }
 0x14c   :  { %9203 = vmatpush3.bf16.xpose.msra.mxu0 %v13782_v29  ;;  %8354 = vmatprep.mubr.f32.mxu0 %v11001_v23  ;;  %v11328_v29 = vsel %vm169_vm0, %v108_v61, 0 }
 0x14d   :  { %8569 = vmatmul.mubr.f32.vlgmr.msra.gmra.mrb[0].mxu1 %v13778_v13  ;;  %9205 = vmatprep.subr.bf16.mxu0 %v13783_v4  ;;  %v13921_v4 = vld [vmem:[#allocation82_spill] sm:$0xff] }
 0x14e   :  { %9395 = vmatpush3.bf16.xpose.msra.mxu1 %v13784_v48  ;;  %8570 = vmatprep.mubr.f32.mxu1 %v11001_v23  ;;  %v513_v48 = vsel %vm169_vm0, %v139_v40, 0 }
 0x14f   :  { %9397 = vmatprep.subr.bf16.mxu1 %v13785_v5  ;;  %8355 = vmatmul.mubr.f32.gmra.mrb[2].mxu0 %v11001_v23  ;;  %v516_v5 = vsel %vm169_vm0, %v140_v20, 0 }
 0x150   :  { %8388 = vmatprep.mubr.f32.mxu0 %v13778_v13 }
 0x151   :  { %8571 = vmatmul.mubr.f32.gmra.mrb[2].mxu1 %v11001_v23 }
 0x152   :  { %8604 = vmatprep.mubr.f32.mxu1 %v13778_v13 }
 0x154   :  { %9207 = vmatpush3.bf16.xpose.msra.mxu0 %v13787_v37  ;;  %v13922_v37 = vld [vmem:[#allocation87_spill] sm:$0xff] }
 0x155   :  { %9209 = vmatprep.subr.bf16.mxu0 %v13788_v52  ;;  %v13420_v52 = vand.u32 4294901760, %v11325_v8 }
 0x156   :  { %9399 = vmatpush3.bf16.xpose.msra.mxu1 %v13789_v53  ;;  %v13417_v53 = vand.u32 4294901760, %v11328_v29 }
 0x157   :  { %9401 = vmatprep.subr.bf16.mxu1 %v13790_v2  ;;  %v91_v2 = vld [vmem:[%s13155_s0 + $0x200] sm:$0xff] }
 0x15c   :  { %9211 = vmatpush3.bf16.xpose.msra.mxu0 %v13791_v10  ;;  %v92_v10 = vld [vmem:[%s13155_s0 + $0x208] sm:$0xff] }
 0x15d   :  { %9213 = vmatprep.subr.bf16.mxu0 %v13792_v11  ;;  %v13923_v11 = vld [vmem:[#allocation85_spill] sm:$0xff] }
 0x15e   :  { %9403 = vmatpush3.bf16.xpose.msra.mxu1 %v13793_v30  ;;  %v13924_v30 = vld [vmem:[#allocation88_spill] sm:$0xff] }
 0x15f   :  { %9405 = vmatprep.subr.bf16.mxu1 %v13794_v56  ;;  %v3321_v56 = vand.u32 4294901760, %v513_v48 }
 0x161   :  { %v11391_v31 = vsub.f32 %v513_v48, %v3321_v56  ;;  %v13406_v48 = vand.u32 4294901760, %v11437_v12 }
 0x163   :  { %13928 = vst [vmem:[#allocation59_spill] sm:$0xff] %v11391_v31 }
 0x164   :  { %9215 = vmatpush3.bf16.xpose.msra.mxu0 %v13795_v62  ;;  %v3324_v62 = vand.u32 4294901760, %v516_v5 }
 0x165   :  { %9217 = vmatprep.subr.bf16.mxu0 %v13796_v24  ;;  %v123_v24 = vld [vmem:[%s13155_s0 + $0x300] sm:$0xff] }
 0x166   :  { %9407 = vmatpush3.bf16.xpose.msra.mxu1 %v13797_v1  ;;  %v109_v1 = vld [vmem:[%s13155_s0 + $0x290] sm:$0xff]  ;;  %v11383_v50 = vpack.c.bf16 %v3324_v62, %v3321_v56  ;;  %v11393_v35 = vsub.f32 %v516_v5, %v3324_v62  ;;  %v13405_v5 = vand.u32 4294901760, %v11440_v18  ;;  %v13404_v56 = vand.u32 4294901760, %v11455_v39 }
 0x167   :  { %9409 = vmatprep.subr.bf16.mxu1 %v13798_v49  ;;  %v110_v49 = vld [vmem:[%s13155_s0 + $0x298] sm:$0xff] }
 0x168   :  { %v11381_v0 = vsel %vm169_vm0, %v110_v49, 0  ;;  %13926 = vst [vmem:[#allocation13_spill] sm:$0xff] %v11383_v50 }
 0x169   :  { %v13407_v42 = vand.u32 4294901760, %v11381_v0 }
 0x16c   :  { %9219 = vmatpush3.bf16.xpose.msra.mxu0 %v13799_v26  ;;  %v11354_v26 = vsel %vm169_vm0, %v91_v2, 0  ;;  %v528_v2 = vsel %vm169_vm0, %v144_v34, 0 }
 0x16d   :  { %9221 = vmatprep.subr.bf16.mxu0 %v13800_v36  ;;  %v11357_v36 = vsel %vm169_vm0, %v92_v10, 0  ;;  %v13416_v58 = vand.u32 4294901760, %v11354_v26  ;;  %v13402_v10 = vand.u32 4294901760, %v11458_v33 }
 0x16e   :  { %9411 = vmatpush3.bf16.xpose.msra.mxu1 %v13801_v6  ;;  %v124_v6 = vld [vmem:[%s13155_s0 + $0x308] sm:$0xff]  ;;  %v13415_v43 = vand.u32 4294901760, %v11357_v36 }
 0x16f   :  { %9413 = vmatprep.subr.bf16.mxu1 %v13802_v32  ;;  %v11366_v32 = vpack.c.bf16 %v13417_v53, %v13420_v52  ;;  %v11388_v57 = vsel %vm169_vm0, %v124_v6, 0  ;;  %v3336_v6 = vand.u32 4294901760, %v528_v2 }
 0x170   :  { %v13411_v21 = vand.u32 4294901760, %v11388_v57  ;;  %v11425_v7 = vpack.c.bf16 %v13415_v43, %v13416_v58 }
 0x171   :  { %13925 = vst [vmem:[#allocation11_spill] sm:$0xff] %v11366_v32 }
 0x172   :  { %13930 = vst [vmem:[#allocation65_spill] sm:$0xff] %v11425_v7 }
 0x174   :  { %9223 = vmatpush3.bf16.xpose.msra.mxu0 %v13803_v55  ;;  %v141_v55 = vld [vmem:[%s13155_s0 + $0x390] sm:$0xff] }
 0x175   :  { %9225 = vmatprep.subr.bf16.mxu0 %v13804_v47  ;;  %v142_v47 = vld [vmem:[%s13155_s0 + $0x398] sm:$0xff]  ;;  %v519_v46 = vsel %vm169_vm0, %v141_v55, 0  ;;  %v113_v55 = vld [vmem:[%s13155_s0 + $0x2b0] sm:$0xff] }
 0x176   :  { %9415 = vmatpush3.bf16.xpose.msra.mxu1 %v13805_v28  ;;  %v11375_v28 = vsel %vm169_vm0, %v123_v24, 0  ;;  %v522_v15 = vsel %vm169_vm0, %v142_v47, 0  ;;  %v3327_v22 = vand.u32 4294901760, %v519_v46  ;;  %v96_v24 = vld [vmem:[%s13155_s0 + $0x228] sm:$0xff]  ;;  %v114_v47 = vld [vmem:[%s13155_s0 + $0x2b8] sm:$0xff] }
 0x177   :  { %9417 = vmatprep.subr.bf16.mxu1 %v13806_v41  ;;  %v11378_v41 = vsel %vm169_vm0, %v109_v1, 0  ;;  %v13414_v17 = vand.u32 4294901760, %v11375_v28  ;;  %v3330_v60 = vand.u32 4294901760, %v522_v15 }
 0x178   :  { %v13408_v45 = vand.u32 4294901760, %v11378_v41  ;;  %v11466_v40 = vsub.f32 %v519_v46, %v3327_v22 }
 0x179   :  { %v11452_v25 = vpack.c.bf16 %v13411_v21, %v13414_v17  ;;  %v11464_v61 = vpack.c.bf16 %v3330_v60, %v3327_v22  ;;  %v11468_v20 = vsub.f32 %v522_v15, %v3330_v60  ;;  %v127_v15 = vld [vmem:[%s13155_s0 + $0x320] sm:$0xff]  ;;  %v11527_v22 = vsel %vm169_vm0, %v96_v24, 0  ;;  %v145_v60 = vld [vmem:[%s13155_s0 + $0x3b0] sm:$0xff] }
 0x17a   :  { %v11434_v27 = vpack.c.bf16 %v13407_v42, %v13408_v45  ;;  %13934 = vst [vmem:[#allocation89_spill] sm:$0xff] %v11466_v40  ;;  %v11554_v24 = vsel %vm169_vm0, %v127_v15, 0 }
 0x17b   :  { %13932 = vst [vmem:[#allocation69_spill] sm:$0xff] %v11452_v25  ;;  %13933 = vst [vmem:[#allocation83_spill] sm:$0xff] %v11464_v61 }
 0x17c   :  { %9227 = vmatpush3.bf16.xpose.msra.mxu0 %v13921_v4  ;;  %13931 = vst [vmem:[#allocation68_spill] sm:$0xff] %v11434_v27  ;;  %v11471_v4 = vsel %vm169_vm0, %v126_v3, 0  ;;  %v11544_v3 = vsel %vm169_vm0, %v113_v55, 0  ;;  %v13409_v55 = vand.u32 4294901760, %v11527_v22 }
 0x17d   :  { %9229 = vmatprep.subr.bf16.mxu0 %v13922_v37  ;;  %v525_v37 = vsel %vm169_vm0, %v143_v63, 0  ;;  %v13403_v62 = vand.u32 4294901760, %v11471_v4  ;;  %v11547_v63 = vsel %vm169_vm0, %v114_v47, 0  ;;  %v531_v47 = vsel %vm169_vm0, %v145_v60, 0  ;;  %v98_v60 = vld [vmem:[%s13155_s0 + $0x238] sm:$0xff] }
 0x17e   :  { %9419 = vmatpush3.bf16.xpose.msra.mxu1 %v13923_v11  ;;  %v13401_v11 = vand.u32 4294901760, %v11461_v16  ;;  %v3333_v49 = vand.u32 4294901760, %v525_v37  ;;  %v13413_v15 = vand.u32 4294901760, %v11544_v3  ;;  %v11608_v45 = vsel %vm169_vm0, %v98_v60, 0 }
 0x17f   :  { %9421 = vmatprep.subr.bf16.mxu1 %v13924_v30  ;;  %v95_v30 = vld [vmem:[%s13155_s0 + $0x220] sm:$0xff]  ;;  %v11539_v19 = vpack.c.bf16 %v13403_v62, %v13404_v56 }
 0x180   :  { %v11510_v46 = vsel %vm169_vm0, %v95_v30, 0  ;;  %v11524_v9 = vpack.c.bf16 %v13401_v11, %v13402_v10  ;;  %v11541_v38 = vsub.f32 %v525_v37, %v3333_v49  ;;  %v11550_v34 = vpack.c.bf16 %v3336_v6, %v3333_v49  ;;  %v97_v49 = vld [vmem:[%s13155_s0 + $0x230] sm:$0xff]  ;;  %v115_v56 = vld [vmem:[%s13155_s0 + $0x2c0] sm:$0xff] }
 0x181   :  { %13938 = vst [vmem:[#allocation98_spill] sm:$0xff] %v11539_v19  ;;  %v13410_v30 = vand.u32 4294901760, %v11510_v46  ;;  %v11560_v37 = vsub.f32 %v528_v2, %v3336_v6  ;;  %v13419_v2 = vand.u32 4294901760, %v11554_v24  ;;  %v3339_v11 = vand.u32 4294901760, %v531_v47 }
 0x182   :  { %13937 = vst [vmem:[#allocation93_spill] sm:$0xff] %v11524_v9  ;;  %13939 = vst [vmem:[#allocation5_spill] sm:$0xff] %v11541_v38  ;;  %v3342_v10 = vand.u32 4294901760, %v534_v54  ;;  %v11581_v62 = vsel %vm169_vm0, %v97_v49, 0  ;;  %v130_v49 = vld [vmem:[%s13155_s0 + $0x338] sm:$0xff] }
 0x183   :  { %13940 = vst [vmem:[#allocation6_spill] sm:$0xff] %v11550_v34  ;;  %13941 = vst [vmem:[#allocation9_spill] sm:$0xff] %v11560_v37  ;;  %v11593_v44 = vpack.c.bf16 %v13409_v55, %v13410_v30  ;;  %v147_v55 = vld [vmem:[%s13155_s0 + $0x3c0] sm:$0xff]  ;;  %v148_v30 = vld [vmem:[%s13155_s0 + $0x3c8] sm:$0xff]  ;;  %v11631_v43 = vsub.f32 %v531_v47, %v3339_v11  ;;  %v11637_v53 = vsel %vm169_vm0, %v130_v49, 0 }
 0x184   :  { %9231 = vmatpush3.bf16.xpose.msra.mxu0 %v13927_v51  ;;  %v11507_v51 = vpack.c.bf16 %v13405_v5, %v13406_v48  ;;  %v116_v5 = vld [vmem:[%s13155_s0 + $0x2c8] sm:$0xff]  ;;  %v129_v48 = vld [vmem:[%s13155_s0 + $0x330] sm:$0xff]  ;;  %v11629_v17 = vpack.c.bf16 %v3342_v10, %v3339_v11  ;;  %v99_v11 = vld [vmem:[%s13155_s0 + $0x240] sm:$0xff] }
 0x185   :  { %9425 = vmatprep.subr.bf16.mxu0 %v11366_v32  ;;  %13942 = vst [vmem:[#allocation15_spill] sm:$0xff] %v11593_v44  ;;  %v11627_v60 = vsel %vm169_vm0, %v116_v5, 0  ;;  %13946 = vst [vmem:[#allocation27_spill] sm:$0xff] %v11631_v43  ;;  %v11634_v58 = vsel %vm169_vm0, %v129_v48, 0  ;;  %v540_v5 = vsel %vm169_vm0, %v148_v30, 0  ;;  %v100_v30 = vld [vmem:[%s13155_s0 + $0x248] sm:$0xff] }
 0x186   :  { %9423 = vmatpush3.bf16.xpose.msra.mxu1 %v13929_v14  ;;  %13935 = vst [vmem:[#allocation90_spill] sm:$0xff] %v11507_v51  ;;  %v128_v14 = vld [vmem:[%s13155_s0 + $0x328] sm:$0xff]  ;;  %13945 = vst [vmem:[#allocation21_spill] sm:$0xff] %v11629_v17  ;;  %v3348_v52 = vand.u32 4294901760, %v540_v5  ;;  %v11661_v48 = vsel %vm169_vm0, %v99_v11, 0  ;;  %v131_v47 = vld [vmem:[%s13155_s0 + $0x340] sm:$0xff] }
 0x187   :  { %9617 = vmatprep.subr.bf16.mxu1 %v11383_v50  ;;  %v11557_v1 = vsel %vm169_vm0, %v128_v14, 0  ;;  %v13412_v14 = vand.u32 4294901760, %v11547_v63  ;;  %v132_v11 = vld [vmem:[%s13155_s0 + $0x348] sm:$0xff]  ;;  %v14021_v43 = vand.u32 4294901760, %v11581_v62 }
 0x188   :  { %v13418_v6 = vand.u32 4294901760, %v11557_v1 }
 0x189   :  { %v11605_v42 = vpack.c.bf16 %v13412_v14, %v13413_v15  ;;  %v13430_v14 = vand.u32 4294901760, %v11581_v62  ;;  %v11624_v15 = vsel %vm169_vm0, %v115_v56, 0  ;;  %v13429_v56 = vand.u32 4294901760, %v11608_v45 }
 0x18a   :  { %v11620_v21 = vpack.c.bf16 %v13418_v6, %v13419_v2  ;;  %v11640_v6 = vsub.f32 %v534_v54, %v3342_v10  ;;  %v537_v2 = vsel %vm169_vm0, %v147_v55, 0  ;;  %v117_v54 = vld [vmem:[%s13155_s0 + $0x2d0] sm:$0xff]  ;;  %v118_v10 = vld [vmem:[%s13155_s0 + $0x2d8] sm:$0xff] }
 0x18b   :  { %8389 = vmatmul.mubr.f32.vlgmr.msra.gmra.mrb[0].mxu0 %v13778_v13  ;;  %13943 = vst [vmem:[#allocation12_spill] sm:$0xff] %v11605_v42  ;;  %v3345_v49 = vand.u32 4294901760, %v537_v2  ;;  %v11673_v55 = vpack.c.bf16 %v13429_v56, %v13430_v14  ;;  %v149_v56 = vld [vmem:[%s13155_s0 + $0x3d0] sm:$0xff]  ;;  %v150_v14 = vld [vmem:[%s13155_s0 + $0x3d8] sm:$0xff] }
 0x18c   :  { %9427 = vmatpush3.bf16.xpose.msra.mxu0 %v11425_v7  ;;  %8390 = vmatprep.mubr.f32.mxu0 %v11001_v23  ;;  %13944 = vst [vmem:[#allocation18_spill] sm:$0xff] %v11620_v21  ;;  %13947 = vst [vmem:[#allocation24_spill] sm:$0xff] %v11640_v6  ;;  %v151_v7 = vld [vmem:[%s13155_s0 + $0x3e0] sm:$0xff]  ;;  %v153_v6 = vld [vmem:[%s13155_s0 + $0x3f0] sm:$0xff] }
 0x18d   :  { %8605 = vmatmul.mubr.f32.vlgmr.msra.gmra.mrb[0].mxu1 %v13778_v13  ;;  %9429 = vmatprep.subr.bf16.mxu0 %v11434_v27  ;;  %13948 = vst [vmem:[#allocation30_spill] sm:$0xff] %v11673_v55  ;;  %v11717_v27 = vsel %vm169_vm0, %v132_v11, 0 }
 0x18e   :  { %9619 = vmatpush3.bf16.xpose.msra.mxu1 %v11452_v25  ;;  %8606 = vmatprep.mubr.f32.mxu1 %v11001_v23  ;;  %v11714_v25 = vsel %vm169_vm0, %v131_v47, 0  ;;  %v119_v47 = vld [vmem:[%s13155_s0 + $0x2e0] sm:$0xff] }
 0x18f   :  { %8391 = vmatmul.mubr.f32.gmra.mrb[2].mxu0 %v11001_v23  ;;  %9621 = vmatprep.subr.bf16.mxu1 %v11464_v61  ;;  %v11711_v61 = vsub.f32 %v537_v2, %v3345_v49 }
 0x190   :  { %8640 = vmatprep.mubr.f32.mxu0 %v13936_v59 }
 0x191   :  { %8607 = vmatmul.mubr.f32.gmra.mrb[2].mxu1 %v11001_v23  ;;  %13956 = vst [vmem:[#allocation42_spill] sm:$0xff] %v11711_v61  ;;  %v13985_v23 = vand.u32 4294901760, %v11437_v12 }
 0x192   :  { %8856 = vmatprep.mubr.f32.mxu1 %v13936_v59 }
 0x194   :  { %9431 = vmatpush3.bf16.xpose.msra.mxu0 %v11507_v51  ;;  %v11709_v51 = vpack.c.bf16 %v3348_v52, %v3345_v49  ;;  %v13958_v49 = vand.u32 4294901760, %v11325_v8 }
 0x195   :  { %9433 = vmatprep.subr.bf16.mxu0 %v11524_v9 }
 0x196   :  { %9623 = vmatpush3.bf16.xpose.msra.mxu1 %v11539_v19  ;;  %v13953_v19 = vand.u32 4294901760, %v11637_v53  ;;  %13955 = vst [vmem:[#allocation36_spill] sm:$0xff] %v11709_v51  ;;  %v11735_v11 = vsub.f32 %v11325_v8, %v13958_v49  ;;  %v13960_v8 = vand.u32 4294901760, %v11328_v29 }
 0x197   :  { %9625 = vmatprep.subr.bf16.mxu1 %v11550_v34  ;;  %v13952_v34 = vand.u32 4294901760, %v11634_v58 }
 0x198   :  { %13959 = vst [vmem:[#allocation51_spill] sm:$0xff] %v11735_v11  ;;  %v11751_v49 = vsub.f32 %v11328_v29, %v13960_v8  ;;  %v120_v29 = vld [vmem:[%s13155_s0 + $0x2e8] sm:$0xff]  ;;  %v13963_v8 = vand.u32 4294901760, %v11357_v36 }
 0x199   :  { %v11700_v9 = vpack.c.bf16 %v13953_v19, %v13952_v34  ;;  %v11720_v19 = vsub.f32 %v540_v5, %v3348_v52  ;;  %v102_v5 = vld [vmem:[%s13155_s0 + $0x258] sm:$0xff]  ;;  %v13962_v52 = vand.u32 4294901760, %v11354_v26  ;;  %v13967_v34 = vand.u32 4294901760, %v11388_v57 }
 0x19a   :  { %13961 = vst [vmem:[#allocation49_spill] sm:$0xff] %v11751_v49  ;;  %v11832_v32 = vsel %vm169_vm0, %v120_v29, 0  ;;  %v13993_v29 = vand.u32 4294901760, %v11471_v4 }
 0x19b   :  { %13954 = vst [vmem:[#allocation39_spill] sm:$0xff] %v11700_v9  ;;  %13957 = vst [vmem:[#allocation46_spill] sm:$0xff] %v11720_v19  ;;  %v11780_v2 = vsub.f32 %v11388_v57, %v13967_v34  ;;  %v11837_v19 = vsub.f32 %v11437_v12, %v13985_v23  ;;  %v11855_v23 = vsel %vm169_vm0, %v151_v7, 0 }
 0x19c   :  { %9435 = vmatpush3.bf16.xpose.msra.mxu0 %v11593_v44  ;;  %v11688_v44 = vsel %vm169_vm0, %v100_v30, 0  ;;  %v11707_v30 = vsel %vm169_vm0, %v118_v10, 0  ;;  %v11727_v10 = vsel %vm169_vm0, %v150_v14, 0  ;;  %v101_v14 = vld [vmem:[%s13155_s0 + $0x250] sm:$0xff]  ;;  %13984 = vst [vmem:[#allocation19_spill] sm:$0xff] %v11832_v32 }
 0x19d   :  { %9437 = vmatprep.subr.bf16.mxu0 %v11605_v42  ;;  %13968 = vst [vmem:[#allocation63_spill] sm:$0xff] %v11780_v2  ;;  %v13975_v34 = vand.u32 4294901760, %v11707_v30 }
 0x19e   :  { %9627 = vmatpush3.bf16.xpose.msra.mxu1 %v11620_v21  ;;  %v13950_v21 = vand.u32 4294901760, %v11627_v60 }
 0x19f   :  { %9629 = vmatprep.subr.bf16.mxu1 %v11629_v17  ;;  %v13949_v17 = vand.u32 4294901760, %v11624_v15 }
 0x1a1   :  { %v11685_v42 = vpack.c.bf16 %v13950_v21, %v13949_v17  ;;  %v11704_v21 = vsel %vm169_vm0, %v117_v54, 0  ;;  %v11724_v54 = vsel %vm169_vm0, %v149_v56, 0  ;;  %v11756_v56 = vsub.f32 %v11354_v26, %v13962_v52 }
 0x1a2   :  { %v11770_v17 = vsub.f32 %v11357_v36, %v13963_v8  ;;  %v13965_v26 = vand.u32 4294901760, %v11375_v28  ;;  %v133_v36 = vld [vmem:[%s13155_s0 + $0x350] sm:$0xff]  ;;  %v13972_v8 = vand.u32 4294901760, %v11378_v41  ;;  %v13974_v57 = vand.u32 4294901760, %v11704_v21 }
 0x1a3   :  { %13951 = vst [vmem:[#allocation33_spill] sm:$0xff] %v11685_v42 }
 0x1a4   :  { %9439 = vmatpush3.bf16.xpose.msra.mxu0 %v11673_v55  ;;  %13964 = vst [vmem:[#allocation54_spill] sm:$0xff] %v11770_v17  ;;  %v11775_v52 = vsub.f32 %v11375_v28, %v13965_v26  ;;  %v134_v28 = vld [vmem:[%s13155_s0 + $0x358] sm:$0xff]  ;;  %v11797_v26 = vsub.f32 %v11378_v41, %v13972_v8  ;;  %v11803_v55 = vpack.c.bf16 %v13975_v34, %v13974_v57  ;;  %v152_v41 = vld [vmem:[%s13155_s0 + $0x3e8] sm:$0xff]  ;;  %v13978_v8 = vand.u32 4294901760, %v11381_v0 }
 0x1a5   :  { %9441 = vmatprep.subr.bf16.mxu0 %v11685_v42  ;;  %v13980_v57 = vand.u32 4294901760, %v11714_v25  ;;  %v11858_v12 = vsel %vm169_vm0, %v152_v41, 0  ;;  %v11876_v41 = vsub.f32 %v11471_v4, %v13993_v29  ;;  %v104_v4 = vld [vmem:[%s13155_s0 + $0x268] sm:$0xff]  ;;  %v13995_v29 = vand.u32 4294901760, %v11461_v16 }
 0x1a6   :  { %9631 = vmatpush3.bf16.xpose.msra.mxu1 %v11700_v9  ;;  %13966 = vst [vmem:[#allocation58_spill] sm:$0xff] %v11775_v52  ;;  %v13970_v9 = vand.u32 4294901760, %v11688_v44  ;;  %13973 = vst [vmem:[#allocation66_spill] sm:$0xff] %v11797_v26  ;;  %v11820_v50 = vsub.f32 %v11381_v0, %v13978_v8  ;;  %v13986_v0 = vand.u32 4294901760, %v11724_v54  ;;  %v13987_v8 = vand.u32 4294901760, %v11727_v10 }
 0x1a7   :  { %9633 = vmatprep.subr.bf16.mxu1 %v11709_v51  ;;  %v13969_v51 = vand.u32 4294901760, %v11661_v48  ;;  %13976 = vst [vmem:[#allocation70_spill] sm:$0xff] %v11803_v55  ;;  %13990 = vst [vmem:[#allocation20_spill] sm:$0xff] %v11858_v12  ;;  %v11895_v7 = vsub.f32 %v11461_v16, %v13995_v29  ;;  %v122_v16 = vld [vmem:[%s13155_s0 + $0x2f8] sm:$0xff]  ;;  %v13998_v29 = vand.u32 4294901760, %v11527_v22 }
 0x1a8   :  { %13979 = vst [vmem:[#allocation73_spill] sm:$0xff] %v11820_v50  ;;  %v11843_v61 = vpack.c.bf16 %v13987_v8, %v13986_v0  ;;  %v13991_v0 = vand.u32 4294901760, %v11440_v18 }
 0x1a9   :  { %v11786_v42 = vpack.c.bf16 %v13970_v9, %v13969_v51  ;;  %v11806_v51 = vsel %vm169_vm0, %v101_v14, 0  ;;  %v11809_v9 = vsel %vm169_vm0, %v102_v5, 0  ;;  %v13981_v14 = vand.u32 4294901760, %v11717_v27 }
 0x1aa   :  { %13977 = vst [vmem:[#allocation76_spill] sm:$0xff] %v11809_v9  ;;  %v11829_v5 = vsel %vm169_vm0, %v119_v47, 0  ;;  %13988 = vst [vmem:[#allocation14_spill] sm:$0xff] %v11843_v61  ;;  %v11849_v47 = vsel %vm169_vm0, %v134_v28, 0  ;;  %v13992_v28 = vand.u32 4294901760, %v11455_v39 }
 0x1ab   :  { %13971 = vst [vmem:[#allocation61_spill] sm:$0xff] %v11786_v42  ;;  %v11826_v34 = vpack.c.bf16 %v13981_v14, %v13980_v57  ;;  %13983 = vst [vmem:[#allocation17_spill] sm:$0xff] %v11829_v5  ;;  %v11846_v57 = vsel %vm169_vm0, %v133_v36, 0  ;;  %v11863_v36 = vsub.f32 %v11440_v18, %v13991_v0  ;;  %v121_v14 = vld [vmem:[%s13155_s0 + $0x2f0] sm:$0xff] }
 0x1ac   :  { %13989 = vst [vmem:[#allocation16_spill] sm:$0xff] %v11846_v57  ;;  %9443 = vmatpush3.bf16.xpose.msra.mxu0 %v11786_v42  ;;  %v11868_v8 = vsub.f32 %v11455_v39, %v13992_v28  ;;  %v13994_v42 = vand.u32 4294901760, %v11458_v33  ;;  %v103_v28 = vld [vmem:[%s13155_s0 + $0x260] sm:$0xff]  ;;  %v14002_v39 = vand.u32 4294901760, %v11557_v1 }
 0x1ad   :  { %13982 = vst [vmem:[#allocation78_spill] sm:$0xff] %v11826_v34  ;;  %9445 = vmatprep.subr.bf16.mxu0 %v11803_v55  ;;  %v14005_v55 = vand.u32 4294901760, %v11809_v9 }
 0x1ae   :  { %v11881_v18 = vsub.f32 %v11458_v33, %v13994_v42  ;;  %9635 = vmatpush3.bf16.xpose.msra.mxu1 %v11826_v34  ;;  %v13996_v42 = vand.u32 4294901760, %v11510_v46  ;;  %v11914_v34 = vsub.f32 %v11527_v22, %v13998_v29  ;;  %v11924_v0 = vsub.f32 %v11557_v1, %v14002_v39  ;;  %v135_v22 = vld [vmem:[%s13155_s0 + $0x360] sm:$0xff] }
 0x1af   :  { %9637 = vmatprep.subr.bf16.mxu1 %v11843_v61  ;;  %v14004_v61 = vand.u32 4294901760, %v11806_v51  ;;  %v14007_v29 = vand.u32 4294901760, %v11544_v3  ;;  %v14009_v1 = vand.u32 4294901760, %v11829_v5  ;;  %v14010_v39 = vand.u32 4294901760, %v11832_v32 }
 0x1b0   :  { %v11900_v33 = vsub.f32 %v11510_v46, %v13996_v42  ;;  %13999 = vst [vmem:[#allocation23_spill] sm:$0xff] %v11914_v34  ;;  %v14000_v46 = vand.u32 4294901760, %v11554_v24  ;;  %14003 = vst [vmem:[#allocation29_spill] sm:$0xff] %v11924_v0  ;;  %v11976_v5 = vsel %vm169_vm0, %v122_v16, 0  ;;  %v11981_v0 = vsub.f32 %v11581_v62, %v14021_v43 }
 0x1b1   :  { %v11930_v13 = vpack.c.bf16 %v14005_v55, %v14004_v61  ;;  %v11947_v9 = vpack.c.bf16 %v14010_v39, %v14009_v1  ;;  %v11950_v61 = vsel %vm169_vm0, %v103_v28, 0  ;;  %v11953_v55 = vsel %vm169_vm0, %v104_v4, 0  ;;  %14020 = vst [vmem:[#allocation43_spill] sm:$0xff] %v11976_v5 }
 0x1b2   :  { %13997 = vst [vmem:[#allocation22_spill] sm:$0xff] %v11900_v33  ;;  %v11919_v42 = vsub.f32 %v11554_v24, %v14000_v46  ;;  %v136_v24 = vld [vmem:[%s13155_s0 + $0x368] sm:$0xff]  ;;  %v11941_v46 = vsub.f32 %v11544_v3, %v14007_v29  ;;  %14012 = vst [vmem:[#allocation32_spill] sm:$0xff] %v11950_v61  ;;  %v154_v3 = vld [vmem:[%s13155_s0 + $0x3f8] sm:$0xff]  ;;  %v14014_v29 = vand.u32 4294901760, %v11547_v63  ;;  %v14016_v1 = vand.u32 4294901760, %v11846_v57 }
 0x1b3   :  { %14006 = vst [vmem:[#allocation31_spill] sm:$0xff] %v11930_v13  ;;  %14011 = vst [vmem:[#allocation28_spill] sm:$0xff] %v11947_v9  ;;  %v14017_v28 = vand.u32 4294901760, %v11849_v47  ;;  %v11973_v4 = vsel %vm169_vm0, %v121_v14, 0  ;;  %v11993_v14 = vsel %vm169_vm0, %v136_v24, 0  ;;  %v11999_v43 = vsel %vm169_vm0, %v153_v6, 0 }
 0x1b4   :  { %14001 = vst [vmem:[#allocation25_spill] sm:$0xff] %v11919_v42  ;;  %14008 = vst [vmem:[#allocation26_spill] sm:$0xff] %v11941_v46  ;;  %v11964_v32 = vsub.f32 %v11547_v63, %v14014_v29  ;;  %v14023_v63 = vand.u32 4294901760, %v11855_v23  ;;  %v14024_v29 = vand.u32 4294901760, %v11858_v12  ;;  %9447 = vmatpush3.bf16.xpose.msra.mxu0 %v11930_v13  ;;  %v12002_v62 = vsel %vm169_vm0, %v154_v3, 0  ;;  %v105_v24 = vld [vmem:[%s13155_s0 + $0x270] sm:$0xff] }
 0x1b5   :  { %14013 = vst [vmem:[#allocation34_spill] sm:$0xff] %v11953_v55  ;;  %v11970_v39 = vpack.c.bf16 %v14017_v28, %v14016_v1  ;;  %14019 = vst [vmem:[#allocation41_spill] sm:$0xff] %v11973_v4  ;;  %v11990_v1 = vsel %vm169_vm0, %v135_v22, 0  ;;  %9449 = vmatprep.subr.bf16.mxu0 %v11947_v9  ;;  %v14027_v6 = vand.u32 4294901760, %v11608_v45  ;;  %v14029_v3 = vand.u32 4294901760, %v11634_v58  ;;  %v106_v28 = vld [vmem:[%s13155_s0 + $0x278] sm:$0xff] }
 0x1b6   :  { %14015 = vst [vmem:[#allocation35_spill] sm:$0xff] %v11964_v32  ;;  %14022 = vst [vmem:[#allocation38_spill] sm:$0xff] %v11981_v0  ;;  %v11987_v57 = vpack.c.bf16 %v14024_v29, %v14023_v63  ;;  %v14031_v22 = vand.u32 4294901760, %v11637_v53  ;;  %v138_v63 = vld [vmem:[%s13155_s0 + $0x378] sm:$0xff] }
 0x1b7   :  { %14018 = vst [vmem:[#allocation37_spill] sm:$0xff] %v11970_v39  ;;  %14026 = vst [vmem:[#allocation44_spill] sm:$0xff] %v12002_v62  ;;  %v12015_v16 = vsub.f32 %v11608_v45, %v14027_v6  ;;  %v12020_v9 = vsub.f32 %v11634_v58, %v14029_v3  ;;  %9639 = vmatpush3.bf16.xpose.msra.mxu1 %v11970_v39  ;;  %v137_v58 = vld [vmem:[%s13155_s0 + $0x370] sm:$0xff]  ;;  %v14033_v39 = vand.u32 4294901760, %v11624_v15  ;;  %v14035_v6 = vand.u32 4294901760, %v11950_v61 }
 0x1b8   :  { %14025 = vst [vmem:[#allocation40_spill] sm:$0xff] %v11987_v57  ;;  %9641 = vmatprep.subr.bf16.mxu1 %v11987_v57  ;;  %v12039_v29 = vsub.f32 %v11637_v53, %v14031_v22  ;;  %v14036_v45 = vand.u32 4294901760, %v11953_v55  ;;  %v12053_v3 = vsel %vm169_vm0, %v105_v24, 0  ;;  %v14038_v53 = vand.u32 4294901760, %v11973_v4 }
 0x1b9   :  { %14028 = vst [vmem:[#allocation45_spill] sm:$0xff] %v12015_v16  ;;  %14030 = vst [vmem:[#allocation47_spill] sm:$0xff] %v12020_v9  ;;  %v12044_v57 = vsub.f32 %v11624_v15, %v14033_v39  ;;  %v14039_v22 = vand.u32 4294901760, %v11976_v5  ;;  %v12065_v15 = vsel %vm169_vm0, %v106_v28, 0  ;;  %v14041_v39 = vand.u32 4294901760, %v11735_v11 }
 0x1ba   :  { %14032 = vst [vmem:[#allocation48_spill] sm:$0xff] %v12039_v29  ;;  %v12050_v13 = vpack.c.bf16 %v14036_v45, %v14035_v6  ;;  %v14042_v24 = vand.u32 4294901760, %v11751_v49  ;;  %v14043_v55 = vand.u32 4294901760, %v11627_v60  ;;  %v14045_v5 = vand.u32 4294901760, %v11661_v48 }
 0x1bb   :  { %14034 = vst [vmem:[#allocation53_spill] sm:$0xff] %v12044_v57  ;;  %v12062_v12 = vpack.c.bf16 %v14039_v22, %v14038_v53  ;;  %v2603_v45 = vsub.f32 %v11735_v11, %v14041_v39  ;;  %v14047_v28 = vand.u32 4294901760, %v11990_v1  ;;  %v14048_v22 = vand.u32 4294901760, %v11993_v14 }
 0x1bc   :  { %14037 = vst [vmem:[#allocation55_spill] sm:$0xff] %v12050_v13  ;;  %v2610_v6 = vsub.f32 %v11751_v49, %v14042_v24  ;;  %v12076_v61 = vsub.f32 %v11627_v60, %v14043_v55  ;;  %v12081_v53 = vsub.f32 %v11661_v48, %v14045_v5  ;;  %v12090_v39 = vsel %vm169_vm0, %v137_v58, 0  ;;  %9451 = vmatpush3.bf16.xpose.msra.mxu0 %v12050_v13 }
 0x1bd   :  { %14040 = vst [vmem:[#allocation50_spill] sm:$0xff] %v12062_v12  ;;  %v12087_v4 = vpack.c.bf16 %v14048_v22, %v14047_v28  ;;  %v14050_v24 = vand.u32 4294901760, %v11999_v43  ;;  %v14051_v49 = vand.u32 4294901760, %v12002_v62  ;;  %v12099_v55 = vsel %vm169_vm0, %v138_v63, 0  ;;  %9453 = vmatprep.subr.bf16.mxu0 %v12062_v12 }
 0x1be   :  { %14044 = vst [vmem:[#allocation52_spill] sm:$0xff] %v12076_v61  ;;  %14046 = vst [vmem:[#allocation56_spill] sm:$0xff] %v12081_v53  ;;  %v14053_v48 = vand.u32 4294901760, %v11391_v31  ;;  %v14054_v11 = vand.u32 4294901760, %v11393_v35  ;;  %v2604_v63 = vand.u32 4294901760, %v2603_v45  ;;  %v2611_v62 = vand.u32 4294901760, %v2610_v6 }
 0x1bf   :  { %14049 = vst [vmem:[#allocation57_spill] sm:$0xff] %v12087_v4  ;;  %v12096_v60 = vpack.c.bf16 %v14051_v49, %v14050_v24  ;;  %9643 = vmatpush3.bf16.xpose.msra.mxu1 %v12087_v4  ;;  %v14058_v58 = vand.u32 4294901760, %v12065_v15  ;;  %v14060_v49 = vand.u32 4294901760, %v11756_v56  ;;  %v14062_v6 = vand.u32 4294901760, %v11714_v25 }
 0x1c0   :  { %v3507_v5 = vsub.f32 %v11391_v31, %v14053_v48  ;;  %v3514_v28 = vsub.f32 %v11393_v35, %v14054_v11  ;;  %v14055_v31 = vand.u32 4294901760, %v11688_v44  ;;  %v14057_v11 = vand.u32 4294901760, %v12053_v3 }
 0x1c1   :  { %14052 = vst [vmem:[#allocation60_spill] sm:$0xff] %v12096_v60  ;;  %9645 = vmatprep.subr.bf16.mxu1 %v12096_v60  ;;  %v12143_v60 = vsub.f32 %v11714_v25, %v14062_v6  ;;  %v14072_v6 = vand.u32 4294901760, %v11780_v2 }
 0x1c2   :  { %v3508_v24 = vand.u32 4294901760, %v3507_v5  ;;  %v3515_v12 = vand.u32 4294901760, %v3514_v28  ;;  %v12126_v48 = vsub.f32 %v11688_v44, %v14055_v31  ;;  %v12132_v22 = vpack.c.bf16 %v14058_v58, %v14057_v11 }
 0x1c3   :  { %v2491_v5 = vsub.f32 %v11756_v56, %v14060_v49  ;;  %v14061_v28 = vand.u32 4294901760, %v11770_v17  ;;  %14063 = vst [vmem:[#allocation64_spill] sm:$0xff] %v12143_v60  ;;  %v9456_v31 = vpack.c.bf16 %v2611_v62, %v2604_v63  ;;  %v14064_v44 = vand.u32 4294901760, %v11797_v26 }
 0x1c4   :  { %14056 = vst [vmem:[#allocation67_spill] sm:$0xff] %v12126_v48  ;;  %14059 = vst [vmem:[#allocation62_spill] sm:$0xff] %v12132_v22  ;;  %v14065_v58 = vand.u32 4294901760, %v11820_v50  ;;  %v14066_v49 = vand.u32 4294901760, %v11717_v27  ;;  %v14071_v62 = vand.u32 4294901760, %v11775_v52  ;;  %9455 = vmatpush3.bf16.xpose.msra.mxu0 %v12132_v22 }
 0x1c5   :  { %v2498_v45 = vsub.f32 %v11770_v17, %v14061_v28  ;;  %v2617_v4 = vsub.f32 %v11797_v26, %v14064_v44  ;;  %v14068_v28 = vand.u32 4294901760, %v12090_v39  ;;  %v14069_v17 = vand.u32 4294901760, %v12099_v55  ;;  %9457 = vmatprep.subr.bf16.mxu0 %v9456_v31 }
 0x1c6   :  { %v2624_v11 = vsub.f32 %v11820_v50, %v14065_v58  ;;  %v12154_v13 = vsub.f32 %v11717_v27, %v14066_v49  ;;  %v3395_v63 = vsub.f32 %v11775_v52, %v14071_v62  ;;  %v3402_v44 = vsub.f32 %v11780_v2, %v14072_v6 }
 0x1c7   :  { %v12160_v25 = vpack.c.bf16 %v14069_v17, %v14068_v28  ;;  %v14073_v58 = vand.u32 4294901760, %v11704_v21  ;;  %v9648_v27 = vpack.c.bf16 %v3515_v12, %v3508_v24  ;;  %v14075_v49 = vand.u32 4294901760, %v11466_v40 }
 0x1c8   :  { %14067 = vst [vmem:[#allocation71_spill] sm:$0xff] %v12154_v13  ;;  %v14076_v17 = vand.u32 4294901760, %v11468_v20  ;;  %v2492_v62 = vand.u32 4294901760, %v2491_v5  ;;  %v2499_v52 = vand.u32 4294901760, %v2498_v45  ;;  %v13533_v12 = vand.u32 4294901760, %v11881_v18 }
 0x1c9   :  { %14070 = vst [vmem:[#allocation72_spill] sm:$0xff] %v12160_v25  ;;  %v12171_v50 = vsub.f32 %v11704_v21, %v14073_v58  ;;  %v3521_v26 = vsub.f32 %v11466_v40, %v14075_v49  ;;  %v2618_v21 = vand.u32 4294901760, %v2617_v4  ;;  %v2625_v58 = vand.u32 4294901760, %v2624_v11  ;;  %9647 = vmatpush3.bf16.xpose.msra.mxu1 %v12160_v25 }
 0x1ca   :  { %v3528_v28 = vsub.f32 %v11468_v20, %v14076_v17  ;;  %v3396_v49 = vand.u32 4294901760, %v3395_v63  ;;  %v3403_v40 = vand.u32 4294901760, %v3402_v44  ;;  %v13534_v5 = vand.u32 4294901760, %v11876_v41  ;;  %9649 = vmatprep.subr.bf16.mxu1 %v9648_v27 }
 0x1cb   :  { %14074 = vst [vmem:[#allocation79_spill] sm:$0xff] %v12171_v50  ;;  %v3522_v45 = vand.u32 4294901760, %v3521_v26  ;;  %v14077_v31 = vand.u32 4294901760, %v11707_v30  ;;  %v9458_v24 = vpack.c.bf16 %v2499_v52, %v2492_v62  ;;  %v14079_v63 = vand.u32 4294901760, %v11837_v19  ;;  %8641 = vmatmul.mubr.f32.vlgmr.msra.gmra.mrb[4].mxu0 %v13936_v59 }
 0x1cc   :  { %v3529_v6 = vand.u32 4294901760, %v3528_v28  ;;  %v14080_v17 = vand.u32 4294901760, %v11863_v36  ;;  %v14081_v26 = vand.u32 4294901760, %v11724_v54  ;;  %v9460_v4 = vpack.c.bf16 %v2625_v58, %v2618_v21 }
 0x1cd   :  { %v12192_v11 = vsub.f32 %v11707_v30, %v14077_v31  ;;  %v2505_v44 = vsub.f32 %v11837_v19, %v14079_v63  ;;  %v2631_v30 = vsub.f32 %v11881_v18, %v13533_v12  ;;  %v14083_v52 = vand.u32 4294901760, %v11895_v7  ;;  %9459 = vmatpush3.bf16.xpose.msra.mxu0 %v9458_v24 }
 0x1ce   :  { %v2512_v27 = vsub.f32 %v11863_v36, %v14080_v17  ;;  %v12203_v28 = vsub.f32 %v11724_v54, %v14081_v26  ;;  %v14084_v31 = vand.u32 4294901760, %v11727_v10  ;;  %v9650_v17 = vpack.c.bf16 %v3403_v40, %v3396_v49  ;;  %9461 = vmatprep.subr.bf16.mxu0 %v9460_v4  ;;  %v14101_v4 = vld [vmem:[#allocation16_spill] sm:$0xff] }
 0x1cf   :  { %14078 = vst [vmem:[#allocation74_spill] sm:$0xff] %v12192_v11  ;;  %v2638_v62 = vsub.f32 %v11895_v7, %v14083_v52  ;;  %v14086_v2 = vand.u32 4294901760, %v11868_v8  ;;  %v3416_v21 = vsub.f32 %v11876_v41, %v13534_v5  ;;  %v14087_v58 = vand.u32 4294901760, %v11806_v51 }
 0x1d0   :  { %14082 = vst [vmem:[#allocation75_spill] sm:$0xff] %v12203_v28  ;;  %v12214_v63 = vsub.f32 %v11727_v10, %v14084_v31  ;;  %v9652_v52 = vpack.c.bf16 %v3529_v6, %v3522_v45  ;;  %v14089_v10 = vand.u32 4294901760, %v11541_v38  ;;  %v14090_v49 = vand.u32 4294901760, %v11560_v37  ;;  %8857 = vmatmul.mubr.f32.vlgmr.msra.gmra.mrb[4].mxu1 %v13936_v59  ;;  %v14093_v59 = vld [vmem:[#allocation27_spill] sm:$0xff] }
 0x1d1   :  { %v3409_v54 = vsub.f32 %v11868_v8, %v14086_v2  ;;  %v12225_v26 = vsub.f32 %v11806_v51, %v14087_v58  ;;  %v2506_v31 = vand.u32 4294901760, %v2505_v44  ;;  %v2513_v12 = vand.u32 4294901760, %v2512_v27  ;;  %v14091_v51 = vld [vmem:[#allocation10_spill] sm:$0xff]  ;;  %9651 = vmatpush3.bf16.xpose.msra.mxu1 %v9650_v17  ;;  %v14092_v27 = vld [vmem:[#allocation29_spill] sm:$0xff]  ;;  %v14095_v58 = vld [vmem:[#allocation76_spill] sm:$0xff] }
 0x1d2   :  { %14085 = vst [vmem:[#allocation80_spill] sm:$0xff] %v12214_v63  ;;  %v3535_v40 = vsub.f32 %v11541_v38, %v14089_v10  ;;  %v3542_v2 = vsub.f32 %v11560_v37, %v14090_v49  ;;  %8642 = vmatprep.mubr.f32.mxu0 %v14091_v51  ;;  %v2632_v6 = vand.u32 4294901760, %v2631_v30  ;;  %v2639_v45 = vand.u32 4294901760, %v2638_v62  ;;  %8858 = vmatprep.mubr.f32.mxu1 %v14091_v51  ;;  %v14094_v30 = vld [vmem:[#allocation24_spill] sm:$0xff] }
 0x1d3   :  { %14088 = vst [vmem:[#allocation81_spill] sm:$0xff] %v12225_v26  ;;  %v3410_v49 = vand.u32 4294901760, %v3409_v54  ;;  %v3417_v24 = vand.u32 4294901760, %v3416_v21  ;;  %9653 = vmatprep.subr.bf16.mxu1 %v9652_v52  ;;  %8643 = vmatmul.mubr.f32.gmra.mrb[6].mxu0 %v14091_v51  ;;  %v14096_v10 = vand.u32 4294901760, %v14095_v58  ;;  %v9462_v54 = vpack.c.bf16 %v2513_v12, %v2506_v31 }
 0x1d4   :  { %v3536_v25 = vand.u32 4294901760, %v3535_v40  ;;  %v3543_v22 = vand.u32 4294901760, %v3542_v2  ;;  %v14098_v21 = vand.u32 4294901760, %v11900_v33  ;;  %v14099_v52 = vand.u32 4294901760, %v11914_v34  ;;  %v14100_v2 = vld [vmem:[#allocation92_spill] sm:$0xff]  ;;  %8859 = vmatmul.mubr.f32.gmra.mrb[6].mxu1 %v14091_v51 }
 0x1d5   :  { %v12249_v17 = vsub.f32 %v14095_v58, %v14096_v10  ;;  %8676 = vmatprep.mubr.f32.mxu0 %v14100_v2  ;;  %v14102_v62 = vand.u32 4294901760, %v14101_v4  ;;  %v9464_v38 = vpack.c.bf16 %v2639_v45, %v2632_v6  ;;  %v14104_v58 = vand.u32 4294901760, %v11941_v46  ;;  %8892 = vmatprep.mubr.f32.mxu1 %v14100_v2 }
 0x1d6   :  { %v2519_v5 = vsub.f32 %v11900_v33, %v14098_v21  ;;  %v2526_v40 = vsub.f32 %v11914_v34, %v14099_v52  ;;  %v14105_v31 = vand.u32 4294901760, %v11964_v32  ;;  %v14106_v21 = vand.u32 4294901760, %v11849_v47  ;;  %9463 = vmatpush3.bf16.xpose.msra.mxu0 %v9462_v54 }
 0x1d7   :  { %14097 = vst [vmem:[#allocation84_spill] sm:$0xff] %v12249_v17  ;;  %v12261_v44 = vsub.f32 %v14101_v4, %v14102_v62  ;;  %v2645_v12 = vsub.f32 %v11941_v46, %v14104_v58  ;;  %v9654_v34 = vpack.c.bf16 %v3417_v24, %v3410_v49  ;;  %v14108_v4 = vand.u32 4294901760, %v11919_v42  ;;  %v14110_v58 = vld [vmem:[#allocation17_spill] sm:$0xff]  ;;  %9465 = vmatprep.subr.bf16.mxu0 %v9464_v38 }
 0x1d8   :  { %v2652_v10 = vsub.f32 %v11964_v32, %v14105_v31  ;;  %v12273_v52 = vsub.f32 %v11849_v47, %v14106_v21  ;;  %v14109_v45 = vand.u32 4294901760, %v14092_v27  ;;  %v14111_v31 = vand.u32 4294901760, %v14110_v58 }
 0x1d9   :  { %14103 = vst [vmem:[#allocation86_spill] sm:$0xff] %v12261_v44  ;;  %v3423_v6 = vsub.f32 %v11919_v42, %v14108_v4  ;;  %v9656_v32 = vpack.c.bf16 %v3543_v22, %v3536_v25  ;;  %v14113_v47 = vand.u32 4294901760, %v14093_v59  ;;  %v14114_v24 = vand.u32 4294901760, %v14094_v30  ;;  %9655 = vmatpush3.bf16.xpose.msra.mxu1 %v9654_v34 }
 0x1da   :  { %14107 = vst [vmem:[#allocation82_spill] sm:$0xff] %v12273_v52  ;;  %v3430_v62 = vsub.f32 %v14092_v27, %v14109_v45  ;;  %v12285_v51 = vsub.f32 %v14110_v58, %v14111_v31  ;;  %v2520_v4 = vand.u32 4294901760, %v2519_v5  ;;  %v2527_v42 = vand.u32 4294901760, %v2526_v40  ;;  %v14116_v27 = vld [vmem:[#allocation46_spill] sm:$0xff] }
 0x1db   :  { %v3549_v49 = vsub.f32 %v14093_v59, %v14113_v47  ;;  %v3556_v21 = vsub.f32 %v14094_v30, %v14114_v24  ;;  %v2646_v46 = vand.u32 4294901760, %v2645_v12  ;;  %v2653_v58 = vand.u32 4294901760, %v2652_v10  ;;  %9657 = vmatprep.subr.bf16.mxu1 %v9656_v32  ;;  %v14115_v24 = vld [vmem:[#allocation42_spill] sm:$0xff]  ;;  %v14117_v12 = vld [vmem:[#allocation19_spill] sm:$0xff] }
 0x1dc   :  { %14112 = vst [vmem:[#allocation87_spill] sm:$0xff] %v12285_v51  ;;  %v3424_v31 = vand.u32 4294901760, %v3423_v6  ;;  %v3431_v47 = vand.u32 4294901760, %v3430_v62  ;;  %v13555_v59 = vand.u32 4294901760, %v12020_v9  ;;  %v14118_v10 = vand.u32 4294901760, %v14117_v12 }
 0x1dd   :  { %v3550_v5 = vand.u32 4294901760, %v3549_v49  ;;  %v3557_v40 = vand.u32 4294901760, %v3556_v21  ;;  %v9466_v25 = vpack.c.bf16 %v2527_v42, %v2520_v4  ;;  %v14120_v34 = vand.u32 4294901760, %v11981_v0 }
 0x1de   :  { %v12304_v22 = vsub.f32 %v14117_v12, %v14118_v10  ;;  %v14121_v62 = vand.u32 4294901760, %v12015_v16  ;;  %v14122_v49 = vand.u32 4294901760, %v11855_v23  ;;  %v9468_v38 = vpack.c.bf16 %v2653_v58, %v2646_v46  ;;  %v14126_v10 = vld [vmem:[#allocation20_spill] sm:$0xff] }
 0x1df   :  { %v2533_v6 = vsub.f32 %v11981_v0, %v14120_v34  ;;  %v14124_v45 = vand.u32 4294901760, %v12044_v57  ;;  %v14125_v42 = vand.u32 4294901760, %v12076_v61  ;;  %v14127_v34 = vand.u32 4294901760, %v14126_v10  ;;  %9467 = vmatpush3.bf16.xpose.msra.mxu0 %v9466_v25 }
 0x1e0   :  { %14119 = vst [vmem:[#allocation85_spill] sm:$0xff] %v12304_v22  ;;  %v2540_v32 = vsub.f32 %v12015_v16, %v14121_v62  ;;  %v12315_v21 = vsub.f32 %v11855_v23, %v14122_v49  ;;  %v9658_v62 = vpack.c.bf16 %v3431_v47, %v3424_v31  ;;  %v3437_v23 = vsub.f32 %v12020_v9, %v13555_v59  ;;  %v14130_v49 = vld [vmem:[#allocation32_spill] sm:$0xff] }
 0x1e1   :  { %v2659_v12 = vsub.f32 %v12044_v57, %v14124_v45  ;;  %v2666_v4 = vsub.f32 %v12076_v61, %v14125_v42  ;;  %v12326_v54 = vsub.f32 %v14126_v10, %v14127_v34  ;;  %v14129_v46 = vand.u32 4294901760, %v12039_v29  ;;  %9469 = vmatprep.subr.bf16.mxu0 %v9468_v38 }
 0x1e2   :  { %14123 = vst [vmem:[#allocation88_spill] sm:$0xff] %v12315_v21  ;;  %v14131_v45 = vand.u32 4294901760, %v14130_v49  ;;  %v9660_v42 = vpack.c.bf16 %v3557_v40, %v3550_v5  ;;  %v14133_v61 = vand.u32 4294901760, %v14115_v24  ;;  %v14134_v31 = vand.u32 4294901760, %v14116_v27  ;;  %9659 = vmatpush3.bf16.xpose.msra.mxu1 %v9658_v62 }
 0x1e3   :  { %14128 = vst [vmem:[#allocation91_spill] sm:$0xff] %v12326_v54  ;;  %v3444_v58 = vsub.f32 %v12039_v29, %v14129_v46  ;;  %v2534_v34 = vand.u32 4294901760, %v2533_v6  ;;  %v2541_v59 = vand.u32 4294901760, %v2540_v32  ;;  %v13561_v9 = vand.u32 4294901760, %v12081_v53 }
 0x1e4   :  { %v12337_v57 = vsub.f32 %v14130_v49, %v14131_v45  ;;  %v3563_v10 = vsub.f32 %v14115_v24, %v14133_v61  ;;  %v3570_v47 = vsub.f32 %v14116_v27, %v14134_v31  ;;  %v13562_v46 = vand.u32 4294901760, %v12126_v48  ;;  %9661 = vmatprep.subr.bf16.mxu1 %v9660_v42 }
 0x1e5   :  { %v2660_v29 = vand.u32 4294901760, %v2659_v12  ;;  %v2667_v49 = vand.u32 4294901760, %v2666_v4  ;;  %v3438_v61 = vand.u32 4294901760, %v3437_v23  ;;  %v3445_v45 = vand.u32 4294901760, %v3444_v58  ;;  %v14135_v12 = vld [vmem:[#allocation34_spill] sm:$0xff] }
 0x1e6   :  { %14132 = vst [vmem:[#allocation94_spill] sm:$0xff] %v12337_v57  ;;  %v13563_v24 = vand.u32 4294901760, %v12143_v60  ;;  %v13564_v25 = vand.u32 4294901760, %v12154_v13  ;;  %v3564_v6 = vand.u32 4294901760, %v3563_v10  ;;  %v3571_v32 = vand.u32 4294901760, %v3570_v47 }
 0x1e7   :  { %v13567_v31 = vand.u32 4294901760, %v12203_v28  ;;  %v13570_v38 = vand.u32 4294901760, %v12214_v63  ;;  %v14136_v4 = vand.u32 4294901760, %v14135_v12  ;;  %v9470_v40 = vpack.c.bf16 %v2541_v59, %v2534_v34 }
 0x1e8   :  { %v2547_v62 = vsub.f32 %v12081_v53, %v13561_v9  ;;  %v2554_v23 = vsub.f32 %v12126_v48, %v13562_v46  ;;  %v14138_v58 = vand.u32 4294901760, %v11990_v1  ;;  %v9472_v10 = vpack.c.bf16 %v2667_v49, %v2660_v29  ;;  %v14144_v49 = vld [vmem:[#allocation41_spill] sm:$0xff] }
 0x1e9   :  { %v12356_v5 = vsub.f32 %v14135_v12, %v14136_v4  ;;  %v14140_v47 = vand.u32 4294901760, %v12171_v50  ;;  %v14141_v59 = vand.u32 4294901760, %v12192_v11  ;;  %v14142_v4 = vand.u32 4294901760, %v11993_v14  ;;  %9471 = vmatpush3.bf16.xpose.msra.mxu0 %v9470_v40 }
 0x1ea   :  { %v12367_v42 = vsub.f32 %v11990_v1, %v14138_v58  ;;  %v9662_v46 = vpack.c.bf16 %v3445_v45, %v3438_v61  ;;  %v3451_v1 = vsub.f32 %v12143_v60, %v13563_v24  ;;  %v3458_v29 = vsub.f32 %v12154_v13, %v13564_v25  ;;  %9473 = vmatprep.subr.bf16.mxu0 %v9472_v10 }
 0x1eb   :  { %14137 = vst [vmem:[#allocation97_spill] sm:$0xff] %v12356_v5  ;;  %v2673_v12 = vsub.f32 %v12171_v50, %v14140_v47  ;;  %v2680_v34 = vsub.f32 %v12192_v11, %v14141_v59  ;;  %v12378_v9 = vsub.f32 %v11993_v14, %v14142_v4  ;;  %v14145_v58 = vand.u32 4294901760, %v14144_v49 }
 0x1ec   :  { %14139 = vst [vmem:[#allocation10_spill] sm:$0xff] %v12367_v42  ;;  %v9664_v59 = vpack.c.bf16 %v3571_v32, %v3564_v6  ;;  %v3577_v14 = vsub.f32 %v12203_v28, %v13567_v31  ;;  %v3584_v61 = vsub.f32 %v12214_v63, %v13570_v38  ;;  %v2548_v45 = vand.u32 4294901760, %v2547_v62  ;;  %9663 = vmatpush3.bf16.xpose.msra.mxu1 %v9662_v46 }
 0x1ed   :  { %14143 = vst [vmem:[#allocation24_spill] sm:$0xff] %v12378_v9  ;;  %v12389_v47 = vsub.f32 %v14144_v49, %v14145_v58  ;;  %v2555_v4 = vand.u32 4294901760, %v2554_v23  ;;  %v13571_v24 = vand.u32 4294901760, %v12225_v26  ;;  %v13572_v25 = vand.u32 4294901760, %v12249_v17 }
 0x1ee   :  { %v2674_v13 = vand.u32 4294901760, %v2673_v12  ;;  %v2681_v49 = vand.u32 4294901760, %v2680_v34  ;;  %v3452_v58 = vand.u32 4294901760, %v3451_v1  ;;  %v3459_v31 = vand.u32 4294901760, %v3458_v29  ;;  %9665 = vmatprep.subr.bf16.mxu1 %v9664_v59  ;;  %v14147_v12 = vld [vmem:[#allocation43_spill] sm:$0xff] }
 0x1ef   :  { %14146 = vst [vmem:[#allocation76_spill] sm:$0xff] %v12389_v47  ;;  %v13573_v28 = vand.u32 4294901760, %v12261_v44  ;;  %v13574_v40 = vand.u32 4294901760, %v12273_v52  ;;  %v3578_v62 = vand.u32 4294901760, %v3577_v14  ;;  %v3585_v23 = vand.u32 4294901760, %v3584_v61 }
 0x1f0   :  { %v13577_v38 = vand.u32 4294901760, %v12315_v21  ;;  %v14148_v34 = vand.u32 4294901760, %v14147_v12  ;;  %v9474_v32 = vpack.c.bf16 %v2555_v4, %v2548_v45  ;;  %v2561_v46 = vsub.f32 %v12225_v26, %v13571_v24 }
 0x1f1   :  { %v2568_v1 = vsub.f32 %v12249_v17, %v13572_v25  ;;  %v14150_v29 = vand.u32 4294901760, %v11999_v43  ;;  %v9476_v14 = vpack.c.bf16 %v2681_v49, %v2674_v13  ;;  %v14152_v61 = vand.u32 4294901760, %v12285_v51 }
 0x1f2   :  { %v12408_v6 = vsub.f32 %v14147_v12, %v14148_v34  ;;  %v14153_v45 = vand.u32 4294901760, %v12304_v22  ;;  %v14154_v34 = vld [vmem:[#allocation44_spill] sm:$0xff]  ;;  %v9666_v25 = vpack.c.bf16 %v3459_v31, %v3452_v58  ;;  %v3472_v13 = vsub.f32 %v12273_v52, %v13574_v40  ;;  %9475 = vmatpush3.bf16.xpose.msra.mxu0 %v9474_v32 }
 0x1f3   :  { %v12419_v59 = vsub.f32 %v11999_v43, %v14150_v29  ;;  %v2687_v12 = vsub.f32 %v12285_v51, %v14152_v61  ;;  %v14155_v24 = vand.u32 4294901760, %v14154_v34  ;;  %v3465_v43 = vsub.f32 %v12261_v44, %v13573_v28  ;;  %9477 = vmatprep.subr.bf16.mxu0 %v9476_v14 }
 0x1f4   :  { %14149 = vst [vmem:[#allocation92_spill] sm:$0xff] %v12408_v6  ;;  %v2694_v4 = vsub.f32 %v12304_v22, %v14153_v45  ;;  %v14157_v49 = vand.u32 4294901760, %v12053_v3  ;;  %v9668_v61 = vpack.c.bf16 %v3585_v23, %v3578_v62  ;;  %v14159_v31 = vand.u32 4294901760, %v12326_v54  ;;  %9667 = vmatpush3.bf16.xpose.msra.mxu1 %v9666_v25 }
 0x1f5   :  { %14151 = vst [vmem:[#allocation16_spill] sm:$0xff] %v12419_v59  ;;  %v12430_v10 = vsub.f32 %v14154_v34, %v14155_v24  ;;  %v3591_v24 = vsub.f32 %v12315_v21, %v13577_v38  ;;  %v2562_v45 = vand.u32 4294901760, %v2561_v46  ;;  %v2569_v34 = vand.u32 4294901760, %v2568_v1 }
 0x1f6   :  { %v12441_v29 = vsub.f32 %v12053_v3, %v14157_v49  ;;  %v3598_v58 = vsub.f32 %v12326_v54, %v14159_v31  ;;  %v13585_v28 = vand.u32 4294901760, %v12337_v57  ;;  %v13580_v40 = vand.u32 4294901760, %v12356_v5  ;;  %9669 = vmatprep.subr.bf16.mxu1 %v9668_v61 }
 0x1f7   :  { %14156 = vst [vmem:[#allocation17_spill] sm:$0xff] %v12430_v10  ;;  %v2688_v52 = vand.u32 4294901760, %v2687_v12  ;;  %v2695_v3 = vand.u32 4294901760, %v2694_v4  ;;  %v13582_v62 = vand.u32 4294901760, %v12389_v47  ;;  %v3466_v49 = vand.u32 4294901760, %v3465_v43 }
 0x1f8   :  { %14158 = vst [vmem:[#allocation46_spill] sm:$0xff] %v12441_v29  ;;  %v3473_v38 = vand.u32 4294901760, %v3472_v13  ;;  %v13581_v21 = vand.u32 4294901760, %v12367_v42  ;;  %v13583_v32 = vand.u32 4294901760, %v12378_v9  ;;  %v3592_v46 = vand.u32 4294901760, %v3591_v24 }
 0x1f9   :  { %v3599_v1 = vand.u32 4294901760, %v3598_v58  ;;  %v13584_v31 = vand.u32 4294901760, %v12419_v59  ;;  %v13586_v14 = vand.u32 4294901760, %v12430_v10  ;;  %v14160_v12 = vand.u32 4294901760, %v12065_v15 }
 0x1fa   :  { %v9478_v23 = vpack.c.bf16 %v2569_v34, %v2562_v45  ;;  %v2575_v25 = vsub.f32 %v12337_v57, %v13585_v28  ;;  %v2582_v43 = vsub.f32 %v12356_v5, %v13580_v40  ;;  %v14162_v13 = vand.u32 4294901760, %v12090_v39 }
 0x1fb   :  { %v12460_v4 = vsub.f32 %v12065_v15, %v14160_v12  ;;  %v9480_v24 = vpack.c.bf16 %v2695_v3, %v2688_v52  ;;  %v2701_v15 = vsub.f32 %v12389_v47, %v13582_v62  ;;  %v14164_v58 = vand.u32 4294901760, %v12408_v6 }
 0x1fc   :  { %v12471_v61 = vsub.f32 %v12090_v39, %v14162_v13  ;;  %v14165_v34 = vand.u32 4294901760, %v12099_v55  ;;  %v9670_v40 = vpack.c.bf16 %v3473_v38, %v3466_v49  ;;  %v3479_v39 = vsub.f32 %v12367_v42, %v13581_v21  ;;  %9479 = vmatpush3.bf16.xpose.msra.mxu0 %v9478_v23 }
 0x1fd   :  { %14161 = vst [vmem:[#allocation19_spill] sm:$0xff] %v12460_v4  ;;  %v2708_v45 = vsub.f32 %v12408_v6, %v14164_v58  ;;  %v3486_v52 = vsub.f32 %v12378_v9, %v13583_v32  ;;  %v9672_v3 = vpack.c.bf16 %v3599_v1, %v3592_v46  ;;  %v3605_v13 = vsub.f32 %v12419_v59, %v13584_v31 }
 0x1fe   :  { %14163 = vst [vmem:[#allocation20_spill] sm:$0xff] %v12471_v61  ;;  %v12482_v12 = vsub.f32 %v12099_v55, %v14165_v34  ;;  %v3612_v58 = vsub.f32 %v12430_v10, %v13586_v14  ;;  %v2576_v55 = vand.u32 4294901760, %v2575_v25  ;;  %v2583_v38 = vand.u32 4294901760, %v2582_v43  ;;  %9481 = vmatprep.subr.bf16.mxu0 %v9480_v24  ;;  %9671 = vmatpush3.bf16.xpose.msra.mxu1 %v9670_v40 }
 0x1ff   :  { %v13590_v49 = vand.u32 4294901760, %v12441_v29  ;;  %v13589_v34 = vand.u32 4294901760, %v12460_v4  ;;  %v2702_v21 = vand.u32 4294901760, %v2701_v15  ;;  %v2709_v62 = vand.u32 4294901760, %v2708_v45  ;;  %9673 = vmatprep.subr.bf16.mxu1 %v9672_v3 }
 0x200   :  { %14166 = vst [vmem:[#allocation32_spill] sm:$0xff] %v12482_v12  ;;  %v3480_v46 = vand.u32 4294901760, %v3479_v39  ;;  %v3487_v1 = vand.u32 4294901760, %v3486_v52  ;;  %v13588_v32 = vand.u32 4294901760, %v12471_v61  ;;  %v13587_v31 = vand.u32 4294901760, %v12482_v12 }
 0x201   :  { %v3606_v28 = vand.u32 4294901760, %v3605_v13  ;;  %v3613_v14 = vand.u32 4294901760, %v3612_v58  ;;  %v9482_v23 = vpack.c.bf16 %v2583_v38, %v2576_v55  ;;  %v2589_v25 = vsub.f32 %v12441_v29, %v13590_v49 }
 0x202   :  { %v2596_v43 = vsub.f32 %v12460_v4, %v13589_v34  ;;  %v9484_v24 = vpack.c.bf16 %v2709_v62, %v2702_v21  ;;  %v9674_v40 = vpack.c.bf16 %v3487_v1, %v3480_v46  ;;  %v3493_v15 = vsub.f32 %v12471_v61, %v13588_v32  ;;  %v14167_v21 = vld [vmem:[#allocation51_spill] sm:$0xff]  ;;  %v14168_v62 = vld [vmem:[#allocation49_spill] sm:$0xff] }
 0x203   :  { %v3500_v45 = vsub.f32 %v12482_v12, %v13587_v31  ;;  %v9676_v39 = vpack.c.bf16 %v3613_v14, %v3606_v28  ;;  %v2590_v52 = vand.u32 4294901760, %v2589_v25  ;;  %v9488_v38 = vpack.c.bf16 %v14168_v62, %v14167_v21  ;;  %v14169_v1 = vld [vmem:[#allocation59_spill] sm:$0xff]  ;;  %v14171_v28 = vld [vmem:[#allocation54_spill] sm:$0xff]  ;;  %v14173_v25 = vld [vmem:[#allocation73_spill] sm:$0xff] }
 0x204   :  { %9483 = vmatpush3.bf16.xpose.msra.mxu0 %v9482_v23  ;;  %v2597_v3 = vand.u32 4294901760, %v2596_v43  ;;  %v3494_v13 = vand.u32 4294901760, %v3493_v15  ;;  %v14170_v31 = vpack.c.bf16 %v11393_v35, %v14169_v1  ;;  %v9490_v14 = vpack.c.bf16 %v14171_v28, %v11756_v56  ;;  %v14172_v23 = vld [vmem:[#allocation66_spill] sm:$0xff]  ;;  %v14185_v32 = vld [vmem:[#allocation25_spill] sm:$0xff] }
 0x205   :  { %9485 = vmatprep.subr.bf16.mxu0 %v9484_v24  ;;  %v3501_v58 = vand.u32 4294901760, %v3500_v45  ;;  %v9492_v43 = vpack.c.bf16 %v14173_v25, %v14172_v23  ;;  %v14174_v24 = vld [vmem:[#allocation58_spill] sm:$0xff]  ;;  %v14176_v45 = vld [vmem:[#allocation77_spill] sm:$0xff] }
 0x206   :  { %9675 = vmatpush3.bf16.xpose.msra.mxu1 %v9674_v40  ;;  %v9486_v55 = vpack.c.bf16 %v2597_v3, %v2590_v52  ;;  %v14175_v40 = vld [vmem:[#allocation63_spill] sm:$0xff]  ;;  %v9494_v52 = vpack.c.bf16 %v11863_v36, %v11837_v19  ;;  %v14186_v34 = vld [vmem:[#allocation29_spill] sm:$0xff] }
 0x207   :  { %9677 = vmatprep.subr.bf16.mxu1 %v9676_v39  ;;  %v9678_v46 = vpack.c.bf16 %v3501_v58, %v3494_v13  ;;  %v9682_v15 = vpack.c.bf16 %v14175_v40, %v14174_v24  ;;  %v14179_v3 = vld [vmem:[#allocation95_spill] sm:$0xff]  ;;  %v9496_v13 = vpack.c.bf16 %v11895_v7, %v11881_v18  ;;  %v9686_v58 = vpack.c.bf16 %v11876_v41, %v11868_v8 }
 0x208   :  { %v9690_v49 = vpack.c.bf16 %v14186_v34, %v14185_v32 }
 0x20c   :  { %9487 = vmatpush3.bf16.xpose.msra.mxu0 %v9486_v55  ;;  %v14180_v55 = vld [vmem:[#allocation5_spill] sm:$0xff] }
 0x20d   :  { %9489 = vmatprep.subr.bf16.mxu0 %v9488_v38  ;;  %v14181_v38 = vpack.c.bf16 %v11560_v37, %v14180_v55 }
 0x20e   :  { %9679 = vmatpush3.bf16.xpose.msra.mxu1 %v9678_v46  ;;  %v14182_v46 = vld [vmem:[#allocation23_spill] sm:$0xff] }
 0x20f   :  { %9681 = vmatprep.subr.bf16.mxu1 %v14170_v31  ;;  %v14177_v31 = vld [vmem:[#allocation89_spill] sm:$0xff] }
 0x210   :  { %v14178_v39 = vpack.c.bf16 %v11468_v20, %v14177_v31 }
 0x213   :  { %8677 = vmatmul.mubr.f32.vlgmr.msra.gmra.mrb[4].mxu0 %v14100_v2 }
 0x214   :  { %9491 = vmatpush3.bf16.xpose.msra.mxu0 %v9490_v14  ;;  %8678 = vmatprep.mubr.f32.mxu0 %v14176_v45  ;;  %v9498_v14 = vpack.c.bf16 %v14182_v46, %v11900_v33  ;;  %v14191_v46 = vld [vmem:[#allocation47_spill] sm:$0xff]  ;;  %v14192_v33 = vld [vmem:[#allocation48_spill] sm:$0xff] }
 0x215   :  { %8893 = vmatmul.mubr.f32.vlgmr.msra.gmra.mrb[4].mxu1 %v14100_v2  ;;  %9493 = vmatprep.subr.bf16.mxu0 %v9492_v43  ;;  %v14183_v43 = vld [vmem:[#allocation26_spill] sm:$0xff]  ;;  %v9694_v55 = vpack.c.bf16 %v14192_v33, %v14191_v46 }
 0x216   :  { %9683 = vmatpush3.bf16.xpose.msra.mxu1 %v9682_v15  ;;  %8894 = vmatprep.mubr.f32.mxu1 %v14176_v45  ;;  %v14184_v15 = vld [vmem:[#allocation35_spill] sm:$0xff] }
 0x217   :  { %9685 = vmatprep.subr.bf16.mxu1 %v14178_v39  ;;  %8679 = vmatmul.mubr.f32.gmra.mrb[6].mxu0 %v14176_v45  ;;  %v9500_v39 = vpack.c.bf16 %v14184_v15, %v14183_v43 }
 0x218   :  { %8712 = vmatprep.mubr.f32.mxu0 %v14179_v3 }
 0x219   :  { %8895 = vmatmul.mubr.f32.gmra.mrb[6].mxu1 %v14176_v45  ;;  %v14190_v45 = vld [vmem:[#allocation52_spill] sm:$0xff] }
 0x21a   :  { %8928 = vmatprep.mubr.f32.mxu1 %v14179_v3 }
 0x21c   :  { %9495 = vmatpush3.bf16.xpose.msra.mxu0 %v9494_v52  ;;  %v14187_v52 = vld [vmem:[#allocation27_spill] sm:$0xff] }
 0x21d   :  { %9497 = vmatprep.subr.bf16.mxu0 %v9496_v13  ;;  %v14188_v13 = vpack.c.bf16 %v14094_v30, %v14187_v52 }
 0x21e   :  { %9687 = vmatpush3.bf16.xpose.msra.mxu1 %v9686_v58  ;;  %v9502_v58 = vpack.c.bf16 %v12015_v16, %v11981_v0  ;;  %v14195_v16 = vld [vmem:[#allocation71_spill] sm:$0xff] }
 0x21f   :  { %9689 = vmatprep.subr.bf16.mxu1 %v14181_v38  ;;  %v14189_v38 = vld [vmem:[#allocation53_spill] sm:$0xff]  ;;  %v9698_v0 = vpack.c.bf16 %v14195_v16, %v12143_v60 }
 0x220   :  { %v9504_v37 = vpack.c.bf16 %v14190_v45, %v14189_v38  ;;  %v14196_v45 = vld [vmem:[#allocation75_spill] sm:$0xff] }
 0x221   :  { %v9700_v38 = vpack.c.bf16 %v12214_v63, %v14196_v45 }
 0x224   :  { %9499 = vmatpush3.bf16.xpose.msra.mxu0 %v9498_v14  ;;  %v14193_v14 = vld [vmem:[#allocation42_spill] sm:$0xff] }
 0x225   :  { %9501 = vmatprep.subr.bf16.mxu0 %v9500_v39  ;;  %v14194_v39 = vpack.c.bf16 %v14116_v27, %v14193_v14 }
 0x226   :  { %9691 = vmatpush3.bf16.xpose.msra.mxu1 %v9690_v49  ;;  %v9506_v49 = vpack.c.bf16 %v12126_v48, %v12081_v53 }
 0x227   :  { %9693 = vmatprep.subr.bf16.mxu1 %v14188_v13  ;;  %v9508_v13 = vpack.c.bf16 %v12192_v11, %v12171_v50  ;;  %v14198_v11 = vld [vmem:[#allocation88_spill] sm:$0xff] }
 0x228   :  { %v9704_v50 = vpack.c.bf16 %v12326_v54, %v14198_v11  ;;  %v14218_v54 = vld [vmem:[#allocation33_spill] sm:$0xff] }
 0x22c   :  { %9503 = vmatpush3.bf16.xpose.msra.mxu0 %v9502_v58  ;;  %v14197_v58 = vld [vmem:[#allocation82_spill] sm:$0xff] }
 0x22d   :  { %9505 = vmatprep.subr.bf16.mxu0 %v9504_v37  ;;  %v9510_v37 = vpack.c.bf16 %v12249_v17, %v12225_v26 }
 0x22e   :  { %9695 = vmatpush3.bf16.xpose.msra.mxu1 %v9694_v55  ;;  %v9512_v55 = vpack.c.bf16 %v12304_v22, %v12285_v51 }
 0x22f   :  { %9697 = vmatprep.subr.bf16.mxu1 %v14194_v39  ;;  %v9702_v39 = vpack.c.bf16 %v14197_v58, %v12261_v44  ;;  %v14223_v58 = vld [vmem:[#allocation78_spill] sm:$0xff] }
 0x234   :  { %9507 = vmatpush3.bf16.xpose.msra.mxu0 %v9506_v49  ;;  %v9706_v49 = vpack.c.bf16 %v12378_v9, %v12367_v42  ;;  %v14201_v9 = vld [vmem:[#allocation65_spill] sm:$0xff] }
 0x235   :  { %9509 = vmatprep.subr.bf16.mxu0 %v9508_v13  ;;  %v9708_v13 = vpack.c.bf16 %v12430_v10, %v12419_v59 }
 0x236   :  { %9699 = vmatpush3.bf16.xpose.msra.mxu1 %v9698_v0  ;;  %v9514_v0 = vpack.c.bf16 %v12356_v5, %v12337_v57 }
 0x237   :  { %9701 = vmatprep.subr.bf16.mxu1 %v9700_v38  ;;  %v9516_v38 = vpack.c.bf16 %v12408_v6, %v12389_v47  ;;  %v14217_v47 = vld [vmem:[#allocation30_spill] sm:$0xff] }
 0x23c   :  { %9511 = vmatpush3.bf16.xpose.msra.mxu0 %v9510_v37  ;;  %v9518_v37 = vpack.c.bf16 %v12460_v4, %v12441_v29  ;;  %v14215_v4 = vld [vmem:[#allocation21_spill] sm:$0xff] }
 0x23d   :  { %9513 = vmatprep.subr.bf16.mxu0 %v9512_v55  ;;  %v14199_v55 = vld [vmem:[#allocation11_spill] sm:$0xff] }
 0x23e   :  { %9703 = vmatpush3.bf16.xpose.msra.mxu1 %v9702_v39  ;;  %v14200_v39 = vld [vmem:[#allocation13_spill] sm:$0xff] }
 0x23f   :  { %9705 = vmatprep.subr.bf16.mxu1 %v9704_v50  ;;  %v9710_v50 = vpack.c.bf16 %v12482_v12, %v12471_v61 }
 0x244   :  { %9515 = vmatpush3.bf16.xpose.msra.mxu0 %v9514_v0  ;;  %v14202_v0 = vld [vmem:[#allocation7_spill] sm:$0xff] }
 0x245   :  { %9517 = vmatprep.subr.bf16.mxu0 %v9516_v38  ;;  %v14203_v38 = vld [vmem:[#allocation68_spill] sm:$0xff] }
 0x246   :  { %9707 = vmatpush3.bf16.xpose.msra.mxu1 %v9706_v49  ;;  %v14204_v49 = vld [vmem:[#allocation69_spill] sm:$0xff] }
 0x247   :  { %9709 = vmatprep.subr.bf16.mxu1 %v9708_v13  ;;  %v14205_v13 = vld [vmem:[#allocation83_spill] sm:$0xff] }
 0x24c   :  { %9519 = vmatpush3.bf16.xpose.msra.mxu0 %v9518_v37  ;;  %v14206_v37 = vld [vmem:[#allocation96_spill] sm:$0xff] }
 0x24d   :  { %9521 = vmatprep.subr.bf16.mxu0 %v14199_v55  ;;  %v14214_v55 = vld [vmem:[#allocation18_spill] sm:$0xff] }
 0x24e   :  { %9711 = vmatpush3.bf16.xpose.msra.mxu1 %v9710_v50  ;;  %v14207_v50 = vld [vmem:[#allocation90_spill] sm:$0xff] }
 0x24f   :  { %9713 = vmatprep.subr.bf16.mxu1 %v14200_v39  ;;  %v14212_v39 = vld [vmem:[#allocation15_spill] sm:$0xff] }
 0x253   :  { %8713 = vmatmul.mubr.f32.vlgmr.msra.gmra.mrb[4].mxu0 %v14179_v3 }
 0x254   :  { %9523 = vmatpush3.bf16.xpose.msra.mxu0 %v14201_v9  ;;  %8714 = vmatprep.mubr.f32.mxu0 %v14202_v0  ;;  %v14208_v9 = vld [vmem:[#allocation93_spill] sm:$0xff] }
 0x255   :  { %8929 = vmatmul.mubr.f32.vlgmr.msra.gmra.mrb[4].mxu1 %v14179_v3  ;;  %9525 = vmatprep.subr.bf16.mxu0 %v14203_v38  ;;  %v14209_v3 = vld [vmem:[#allocation98_spill] sm:$0xff] }
 0x256   :  { %9715 = vmatpush3.bf16.xpose.msra.mxu1 %v14204_v49  ;;  %8930 = vmatprep.mubr.f32.mxu1 %v14202_v0  ;;  %v14210_v38 = vld [vmem:[#allocation6_spill] sm:$0xff]  ;;  %v12607_v49 = vpop.permute.xlu0 %161 }
 0x257   :  { %9717 = vmatprep.subr.bf16.mxu1 %v14205_v13  ;;  %8715 = vmatmul.mubr.f32.gmra.mrb[6].mxu0 %v14202_v0  ;;  %14211 = vst [vmem:[#allocation34_spill] sm:$0xff] %v12607_v49  ;;  %v14213_v13 = vld [vmem:[#allocation12_spill] sm:$0xff] }
 0x258   :  { %8748 = vmatprep.mubr.f32.mxu0 %v14206_v37 }
 0x259   :  { %8931 = vmatmul.mubr.f32.gmra.mrb[6].mxu1 %v14202_v0 }
 0x25a   :  { %8964 = vmatprep.mubr.f32.mxu1 %v14206_v37 }
 0x25c   :  { %9527 = vmatpush3.bf16.xpose.msra.mxu0 %v14207_v50 }
 0x25d   :  { %9529 = vmatprep.subr.bf16.mxu0 %v14208_v9 }
 0x25e   :  { %9719 = vmatpush3.bf16.xpose.msra.mxu1 %v14209_v3  ;;  %v1452_v12 = vpop.f32.mrb[0].mxu0  ;;  %v12615_v3 = vpop.permute.xlu0 %166 }
 0x25f   :  { %9721 = vmatprep.subr.bf16.mxu1 %v14210_v38  ;;  %v9904_v0 = vadd.f32 %v1452_v12, %v12607_v49  ;;  %v1454_v61 = vpop.f32.mrb[1].mxu0  ;;  %14216 = vst [vmem:[#allocation41_spill] sm:$0xff] %v12615_v3 }
 0x260   :  { %v2356_v50 = vpop.f32.mrb[0].mxu1  ;;  %v9905_v9 = vadd.f32 %v1454_v61, %v12607_v49 }
 0x261   :  { %v4192_v38 = vmul.f32 0.70710677, %v9904_v0  ;;  %v9908_v29 = vadd.f32 %v2356_v50, %v12607_v49  ;;  %v2358_v10 = vpop.f32.mrb[1].mxu1 }
 0x262   :  { %v1459_v59 = vpop.f32.mrb[2].mxu0 }
 0x263   :  { %10101 = verf.f32 %v4192_v38  ;;  %v9906_v12 = vadd.f32 %v1459_v59, %v12615_v3  ;;  %v1461_v42 = vpop.f32.mrb[3].mxu0  ;;  %v14219_v59 = vld [vmem:[#allocation39_spill] sm:$0xff]  ;;  %v4178_v44 = vmul.f32 0.5, %v9908_v29 }
 0x264   :  { %9531 = vmatpush3.bf16.xpose.msra.mxu0 %v14212_v39  ;;  %v4193_v39 = vmul.f32 0.70710677, %v9905_v9  ;;  %v2363_v6 = vpop.f32.mrb[2].mxu1  ;;  %v9907_v61 = vadd.f32 %v1461_v42, %v12615_v3 }
 0x265   :  { %9533 = vmatprep.subr.bf16.mxu0 %v14213_v13  ;;  %v9909_v13 = vadd.f32 %v2358_v10, %v12607_v49  ;;  %v4200_v5 = vmul.f32 0.70710677, %v9906_v12  ;;  %v9910_v50 = vadd.f32 %v2363_v6, %v12615_v3  ;;  %v2365_v57 = vpop.f32.mrb[3].mxu1  ;;  %v14220_v49 = vld [vmem:[#allocation36_spill] sm:$0xff] }
 0x266   :  { %9723 = vmatpush3.bf16.xpose.msra.mxu1 %v14214_v55  ;;  %v4194_v55 = vmul.f32 0.70710677, %v9908_v29  ;;  %10103 = verf.f32 %v4193_v39  ;;  %v4201_v10 = vmul.f32 0.70710677, %v9907_v61  ;;  %v9911_v38 = vadd.f32 %v2365_v57, %v12615_v3 }
 0x267   :  { %9725 = vmatprep.subr.bf16.mxu1 %v14215_v4  ;;  %v4195_v4 = vmul.f32 0.70710677, %v9909_v13  ;;  %v4202_v39 = vmul.f32 0.70710677, %v9910_v50  ;;  %v4177_v3 = vmul.f32 0.5, %v9905_v9  ;;  %v4179_v22 = vmul.f32 0.5, %v9909_v13 }
 0x268   :  { %10105 = verf.f32 %v4194_v55  ;;  %v4203_v42 = vmul.f32 0.70710677, %v9911_v38  ;;  %v14221_v55 = vld [vmem:[#allocation61_spill] sm:$0xff]  ;;  %v4185_v17 = vmul.f32 0.5, %v9907_v61  ;;  %v4186_v63 = vmul.f32 0.5, %v9910_v50 }
 0x269   :  { %10107 = verf.f32 %v4195_v4  ;;  %v4176_v4 = vmul.f32 0.5, %v9904_v0 }
 0x26a   :  { %10109 = verf.f32 %v4200_v5 }
 0x26b   :  { %10111 = verf.f32 %v4201_v10  ;;  %v14225_v10 = vand.u32 4294901760, %v14167_v21 }
 0x26c   :  { %9535 = vmatpush3.bf16.xpose.msra.mxu0 %v14217_v47  ;;  %10113 = verf.f32 %v4202_v39  ;;  %v14222_v47 = vld [vmem:[#allocation70_spill] sm:$0xff]  ;;  %v14226_v39 = vand.u32 4294901760, %v14168_v62 }
 0x26d   :  { %9537 = vmatprep.subr.bf16.mxu0 %v14218_v54  ;;  %10115 = verf.f32 %v4203_v42  ;;  %v10102_v6 = vpop.eup %10101 }
 0x26e   :  { %9727 = vmatpush3.bf16.xpose.msra.mxu1 %v14219_v59  ;;  %v4224_v11 = vadd.f32 1.0, %v10102_v6  ;;  %v14224_v59 = vld [vmem:[#allocation14_spill] sm:$0xff]  ;;  %v12635_v42 = vpack.c.bf16 %v14226_v39, %v14225_v10  ;;  %v4187_v10 = vmul.f32 0.5, %v9911_v38 }
 0x26f   :  { %9729 = vmatprep.subr.bf16.mxu1 %v14220_v49 }
 0x270   :  { %v10104_v54 = vpop.eup %10103  ;;  %v4240_v49 = vmul.f32 %v4224_v11, %v4176_v4 }
 0x271   :  { %v4225_v5 = vadd.f32 1.0, %v10104_v54 }
 0x272   :  { %v10106_v57 = vpop.eup %10105  ;;  %v4269_v54 = vand.u32 4294901760, %v4240_v49 }
 0x273   :  { %v4241_v6 = vmul.f32 %v4225_v5, %v4177_v3  ;;  %v14227_v3 = vld [vmem:[#allocation31_spill] sm:$0xff] }
 0x274   :  { %9539 = vmatpush3.bf16.xpose.msra.mxu0 %v14221_v55  ;;  %v10108_v55 = vpop.eup %10107  ;;  %v12637_v11 = vsub.f32 %v4240_v49, %v4269_v54  ;;  %v14230_v49 = vld [vmem:[#allocation37_spill] sm:$0xff] }
 0x275   :  { %9541 = vmatprep.subr.bf16.mxu0 %v14222_v47  ;;  %v4226_v47 = vadd.f32 1.0, %v10106_v57  ;;  %v10110_v0 = vpop.eup %10109  ;;  %v4227_v51 = vadd.f32 1.0, %v10108_v55  ;;  %v4267_v39 = vand.u32 4294901760, %v4241_v6  ;;  %v14228_v55 = vld [vmem:[#allocation28_spill] sm:$0xff] }
 0x276   :  { %9731 = vmatpush3.bf16.xpose.msra.mxu1 %v14223_v58  ;;  %v4184_v58 = vmul.f32 0.5, %v9906_v12  ;;  %v10112_v9 = vpop.eup %10111 }
 0x277   :  { %9733 = vmatprep.subr.bf16.mxu1 %v14224_v59  ;;  %v4242_v26 = vmul.f32 %v4226_v47, %v4178_v44  ;;  %v4232_v59 = vadd.f32 1.0, %v10110_v0  ;;  %v10114_v21 = vpop.eup %10113  ;;  %v4243_v45 = vmul.f32 %v4227_v51, %v4179_v22  ;;  %v4233_v62 = vadd.f32 1.0, %v10112_v9 }
 0x278   :  { %v10116_v16 = vpop.eup %10115  ;;  %v4234_v4 = vadd.f32 1.0, %v10114_v21  ;;  %v12641_v44 = vsub.f32 %v4241_v6, %v4267_v39  ;;  %v4355_v51 = vand.u32 4294901760, %v12637_v11 }
 0x279   :  { %v4760_v29 = vand.u32 4294901760, %v4242_v26  ;;  %v4248_v13 = vmul.f32 %v4232_v59, %v4184_v58  ;;  %v4249_v12 = vmul.f32 %v4233_v62, %v4185_v17  ;;  %v4235_v61 = vadd.f32 1.0, %v10116_v16  ;;  %v14231_v58 = vld [vmem:[#allocation40_spill] sm:$0xff] }
 0x27a   :  { %14229 = vst [vmem:[#allocation43_spill] sm:$0xff] %v12641_v44  ;;  %v4758_v47 = vand.u32 4294901760, %v4243_v45  ;;  %v4250_v38 = vmul.f32 %v4234_v4, %v4186_v63  ;;  %v4349_v16 = vand.u32 4294901760, %v12641_v44 }
 0x27b   :  { %v12644_v22 = vsub.f32 %v4242_v26, %v4760_v29  ;;  %v4273_v50 = vand.u32 4294901760, %v4248_v13  ;;  %v4251_v57 = vmul.f32 %v4235_v61, %v4187_v10  ;;  %v4271_v59 = vand.u32 4294901760, %v4249_v12 }
 0x27c   :  { %9543 = vmatpush3.bf16.xpose.msra.mxu0 %v14227_v3  ;;  %v12648_v5 = vsub.f32 %v4243_v45, %v4758_v47  ;;  %v4764_v6 = vand.u32 4294901760, %v4250_v38  ;;  %v4350_v62 = vsub.f32 %v12641_v44, %v4349_v16 }
 0x27d   :  { %9545 = vmatprep.subr.bf16.mxu0 %v14228_v55  ;;  %v4846_v17 = vand.u32 4294901760, %v12644_v22  ;;  %v12652_v0 = vsub.f32 %v4248_v13, %v4273_v50  ;;  %v12654_v9 = vpack.c.bf16 %v4273_v50, %v4269_v54  ;;  %v12656_v26 = vpack.c.bf16 %v4271_v59, %v4267_v39  ;;  %v14237_v50 = vld [vmem:[#allocation55_spill] sm:$0xff] }
 0x27e   :  { %9735 = vmatpush3.bf16.xpose.msra.mxu1 %v14230_v49  ;;  %v12658_v63 = vsub.f32 %v4249_v12, %v4271_v59  ;;  %v4762_v21 = vand.u32 4294901760, %v4251_v57  ;;  %v12662_v45 = vsub.f32 %v4250_v38, %v4764_v6  ;;  %v12664_v4 = vpack.c.bf16 %v4764_v6, %v4760_v29  ;;  %v14238_v6 = vld [vmem:[#allocation50_spill] sm:$0xff]  ;;  %v14240_v49 = vld [vmem:[#allocation60_spill] sm:$0xff] }
 0x27f   :  { %9737 = vmatprep.subr.bf16.mxu1 %v14231_v58  ;;  %14232 = vst [vmem:[#allocation44_spill] sm:$0xff] %v12654_v9  ;;  %14233 = vst [vmem:[#allocation51_spill] sm:$0xff] %v12656_v26  ;;  %v4367_v10 = vand.u32 4294901760, %v12652_v0  ;;  %v4840_v61 = vand.u32 4294901760, %v12648_v5  ;;  %v4351_v54 = vand.u32 4294901760, %v4350_v62  ;;  %v4356_v38 = vsub.f32 %v12637_v11, %v4355_v51 }
 0x280   :  { %14234 = vst [vmem:[#allocation49_spill] sm:$0xff] %v12658_v63  ;;  %14235 = vst [vmem:[#allocation59_spill] sm:$0xff] %v12664_v4  ;;  %v12667_v13 = vpack.c.bf16 %v4762_v21, %v4758_v47  ;;  %v12669_v58 = vsub.f32 %v4251_v57, %v4762_v21  ;;  %v4361_v39 = vand.u32 4294901760, %v12658_v63  ;;  %v4858_v12 = vand.u32 4294901760, %v12662_v45  ;;  %v14239_v4 = vld [vmem:[#allocation57_spill] sm:$0xff] }
 0x281   :  { %v4841_v59 = vsub.f32 %v12648_v5, %v4840_v61  ;;  %v4368_v29 = vsub.f32 %v12652_v0, %v4367_v10  ;;  %v4847_v21 = vsub.f32 %v12644_v22, %v4846_v17 }
 0x282   :  { %14236 = vst [vmem:[#allocation54_spill] sm:$0xff] %v12667_v13  ;;  %v4362_v47 = vsub.f32 %v12658_v63, %v4361_v39  ;;  %v4852_v57 = vand.u32 4294901760, %v12669_v58  ;;  %v4357_v13 = vand.u32 4294901760, %v4356_v38  ;;  %v12697_v44 = vpack.c.bf16 %v4361_v39, %v4349_v16  ;;  %v14244_v16 = vld [vmem:[#allocation72_spill] sm:$0xff] }
 0x283   :  { %v4842_v9 = vand.u32 4294901760, %v4841_v59  ;;  %v4369_v26 = vand.u32 4294901760, %v4368_v29  ;;  %v4848_v3 = vand.u32 4294901760, %v4847_v21  ;;  %v9842_v59 = vpack.c.bf16 %v12662_v45, %v12644_v22  ;;  %v14380_v22 = vld [vmem:[#allocation34_spill] sm:$0xff] }
 0x284   :  { %9547 = vmatpush3.bf16.xpose.msra.mxu0 %v14237_v50  ;;  %v4859_v50 = vsub.f32 %v12662_v45, %v4858_v12  ;;  %v4363_v55 = vand.u32 4294901760, %v4362_v47  ;;  %v12699_v47 = vpack.c.bf16 %v4852_v57, %v4840_v61  ;;  %v12703_v63 = vpack.c.bf16 %v4367_v10, %v4355_v51 }
 0x285   :  { %9549 = vmatprep.subr.bf16.mxu0 %v14238_v6  ;;  %v4853_v6 = vsub.f32 %v12669_v58, %v4852_v57  ;;  %v12689_v48 = vpack.c.bf16 %v4369_v26, %v4357_v13  ;;  %v12705_v26 = vpack.c.bf16 %v4858_v12, %v4846_v17  ;;  %v14241_v13 = vand.u32 4294901760, %v14169_v1 }
 0x286   :  { %9739 = vmatpush3.bf16.xpose.msra.mxu1 %v14239_v4  ;;  %v4860_v53 = vand.u32 4294901760, %v4859_v50  ;;  %v12695_v38 = vpack.c.bf16 %v4363_v55, %v4351_v54  ;;  %v14242_v50 = vand.u32 4294901760, %v11393_v35  ;;  %v14243_v55 = vld [vmem:[#allocation62_spill] sm:$0xff]  ;;  %v14247_v17 = vand.u32 4294901760, %v14172_v23 }
 0x287   :  { %9741 = vmatprep.subr.bf16.mxu1 %v14240_v49  ;;  %v4854_v29 = vand.u32 4294901760, %v4853_v6  ;;  %v14248_v1 = vand.u32 4294901760, %v14173_v25  ;;  %v14250_v10 = vand.u32 4294901760, %v14175_v40  ;;  %v14252_v54 = vand.u32 4294901760, %v11468_v20 }
 0x288   :  { %v12701_v21 = vpack.c.bf16 %v4860_v53, %v4848_v3  ;;  %v9744_v62 = vpack.c.bf16 %v14242_v50, %v14241_v13  ;;  %v14245_v53 = vand.u32 4294901760, %v11756_v56  ;;  %v14246_v3 = vand.u32 4294901760, %v14171_v28  ;;  %v14253_v28 = vld [vmem:[#allocation8_spill] sm:$0xff] }
 0x289   :  { %v12711_v60 = vpack.c.bf16 %v4854_v29, %v4842_v9  ;;  %v9556_v35 = vpack.c.bf16 %v14248_v1, %v14247_v17  ;;  %v14249_v9 = vand.u32 4294901760, %v14174_v24  ;;  %v14254_v23 = vand.u32 4294901760, %v11837_v19  ;;  %v14260_v19 = vld [vmem:[#allocation5_spill] sm:$0xff]  ;;  %v14266_v29 = vld [vmem:[#allocation23_spill] sm:$0xff] }
 0x28a   :  { %v9554_v51 = vpack.c.bf16 %v14246_v3, %v14245_v53  ;;  %v14255_v25 = vand.u32 4294901760, %v11863_v36  ;;  %v14256_v20 = vand.u32 4294901760, %v11881_v18  ;;  %v14257_v40 = vand.u32 4294901760, %v11895_v7  ;;  %v14262_v36 = vld [vmem:[#allocation9_spill] sm:$0xff]  ;;  %v14264_v7 = vld [vmem:[#allocation22_spill] sm:$0xff] }
 0x28b   :  { %v9746_v61 = vpack.c.bf16 %v14250_v10, %v14249_v9  ;;  %v14259_v39 = vand.u32 4294901760, %v11876_v41  ;;  %v14261_v6 = vand.u32 4294901760, %v14260_v19  ;;  %v14263_v57 = vand.u32 4294901760, %v14262_v36  ;;  %v14274_v10 = vld [vmem:[#allocation38_spill] sm:$0xff]  ;;  %v14290_v19 = vld [vmem:[#allocation79_spill] sm:$0xff] }
 0x28c   :  { %9551 = vmatpush3.bf16.xpose.msra.mxu0 %v14243_v55  ;;  %v9558_v24 = vpack.c.bf16 %v14255_v25, %v14254_v23  ;;  %v14265_v18 = vand.u32 4294901760, %v14264_v7  ;;  %v14267_v13 = vand.u32 4294901760, %v14266_v29  ;;  %v14269_v41 = vand.u32 4294901760, %v14184_v15 }
 0x28d   :  { %9553 = vmatprep.subr.bf16.mxu0 %v12635_v42  ;;  %v14251_v42 = vand.u32 4294901760, %v14177_v31  ;;  %v9560_v31 = vpack.c.bf16 %v14257_v40, %v14256_v20  ;;  %v14270_v3 = vand.u32 4294901760, %v14185_v32  ;;  %v14272_v1 = vand.u32 4294901760, %v14187_v52  ;;  %v14280_v32 = vld [vmem:[#allocation52_spill] sm:$0xff] }
 0x28e   :  { %9743 = vmatpush3.bf16.xpose.msra.mxu1 %v14244_v16  ;;  %v9562_v50 = vpack.c.bf16 %v14267_v13, %v14265_v18  ;;  %v14282_v23 = vand.u32 4294901760, %v14191_v46  ;;  %v14283_v52 = vand.u32 4294901760, %v14192_v33  ;;  %v14284_v25 = vand.u32 4294901760, %v14193_v14  ;;  %v14286_v40 = vld [vmem:[#allocation56_spill] sm:$0xff]  ;;  %v14292_v46 = vld [vmem:[#allocation74_spill] sm:$0xff]  ;;  %v14296_v14 = vld [vmem:[#allocation71_spill] sm:$0xff] }
 0x28f   :  { %9745 = vmatprep.subr.bf16.mxu1 %v9744_v62  ;;  %v9748_v56 = vpack.c.bf16 %v14252_v54, %v14251_v42  ;;  %v9752_v62 = vpack.c.bf16 %v14263_v57, %v14261_v6  ;;  %v14278_v54 = vld [vmem:[#allocation53_spill] sm:$0xff]  ;;  %v14291_v6 = vand.u32 4294901760, %v14290_v19  ;;  %v14293_v36 = vand.u32 4294901760, %v14292_v46  ;;  %v14294_v57 = vld [vmem:[#allocation64_spill] sm:$0xff]  ;;  %v14298_v18 = vld [vmem:[#allocation75_spill] sm:$0xff] }
 0x290   :  { %v14297_v7 = vand.u32 4294901760, %v14296_v14  ;;  %v14299_v29 = vand.u32 4294901760, %v14298_v18  ;;  %v14300_v13 = vld [vmem:[#allocation80_spill] sm:$0xff] }
 0x291   :  { %v9572_v33 = vpack.c.bf16 %v14293_v36, %v14291_v6  ;;  %v14326_v6 = vld [vmem:[#allocation10_spill] sm:$0xff]  ;;  %v14328_v36 = vld [vmem:[#allocation24_spill] sm:$0xff] }
 0x292   :  { %v14327_v46 = vand.u32 4294901760, %v14326_v6  ;;  %v14365_v6 = vld [vmem:[#allocation31_spill] sm:$0xff] }
 0x293   :  { %8749 = vmatmul.mubr.f32.vlgmr.msra.gmra.mrb[4].mxu0 %v14206_v37 }
 0x294   :  { %9555 = vmatpush3.bf16.xpose.msra.mxu0 %v9554_v51  ;;  %8750 = vmatprep.mubr.f32.mxu0 %v14253_v28  ;;  %v14271_v51 = vand.u32 4294901760, %v14186_v34 }
 0x295   :  { %8965 = vmatmul.mubr.f32.vlgmr.msra.gmra.mrb[4].mxu1 %v14206_v37  ;;  %9557 = vmatprep.subr.bf16.mxu0 %v9556_v35  ;;  %v14258_v37 = vand.u32 4294901760, %v11868_v8  ;;  %v14268_v8 = vand.u32 4294901760, %v14183_v43  ;;  %v14273_v35 = vand.u32 4294901760, %v14094_v30  ;;  %v14276_v43 = vld [vmem:[#allocation45_spill] sm:$0xff]  ;;  %v9758_v30 = vpack.c.bf16 %v14283_v52, %v14282_v23 }
 0x296   :  { %9747 = vmatpush3.bf16.xpose.msra.mxu1 %v9746_v61  ;;  %8966 = vmatprep.mubr.f32.mxu1 %v14253_v28  ;;  %v9754_v17 = vpack.c.bf16 %v14271_v51, %v14270_v3  ;;  %v14275_v61 = vand.u32 4294901760, %v14274_v10  ;;  %v14277_v42 = vand.u32 4294901760, %v14276_v43  ;;  %v14304_v3 = vld [vmem:[#allocation84_spill] sm:$0xff]  ;;  %v14310_v43 = vld [vmem:[#allocation86_spill] sm:$0xff] }
 0x297   :  { %9749 = vmatprep.subr.bf16.mxu1 %v9748_v56  ;;  %8751 = vmatmul.mubr.f32.gmra.mrb[6].mxu0 %v14253_v28  ;;  %v9750_v12 = vpack.c.bf16 %v14259_v39, %v14258_v37  ;;  %v9564_v53 = vpack.c.bf16 %v14269_v41, %v14268_v8  ;;  %v9756_v9 = vpack.c.bf16 %v14273_v35, %v14272_v1  ;;  %v14279_v56 = vand.u32 4294901760, %v14278_v54  ;;  %v14288_v37 = vld [vmem:[#allocation67_spill] sm:$0xff]  ;;  %v14302_v41 = vld [vmem:[#allocation81_spill] sm:$0xff] }
 0x298   :  { %8784 = vmatprep.mubr.f32.mxu0 %v14100_v2  ;;  %v9566_v15 = vpack.c.bf16 %v14277_v42, %v14275_v61  ;;  %v14289_v39 = vand.u32 4294901760, %v14288_v37  ;;  %v14305_v51 = vand.u32 4294901760, %v14304_v3  ;;  %v14306_v1 = vld [vmem:[#allocation87_spill] sm:$0xff]  ;;  %v14311_v42 = vand.u32 4294901760, %v14310_v43  ;;  %v14338_v3 = vld [vmem:[#allocation20_spill] sm:$0xff]  ;;  %v14345_v43 = vld [vmem:[#allocation77_spill] sm:$0xff] }
 0x299   :  { %8967 = vmatmul.mubr.f32.gmra.mrb[6].mxu1 %v14253_v28  ;;  %v14281_v28 = vand.u32 4294901760, %v14280_v32  ;;  %v14307_v35 = vand.u32 4294901760, %v14306_v1  ;;  %v14314_v32 = vld [vmem:[#allocation88_spill] sm:$0xff] }
 0x29a   :  { %9000 = vmatprep.mubr.f32.mxu1 %v14100_v2 }
 0x29b   :  { %v9568_v34 = vpack.c.bf16 %v14281_v28, %v14279_v56  ;;  %v14315_v28 = vand.u32 4294901760, %v14314_v32  ;;  %v14350_v32 = vld [vmem:[#allocation93_spill] sm:$0xff] }
 0x29c   :  { %9559 = vmatpush3.bf16.xpose.msra.mxu0 %v9558_v24  ;;  %v14285_v24 = vand.u32 4294901760, %v14116_v27 }
 0x29d   :  { %9561 = vmatprep.subr.bf16.mxu0 %v9560_v31  ;;  %v14287_v31 = vand.u32 4294901760, %v14286_v40 }
 0x29e   :  { %9751 = vmatpush3.bf16.xpose.msra.mxu1 %v9750_v12  ;;  %v9760_v20 = vpack.c.bf16 %v14285_v24, %v14284_v25  ;;  %v14320_v24 = vld [vmem:[#allocation97_spill] sm:$0xff] }
 0x29f   :  { %9753 = vmatprep.subr.bf16.mxu1 %v9752_v62  ;;  %v9570_v12 = vpack.c.bf16 %v14289_v39, %v14287_v31  ;;  %v14295_v62 = vand.u32 4294901760, %v14294_v57  ;;  %v14322_v31 = vld [vmem:[#allocation76_spill] sm:$0xff] }
 0x2a0   :  { %v14323_v37 = vand.u32 4294901760, %v14322_v31  ;;  %v14324_v39 = vld [vmem:[#allocation92_spill] sm:$0xff] }
 0x2a1   :  { %v9762_v27 = vpack.c.bf16 %v14297_v7, %v14295_v62  ;;  %v14330_v62 = vld [vmem:[#allocation16_spill] sm:$0xff]  ;;  %v14332_v7 = vld [vmem:[#allocation17_spill] sm:$0xff] }
 0x2a2   :  { %v14331_v14 = vand.u32 4294901760, %v14330_v62  ;;  %v14360_v31 = vld [vmem:[#allocation36_spill] sm:$0xff]  ;;  %v14369_v62 = vld [vmem:[#allocation55_spill] sm:$0xff] }
 0x2a4   :  { %9563 = vmatpush3.bf16.xpose.msra.mxu0 %v9562_v50  ;;  %v14301_v50 = vand.u32 4294901760, %v14300_v13  ;;  %v14334_v13 = vld [vmem:[#allocation46_spill] sm:$0xff] }
 0x2a5   :  { %9565 = vmatprep.subr.bf16.mxu0 %v9564_v53  ;;  %v14303_v53 = vand.u32 4294901760, %v14302_v41 }
 0x2a6   :  { %9755 = vmatpush3.bf16.xpose.msra.mxu1 %v9754_v17  ;;  %v9764_v8 = vpack.c.bf16 %v14301_v50, %v14299_v29  ;;  %v4257_v29 = vld [vmem:[%s13159_s4] sm:$0xff]  ;;  %v14335_v50 = vand.u32 4294901760, %v14334_v13  ;;  %v14372_v13 = vld [vmem:[#allocation54_spill] sm:$0xff] }
 0x2a7   :  { %9757 = vmatprep.subr.bf16.mxu1 %v9756_v9  ;;  %v9574_v17 = vpack.c.bf16 %v14305_v51, %v14303_v53  ;;  %v14308_v9 = vld [vmem:[#allocation85_spill] sm:$0xff]  ;;  %4260 = vperm.xlu1 %10100, %v4257_v29   ;;  %v14339_v51 = vand.u32 4294901760, %v14338_v3  ;;  %v14371_v29 = vld [vmem:[#allocation51_spill] sm:$0xff] }
 0x2a8   :  { %v14309_v10 = vand.u32 4294901760, %v14308_v9  ;;  %v14342_v9 = vld [vmem:[#allocation11_spill] sm:$0xff] }
 0x2aa   :  { %v9576_v61 = vpack.c.bf16 %v14309_v10, %v14307_v35  ;;  %v14343_v10 = vld [vmem:[#allocation13_spill] sm:$0xff] }
 0x2ac   :  { %9567 = vmatpush3.bf16.xpose.msra.mxu0 %v9566_v15  ;;  %v14312_v15 = vld [vmem:[#allocation82_spill] sm:$0xff] }
 0x2ad   :  { %9569 = vmatprep.subr.bf16.mxu0 %v9568_v34  ;;  %v14313_v54 = vand.u32 4294901760, %v14312_v15  ;;  %v14316_v34 = vld [vmem:[#allocation91_spill] sm:$0xff]  ;;  %v14347_v15 = vld [vmem:[#allocation69_spill] sm:$0xff] }
 0x2ae   :  { %9759 = vmatpush3.bf16.xpose.msra.mxu1 %v9758_v30  ;;  %v14317_v23 = vand.u32 4294901760, %v14316_v34  ;;  %v14318_v30 = vld [vmem:[#allocation94_spill] sm:$0xff] }
 0x2af   :  { %9761 = vmatprep.subr.bf16.mxu1 %v9760_v20  ;;  %v9766_v56 = vpack.c.bf16 %v14313_v54, %v14311_v42  ;;  %v14319_v25 = vand.u32 4294901760, %v14318_v30  ;;  %v14321_v20 = vand.u32 4294901760, %v14320_v24  ;;  %v14346_v42 = vld [vmem:[#allocation68_spill] sm:$0xff]  ;;  %v14348_v54 = vld [vmem:[#allocation83_spill] sm:$0xff]  ;;  %v14352_v34 = vld [vmem:[#allocation6_spill] sm:$0xff] }
 0x2b0   :  { %v9768_v52 = vpack.c.bf16 %v14317_v23, %v14315_v28  ;;  %v14351_v28 = vld [vmem:[#allocation98_spill] sm:$0xff]  ;;  %v14353_v23 = vld [vmem:[#allocation15_spill] sm:$0xff] }
 0x2b1   :  { %v9578_v40 = vpack.c.bf16 %v14321_v20, %v14319_v25  ;;  %v14355_v30 = vld [vmem:[#allocation18_spill] sm:$0xff]  ;;  %v14356_v25 = vld [vmem:[#allocation21_spill] sm:$0xff] }
 0x2b2   :  { %v14357_v24 = vld [vmem:[#allocation30_spill] sm:$0xff]  ;;  %v14358_v20 = vld [vmem:[#allocation33_spill] sm:$0xff] }
 0x2b4   :  { %9571 = vmatpush3.bf16.xpose.msra.mxu0 %v9570_v12  ;;  %v14325_v12 = vand.u32 4294901760, %v14324_v39  ;;  %v14362_v39 = vld [vmem:[#allocation70_spill] sm:$0xff] }
 0x2b5   :  { %9573 = vmatprep.subr.bf16.mxu0 %v9572_v33  ;;  %v14329_v33 = vand.u32 4294901760, %v14328_v36  ;;  %v14367_v36 = vld [vmem:[#allocation37_spill] sm:$0xff] }
 0x2b6   :  { %9763 = vmatpush3.bf16.xpose.msra.mxu1 %v9762_v27  ;;  %v9580_v19 = vpack.c.bf16 %v14325_v12, %v14323_v37  ;;  %v14333_v27 = vand.u32 4294901760, %v14332_v7  ;;  %v14361_v37 = vld [vmem:[#allocation61_spill] sm:$0xff]  ;;  %v14363_v12 = vld [vmem:[#allocation78_spill] sm:$0xff] }
 0x2b7   :  { %9765 = vmatprep.subr.bf16.mxu1 %v9764_v8  ;;  %v9770_v57 = vpack.c.bf16 %v14329_v33, %v14327_v46  ;;  %v14336_v8 = vld [vmem:[#allocation19_spill] sm:$0xff]  ;;  %v14366_v46 = vld [vmem:[#allocation28_spill] sm:$0xff]  ;;  %v14370_v7 = vld [vmem:[#allocation50_spill] sm:$0xff] }
 0x2b8   :  { %v9772_v18 = vpack.c.bf16 %v14333_v27, %v14331_v14  ;;  %v14337_v41 = vand.u32 4294901760, %v14336_v8  ;;  %v14368_v33 = vld [vmem:[#allocation40_spill] sm:$0xff]  ;;  %v10174_v8 = vmov 0.0  }
 0x2ba   :  { %v9582_v53 = vpack.c.bf16 %v14337_v41, %v14335_v50  ;;  %v14378_v41 = vpack.c.bf16 %v12669_v58, %v12648_v5 }
 0x2bc   :  { %9575 = vmatpush3.bf16.xpose.msra.mxu0 %v9574_v17  ;;  %v14340_v17 = vld [vmem:[#allocation32_spill] sm:$0xff] }
 0x2bd   :  { %9577 = vmatprep.subr.bf16.mxu0 %v9576_v61  ;;  %v14341_v1 = vand.u32 4294901760, %v14340_v17  ;;  %v14344_v61 = vld [vmem:[#allocation65_spill] sm:$0xff] }
 0x2be   :  { %9767 = vmatpush3.bf16.xpose.msra.mxu1 %v9766_v56  ;;  %v14349_v56 = vld [vmem:[#allocation90_spill] sm:$0xff] }
 0x2bf   :  { %9769 = vmatprep.subr.bf16.mxu1 %v9768_v52  ;;  %v9774_v35 = vpack.c.bf16 %v14341_v1, %v14339_v51  ;;  %v14354_v52 = vld [vmem:[#allocation12_spill] sm:$0xff]  ;;  %v14381_v51 = vld [vmem:[#allocation41_spill] sm:$0xff] }
 0x2c4   :  { %9579 = vmatpush3.bf16.xpose.msra.mxu0 %v9578_v40  ;;  %v14359_v40 = vld [vmem:[#allocation39_spill] sm:$0xff] }
 0x2c5   :  { %9581 = vmatprep.subr.bf16.mxu0 %v9580_v19  ;;  %v14364_v19 = vld [vmem:[#allocation14_spill] sm:$0xff] }
 0x2c6   :  { %9771 = vmatpush3.bf16.xpose.msra.mxu1 %v9770_v57  ;;  %v4256_v57 = vld [vmem:[%s13158_s3] sm:$0xff] }
 0x2c7   :  { %9773 = vmatprep.subr.bf16.mxu1 %v9772_v18  ;;  %v4265_v14 = vsel %vm4263_vm1, %v4256_v57, 0 }
 0x2c8   :  { %v12888_v27 = vand.u32 4294901760, %v4265_v14 }
 0x2ca   :  { %v12891_v18 = vsub.f32 %v4265_v14, %v12888_v27 }
 0x2cc   :  { %9583 = vmatpush3.bf16.xpose.msra.mxu0 %v9582_v53  ;;  %v12898_v50 = vand.u32 4294901760, %v12891_v18 }
 0x2cd   :  { %9585 = vmatprep.subr.bf16.mxu0 %v14342_v9 }
 0x2ce   :  { %9775 = vmatpush3.bf16.xpose.msra.mxu1 %v9774_v35 }
 0x2cf   :  { %9777 = vmatprep.subr.bf16.mxu1 %v14343_v10 }
 0x2d3   :  { %8785 = vmatmul.mubr.f32.vlgmr.msra.gmra.mrb[4].mxu0 %v14100_v2 }
 0x2d4   :  { %9587 = vmatpush3.bf16.xpose.msra.mxu0 %v14344_v61  ;;  %8786 = vmatprep.mubr.f32.mxu0 %v14345_v43 }
 0x2d5   :  { %9001 = vmatmul.mubr.f32.vlgmr.msra.gmra.mrb[4].mxu1 %v14100_v2  ;;  %9589 = vmatprep.subr.bf16.mxu0 %v14346_v42 }
 0x2d6   :  { %9779 = vmatpush3.bf16.xpose.msra.mxu1 %v14347_v15  ;;  %9002 = vmatprep.mubr.f32.mxu1 %v14345_v43 }
 0x2d7   :  { %9781 = vmatprep.subr.bf16.mxu1 %v14348_v54  ;;  %8787 = vmatmul.mubr.f32.gmra.mrb[6].mxu0 %v14345_v43 }
 0x2d8   :  { %8820 = vmatprep.mubr.f32.mxu0 %v14100_v2 }
 0x2d9   :  { %9003 = vmatmul.mubr.f32.gmra.mrb[6].mxu1 %v14345_v43 }
 0x2da   :  { %9036 = vmatprep.mubr.f32.mxu1 %v14100_v2 }
 0x2dc   :  { %9591 = vmatpush3.bf16.xpose.msra.mxu0 %v14349_v56 }
 0x2dd   :  { %9593 = vmatprep.subr.bf16.mxu0 %v14350_v32 }
 0x2de   :  { %9783 = vmatpush3.bf16.xpose.msra.mxu1 %v14351_v28 }
 0x2df   :  { %9785 = vmatprep.subr.bf16.mxu1 %v14352_v34 }
 0x2e4   :  { %9595 = vmatpush3.bf16.xpose.msra.mxu0 %v14353_v23 }
 0x2e5   :  { %9597 = vmatprep.subr.bf16.mxu0 %v14354_v52 }
 0x2e6   :  { %9787 = vmatpush3.bf16.xpose.msra.mxu1 %v14355_v30 }
 0x2e7   :  { %9789 = vmatprep.subr.bf16.mxu1 %v14356_v25 }
 0x2ec   :  { %9599 = vmatpush3.bf16.xpose.msra.mxu0 %v14357_v24 }
 0x2ed   :  { %9601 = vmatprep.subr.bf16.mxu0 %v14358_v20 }
 0x2ee   :  { %9791 = vmatpush3.bf16.xpose.msra.mxu1 %v14359_v40 }
 0x2ef   :  { %9793 = vmatprep.subr.bf16.mxu1 %v14360_v31 }
 0x2f4   :  { %9603 = vmatpush3.bf16.xpose.msra.mxu0 %v14361_v37 }
 0x2f5   :  { %9605 = vmatprep.subr.bf16.mxu0 %v14362_v39 }
 0x2f6   :  { %9795 = vmatpush3.bf16.xpose.msra.mxu1 %v14363_v12 }
 0x2f7   :  { %9797 = vmatprep.subr.bf16.mxu1 %v14364_v19 }
 0x2fc   :  { %9607 = vmatpush3.bf16.xpose.msra.mxu0 %v14365_v6 }
 0x2fd   :  { %9609 = vmatprep.subr.bf16.mxu0 %v14366_v46 }
 0x2fe   :  { %9799 = vmatpush3.bf16.xpose.msra.mxu1 %v14367_v36 }
 0x2ff   :  { %9801 = vmatprep.subr.bf16.mxu1 %v14368_v33 }
 0x304   :  { %9611 = vmatpush3.bf16.xpose.msra.mxu0 %v14369_v62 }
 0x305   :  { %9613 = vmatprep.subr.bf16.mxu0 %v14370_v7 }
 0x306   :  { %9803 = vmatpush3.bf16.xpose.msra.mxu1 %v14239_v4  ;;  %v14373_v4 = vld [vmem:[#allocation44_spill] sm:$0xff] }
 0x307   :  { %9805 = vmatprep.subr.bf16.mxu1 %v14240_v49  ;;  %v4339_v49 = vsub.f32 %v12891_v18, %v12898_v50 }
 0x30c   :  { %9615 = vmatpush3.bf16.xpose.msra.mxu0 %v14243_v55  ;;  %v14374_v55 = vld [vmem:[#allocation59_spill] sm:$0xff] }
 0x30d   :  { %9809 = vmatprep.subr.bf16.mxu0 %v14371_v29 }
 0x30e   :  { %9807 = vmatpush3.bf16.xpose.msra.mxu1 %v14244_v16  ;;  %v12911_v16 = vand.u32 4294901760, %v4339_v49 }
 0x30f   :  { %9833 = vmatprep.subr.bf16.mxu1 %v14372_v13 }
 0x313   :  { %8821 = vmatmul.mubr.f32.vlgmr.msra.gmra.mrb[4].mxu0 %v14100_v2 }
 0x314   :  { %9811 = vmatpush1.bf16.msra.mxu0 %v14373_v4  ;;  %8822 = vmatprep.mubr.f32.mxu0 %v14345_v43 }
 0x315   :  { %9037 = vmatmul.mubr.f32.vlgmr.msra.gmra.mrb[4].mxu1 %v14100_v2  ;;  %9813 = vmatprep.subr.bf16.mxu0 %v12695_v38  ;;  %v14376_v2 = vld [vmem:[#allocation43_spill] sm:$0xff] }
 0x316   :  { %9835 = vmatpush1.bf16.msra.mxu1 %v14374_v55  ;;  %9038 = vmatprep.mubr.f32.mxu1 %v14345_v43 }
 0x317   :  { %9837 = vmatprep.subr.bf16.mxu1 %v12711_v60  ;;  %8823 = vmatmul.mubr.f32.gmra.mrb[6].mxu0 %v14345_v43  ;;  %v14375_v60 = vld [vmem:[#allocation49_spill] sm:$0xff] }
 0x318   :  { %4335 = vmatprep.mubr.f32.mxu0 %v10174_v8  ;;  %v14377_v38 = vpack.c.bf16 %v14375_v60, %v14376_v2 }
 0x319   :  { %9039 = vmatmul.mubr.f32.gmra.mrb[6].mxu1 %v14345_v43 }
 0x31a   :  { %4826 = vmatprep.mubr.f32.mxu1 %v10174_v8 }
 0x31b   :  { %4341 = vmatmul.mubr.f32.vlgmr.msra.gmra.mrb[8].mxu0 %v12911_v16 }
 0x31c   :  { %9815 = vmatpush1.bf16.msra.mxu0 %v12689_v48  ;;  %4431 = vmatprep.mubr.f32.mxu0 %v10174_v8  ;;  %v14379_v48 = vpack.c.bf16 %v12652_v0, %v12637_v11  ;;  %v6272_v11 = vld [vmem:[%s13161_s6] sm:$0xf] }
 0x31d   :  { %4832 = vmatmul.mubr.f32.vlgmr.msra.gmra.mrb[8].mxu1 %v12911_v16  ;;  %9817 = vmatprep.subr.bf16.mxu0 %v14377_v38 }
 0x31e   :  { %9839 = vmatpush1.bf16.msra.mxu1 %v12701_v21  ;;  %4922 = vmatprep.mubr.f32.mxu1 %v10174_v8 }
 0x31f   :  { %9841 = vmatprep.subr.bf16.mxu1 %v14378_v41  ;;  %6275 = vperm.xlu1 %10100, %v6272_v11  }
 0x323   :  { %4433 = vmatmul.mubr.f32.vlgmr.msra.gmra.mrb[8].mxu0 %v12888_v27 }
 0x324   :  { %9819 = vmatpush1.bf16.msra.mxu0 %v14379_v48  ;;  %4511 = vmatprep.mubr.f32.mxu0 %v10174_v8 }
 0x325   :  { %4924 = vmatmul.mubr.f32.vlgmr.msra.gmra.mrb[8].mxu1 %v12888_v27  ;;  %9821 = vmatprep.subr.bf16.mxu0 %v14371_v29 }
 0x326   :  { %9843 = vmatpush1.bf16.msra.mxu1 %v9842_v59  ;;  %5002 = vmatprep.mubr.f32.mxu1 %v10174_v8 }
 0x327   :  { %9845 = vmatprep.subr.bf16.mxu1 %v14372_v13 }
 0x32b   :  { %4514 = vmatmul.mubr.f32.vlgmr.msra.gmra.mrb[8].mxu0 %v12891_v18 }
 0x32c   :  { %9823 = vmatpush1.bf16.msra.mxu0 %v14373_v4  ;;  %4588 = vmatprep.mubr.f32.mxu0 %v10174_v8 }
 0x32d   :  { %5005 = vmatmul.mubr.f32.vlgmr.msra.gmra.mrb[8].mxu1 %v12891_v18  ;;  %9825 = vmatprep.subr.bf16.mxu0 %v12697_v44 }
 0x32e   :  { %9847 = vmatpush1.bf16.msra.mxu1 %v14374_v55  ;;  %5079 = vmatprep.mubr.f32.mxu1 %v10174_v8 }
 0x32f   :  { %9849 = vmatprep.subr.bf16.mxu1 %v12699_v47 }
 0x333   :  { %4592 = vmatmul.mubr.f32.vlgmr.msra.gmra.mrb[8].mxu0 %v12898_v50 }
 0x334   :  { %9827 = vmatpush1.bf16.msra.mxu0 %v12703_v63  ;;  %4674 = vmatprep.mubr.f32.mxu0 %v10174_v8 }
 0x335   :  { %5083 = vmatmul.mubr.f32.vlgmr.msra.gmra.mrb[8].mxu1 %v12898_v50  ;;  %9829 = vmatprep.subr.bf16.mxu0 %v14371_v29 }
 0x336   :  { %9851 = vmatpush1.bf16.msra.mxu1 %v12705_v26  ;;  %5165 = vmatprep.mubr.f32.mxu1 %v10174_v8 }
 0x337   :  { %9853 = vmatprep.subr.bf16.mxu1 %v14372_v13 }
 0x33b   :  { %4676 = vmatmul.mubr.f32.vlgmr.msra.gmra.mrb[8].mxu0 %v12888_v27 }
 0x33c   :  { %9831 = vmatpush1.bf16.msra.mxu0 %v14373_v4  ;;  %4750 = vmatprep.mubr.f32.mxu0 %v10174_v8 }
 0x33d   :  { %5167 = vmatmul.mubr.f32.vlgmr.msra.gmra.mrb[8].mxu1 %v12888_v27 }
 0x33e   :  { %9855 = vmatpush1.bf16.msra.mxu1 %v14374_v55  ;;  %5241 = vmatprep.mubr.f32.mxu1 %v10174_v8 }
 0x343   :  { %4752 = vmatmul.mubr.f32.vlgmr.msra.gmra.mrb[8].mxu0 %v12888_v27 }
 0x344   :  { %5317 = vmatprep.mubr.f32.mxu0 %v10174_v8 }
 0x345   :  { %5243 = vmatmul.mubr.f32.vlgmr.msra.gmra.mrb[8].mxu1 %v12888_v27 }
 0x346   :  { %5808 = vmatprep.mubr.f32.mxu1 %v10174_v8 }
 0x3e6   :  { %v3260_v44 = vpop.f32.mrb[4].mxu0 }
 0x3e7   :  { %v9912_v58 = vadd.f32 %v3260_v44, %v14380_v22  ;;  %v3262_v5 = vpop.f32.mrb[5].mxu0 }
 0x3e8   :  { %v4164_v0 = vpop.f32.mrb[4].mxu1  ;;  %v9913_v63 = vadd.f32 %v3262_v5, %v14380_v22 }
 0x3e9   :  { %v4196_v45 = vmul.f32 0.70710677, %v9912_v58  ;;  %v9916_v59 = vadd.f32 %v4164_v0, %v14380_v22  ;;  %v4166_v47 = vpop.f32.mrb[5].mxu1  ;;  %v4180_v23 = vmul.f32 0.5, %v9912_v58 }
 0x3ea   :  { %v4197_v21 = vmul.f32 0.70710677, %v9913_v63  ;;  %v9917_v26 = vadd.f32 %v4166_v47, %v14380_v22  ;;  %v3267_v53 = vpop.f32.mrb[6].mxu0  ;;  %v4181_v25 = vmul.f32 0.5, %v9913_v63 }
 0x3eb   :  { %10117 = verf.f32 %v4196_v45  ;;  %v4198_v3 = vmul.f32 0.70710677, %v9916_v59  ;;  %v9914_v17 = vadd.f32 %v3267_v53, %v14381_v51  ;;  %v3269_v1 = vpop.f32.mrb[7].mxu0  ;;  %v4182_v31 = vmul.f32 0.5, %v9916_v59 }
 0x3ec   :  { %10119 = verf.f32 %v4197_v21  ;;  %v4199_v35 = vmul.f32 0.70710677, %v9917_v26  ;;  %v4171_v9 = vpop.f32.mrb[6].mxu1  ;;  %v9915_v10 = vadd.f32 %v3269_v1, %v14381_v51  ;;  %v4183_v39 = vmul.f32 0.5, %v9917_v26 }
 0x3ed   :  { %10121 = verf.f32 %v4198_v3  ;;  %v4204_v61 = vmul.f32 0.70710677, %v9914_v17  ;;  %v9918_v43 = vadd.f32 %v4171_v9, %v14381_v51  ;;  %v4173_v42 = vpop.f32.mrb[7].mxu1  ;;  %v4188_v46 = vmul.f32 0.5, %v9914_v17 }
 0x3ee   :  { %10123 = verf.f32 %v4199_v35  ;;  %v4205_v15 = vmul.f32 0.70710677, %v9915_v10  ;;  %v9919_v54 = vadd.f32 %v4173_v42, %v14381_v51  ;;  %v4189_v36 = vmul.f32 0.5, %v9915_v10 }
 0x3ef   :  { %10125 = verf.f32 %v4204_v61  ;;  %v4206_v56 = vmul.f32 0.70710677, %v9918_v43  ;;  %v4190_v7 = vmul.f32 0.5, %v9918_v43 }
 0x3f0   :  { %10127 = verf.f32 %v4205_v15  ;;  %v4207_v32 = vmul.f32 0.70710677, %v9919_v54  ;;  %v4191_v4 = vmul.f32 0.5, %v9919_v54 }
 0x3f1   :  { %10129 = verf.f32 %v4206_v56 }
 0x3f2   :  { %10131 = verf.f32 %v4207_v32 }
 0x3f5   :  { %v10118_v28 = vpop.eup %10117 }
 0x3f6   :  { %v10120_v34 = vpop.eup %10119  ;;  %v4228_v52 = vadd.f32 1.0, %v10118_v28 }
 0x3f7   :  { %v10122_v30 = vpop.eup %10121  ;;  %v4229_v24 = vadd.f32 1.0, %v10120_v34 }
 0x3f8   :  { %v10124_v20 = vpop.eup %10123  ;;  %v4244_v40 = vmul.f32 %v4228_v52, %v4180_v23  ;;  %v4230_v37 = vadd.f32 1.0, %v10122_v30 }
 0x3f9   :  { %v10126_v12 = vpop.eup %10125  ;;  %v4245_v19 = vmul.f32 %v4229_v24, %v4181_v25  ;;  %v4231_v6 = vadd.f32 1.0, %v10124_v20 }
 0x3fa   :  { %v10128_v33 = vpop.eup %10127  ;;  %v5251_v57 = vand.u32 4294901760, %v4244_v40  ;;  %v4246_v62 = vmul.f32 %v4230_v37, %v4182_v31  ;;  %v4236_v14 = vadd.f32 1.0, %v10126_v12 }
 0x3fb   :  { %v10130_v29 = vpop.eup %10129  ;;  %v4247_v13 = vmul.f32 %v4231_v6, %v4183_v39  ;;  %v4237_v49 = vadd.f32 1.0, %v10128_v33  ;;  %v5249_v55 = vand.u32 4294901760, %v4245_v19 }
 0x3fc   :  { %v10132_v60 = vpop.eup %10131  ;;  %v12977_v2 = vsub.f32 %v4244_v40, %v5251_v57  ;;  %v5742_v38 = vand.u32 4294901760, %v4246_v62  ;;  %v4252_v41 = vmul.f32 %v4236_v14, %v4188_v46  ;;  %v4238_v48 = vadd.f32 1.0, %v10130_v29 }
 0x3fd   :  { %v4253_v11 = vmul.f32 %v4237_v49, %v4189_v36  ;;  %v4239_v44 = vadd.f32 1.0, %v10132_v60  ;;  %v12979_v22 = vsub.f32 %v4245_v19, %v5249_v55  ;;  %v5740_v58 = vand.u32 4294901760, %v4247_v13 }
 0x3fe   :  { %v5337_v5 = vand.u32 4294901760, %v12977_v2  ;;  %v12982_v0 = vsub.f32 %v4246_v62, %v5742_v38  ;;  %v5255_v63 = vand.u32 4294901760, %v4252_v41  ;;  %v4254_v45 = vmul.f32 %v4238_v48, %v4190_v7 }
 0x3ff   :  { %v4255_v59 = vmul.f32 %v4239_v44, %v4191_v4  ;;  %v5253_v47 = vand.u32 4294901760, %v4253_v11  ;;  %v5821_v21 = vsub.f32 %v4247_v13, %v5740_v58  ;;  %v5331_v26 = vand.u32 4294901760, %v12979_v22 }
 0x400   :  { %v5828_v53 = vand.u32 4294901760, %v12982_v0  ;;  %v5348_v3 = vsub.f32 %v4252_v41, %v5255_v63  ;;  %v5746_v51 = vand.u32 4294901760, %v4254_v45  ;;  %v12986_v17 = vpack.c.bf16 %v5255_v63, %v5251_v57 }
 0x401   :  { %v12988_v1 = vpack.c.bf16 %v5253_v47, %v5249_v55  ;;  %v5342_v35 = vsub.f32 %v4253_v11, %v5253_v47  ;;  %v5744_v9 = vand.u32 4294901760, %v4255_v59  ;;  %v5332_v10 = vsub.f32 %v12979_v22, %v5331_v26 }
 0x402   :  { %v5349_v61 = vand.u32 4294901760, %v5348_v3  ;;  %v5839_v43 = vsub.f32 %v4254_v45, %v5746_v51  ;;  %v12991_v42 = vpack.c.bf16 %v5746_v51, %v5742_v38  ;;  %v5822_v15 = vand.u32 4294901760, %v5821_v21 }
 0x403   :  { %9857 = vmatprep.subr.bf16.mxu0 %v12988_v1  ;;  %v12994_v54 = vpack.c.bf16 %v5744_v9, %v5740_v58  ;;  %v5833_v56 = vsub.f32 %v4255_v59, %v5744_v9  ;;  %v5333_v32 = vand.u32 4294901760, %v5332_v10  ;;  %v5343_v28 = vand.u32 4294901760, %v5342_v35 }
 0x404   :  { %v5840_v34 = vand.u32 4294901760, %v5839_v43  ;;  %9859 = vmatpush1.bf16.msra.mxu0 %v12986_v17  ;;  %v5823_v23 = vsub.f32 %v5821_v21, %v5822_v15  ;;  %v5338_v52 = vsub.f32 %v12977_v2, %v5337_v5  ;;  %v5350_v30 = vsub.f32 %v5348_v3, %v5349_v61 }
 0x405   :  { %9881 = vmatprep.subr.bf16.mxu1 %v12994_v54  ;;  %v5344_v25 = vsub.f32 %v5342_v35, %v5343_v28  ;;  %v5834_v24 = vand.u32 4294901760, %v5833_v56  ;;  %v5829_v20 = vsub.f32 %v12982_v0, %v5828_v53  ;;  %v9864_v40 = vpack.c.bf16 %v5342_v35, %v12979_v22 }
 0x406   :  { %9883 = vmatpush1.bf16.msra.mxu1 %v12991_v42  ;;  %v5824_v31 = vand.u32 4294901760, %v5823_v23  ;;  %v5339_v37 = vand.u32 4294901760, %v5338_v52  ;;  %v5351_v39 = vand.u32 4294901760, %v5350_v30  ;;  %v5841_v12 = vsub.f32 %v5839_v43, %v5840_v34 }
 0x407   :  { %5323 = vmatmul.mubr.f32.vlgmr.msra.gmra.mrb[10].mxu0 %v12911_v16  ;;  %v5345_v19 = vand.u32 4294901760, %v5344_v25  ;;  %v5835_v6 = vsub.f32 %v5833_v56, %v5834_v24  ;;  %v5830_v46 = vand.u32 4294901760, %v5829_v20  ;;  %v9888_v36 = vpack.c.bf16 %v5833_v56, %v5821_v21 }
 0x408   :  { %v9862_v33 = vpack.c.bf16 %v5351_v39, %v5339_v37  ;;  %v5842_v57 = vand.u32 4294901760, %v5841_v12  ;;  %5413 = vmatprep.mubr.f32.mxu0 %v10174_v8  ;;  %v9866_v62 = vpack.c.bf16 %v5348_v3, %v12977_v2  ;;  %v9890_v14 = vpack.c.bf16 %v5839_v43, %v12982_v0  ;;  %v6271_v0 = vld [vmem:[%s13160_s5] sm:$0xf]  ;;  %s10175_s5 = smov [#allocation2]  }
 0x409   :  { %5814 = vmatmul.mubr.f32.vlgmr.msra.gmra.mrb[10].mxu1 %v12911_v16  ;;  %v9860_v7 = vpack.c.bf16 %v5345_v19, %v5333_v32  ;;  %v5836_v29 = vand.u32 4294901760, %v5835_v6  ;;  %v9872_v13 = vpack.c.bf16 %v5343_v28, %v5331_v26  ;;  %v9896_v49 = vpack.c.bf16 %v5834_v24, %v5822_v15  ;;  %v13014_v16 = vpop.permute.xlu1 %4260  ;;  %s8168_s27 = sshll.u32 %s10175_s5, 4  ;;  %s8169_s27 = int_to_ptr.vmem [resolvable:$true] %s8168_s27 }
 0x40a   :  { %v9886_v4 = vpack.c.bf16 %v5842_v57, %v5830_v46  ;;  %5904 = vmatprep.mubr.f32.mxu1 %v10174_v8  ;;  %v9874_v55 = vpack.c.bf16 %v5349_v61, %v5337_v5  ;;  %v9898_v60 = vpack.c.bf16 %v5840_v34, %v5828_v53  ;;  %v6280_v47 = vsel %vm6278_vm2, %v6271_v0, 0  ;;  %s10149_s28 = scalar_lea.vmem %s8169_s27, 512  ;;  %p10154_p1 = scmp.lt.s32.totalorder %s8169_s27, %s8169_s27 }
 0x40b   :  { %9861 = vmatprep.subr.bf16.mxu0 %v9860_v7  ;;  %v9884_v38 = vpack.c.bf16 %v5836_v29, %v5824_v31  ;;  %v13030_v21 = vand.u32 4294901760, %v6280_v47  ;;  %p10150_p0 = scmp.ne.s32.totalorder %s8169_s27, %s10149_s28  ;;  %p10155_p2 = scmp.lt.s32.totalorder %s10149_s28, %s10149_s28 }
 0x40c   :  { %9863 = vmatpush1.bf16.msra.mxu0 %v9862_v33 }
 0x40d   :  { %9885 = vmatprep.subr.bf16.mxu1 %v9884_v38  ;;  %9865 = vmatprep.subr.bf16.mxu0 %v9864_v40  ;;  %v13038_v26 = vsub.f32 %v6280_v47, %v13030_v21  ;;  %p10156_p3 = por %p10155_p2, %p10154_p1 }
 0x40e   :  { %9887 = vmatpush1.bf16.msra.mxu1 %v9886_v4 }
 0x40f   :  { %9889 = vmatprep.subr.bf16.mxu1 %v9888_v36  ;;  %5415 = vmatmul.mubr.f32.vlgmr.msra.gmra.mrb[10].mxu0 %v12888_v27  ;;  %p10157_p4 = pnand %p10156_p3, %p10150_p0 }
 0x410   :  { %9867 = vmatpush1.bf16.msra.mxu0 %v9866_v62  ;;  %5493 = vmatprep.mubr.f32.mxu0 %v10174_v8 }
 0x411   :  { %5906 = vmatmul.mubr.f32.vlgmr.msra.gmra.mrb[10].mxu1 %v12888_v27  ;;  %9869 = vmatprep.subr.bf16.mxu0 %v12988_v1 }
 0x412   :  { %9891 = vmatpush1.bf16.msra.mxu1 %v9890_v14  ;;  %5984 = vmatprep.mubr.f32.mxu1 %v10174_v8 }
 0x413   :  { %9893 = vmatprep.subr.bf16.mxu1 %v12994_v54 }
 0x416   :  { %v4753_v2 = vpop.f32.mrb[8].mxu0 }
 0x417   :  { %5496 = vmatmul.mubr.f32.vlgmr.msra.gmra.mrb[10].mxu0 %v12891_v18  ;;  %v4755_v41 = vpop.f32.mrb[9].mxu0  ;;  %v9920_v48 = vadd.f32 %v4753_v2, %v13014_v16 }
 0x418   :  { %9871 = vmatpush1.bf16.msra.mxu0 %v12986_v17  ;;  %v5244_v11 = vpop.f32.mrb[8].mxu1  ;;  %v9921_v44 = vadd.f32 %v4755_v41, %v13014_v16  ;;  %5570 = vmatprep.mubr.f32.mxu0 %v10174_v8 }
 0x419   :  { %5987 = vmatmul.mubr.f32.vlgmr.msra.gmra.mrb[10].mxu1 %v12891_v18  ;;  %9873 = vmatprep.subr.bf16.mxu0 %v9872_v13  ;;  %v5246_v22 = vpop.f32.mrb[9].mxu1  ;;  %v6239_v58 = vmul.f32 0.70710677, %v9920_v48  ;;  %v9922_v5 = vadd.f32 %v5244_v11, %v13014_v16  ;;  %v6231_v53 = vmul.f32 0.5, %v9920_v48 }
 0x41a   :  { %9895 = vmatpush1.bf16.msra.mxu1 %v12991_v42  ;;  %v6240_v63 = vmul.f32 0.70710677, %v9921_v44  ;;  %v9923_v45 = vadd.f32 %v5246_v22, %v13014_v16  ;;  %6061 = vmatprep.mubr.f32.mxu1 %v10174_v8  ;;  %v6232_v51 = vmul.f32 0.5, %v9921_v44 }
 0x41b   :  { %9897 = vmatprep.subr.bf16.mxu1 %v9896_v49  ;;  %10133 = verf.f32 %v6239_v58  ;;  %v6241_v18 = vmul.f32 0.70710677, %v9922_v5  ;;  %v6233_v10 = vmul.f32 0.5, %v9922_v5 }
 0x41c   :  { %10135 = verf.f32 %v6240_v63  ;;  %v6242_v59 = vmul.f32 0.70710677, %v9923_v45  ;;  %v6234_v15 = vmul.f32 0.5, %v9923_v45 }
 0x41d   :  { %10137 = verf.f32 %v6241_v18 }
 0x41e   :  { %10139 = verf.f32 %v6242_v59 }
 0x41f   :  { %5574 = vmatmul.mubr.f32.vlgmr.msra.gmra.mrb[10].mxu0 %v12898_v50 }
 0x420   :  { %9875 = vmatpush1.bf16.msra.mxu0 %v9874_v55  ;;  %5656 = vmatprep.mubr.f32.mxu0 %v10174_v8 }
 0x421   :  { %6065 = vmatmul.mubr.f32.vlgmr.msra.gmra.mrb[10].mxu1 %v12898_v50  ;;  %9877 = vmatprep.subr.bf16.mxu0 %v12988_v1  ;;  %v13042_v50 = vand.u32 4294901760, %v13038_v26 }
 0x422   :  { %9899 = vmatpush1.bf16.msra.mxu1 %v9898_v60  ;;  %6147 = vmatprep.mubr.f32.mxu1 %v10174_v8 }
 0x423   :  { %9901 = vmatprep.subr.bf16.mxu1 %v12994_v54 }
 0x425   :  { %v10134_v3 = vpop.eup %10133 }
 0x426   :  { %v10136_v35 = vpop.eup %10135  ;;  %v6255_v9 = vadd.f32 1.0, %v10134_v3 }
 0x427   :  { %v10138_v61 = vpop.eup %10137  ;;  %v6256_v43 = vadd.f32 1.0, %v10136_v35  ;;  %5658 = vmatmul.mubr.f32.vlgmr.msra.gmra.mrb[10].mxu0 %v12888_v27 }
 0x428   :  { %v10140_v1 = vpop.eup %10139  ;;  %9879 = vmatpush1.bf16.msra.mxu0 %v12986_v17  ;;  %5732 = vmatprep.mubr.f32.mxu0 %v10174_v8  ;;  %v6263_v54 = vmul.f32 %v6255_v9, %v6231_v53  ;;  %v6257_v56 = vadd.f32 1.0, %v10138_v61  ;;  %v6352_v17 = vsub.f32 %v13038_v26, %v13042_v50 }
 0x429   :  { %v6264_v32 = vmul.f32 %v6256_v43, %v6232_v51  ;;  %v6258_v28 = vadd.f32 1.0, %v10140_v1  ;;  %6149 = vmatmul.mubr.f32.vlgmr.msra.gmra.mrb[10].mxu1 %v12888_v27 }
 0x42a   :  { %9903 = vmatpush1.bf16.msra.mxu1 %v12991_v42  ;;  %6223 = vmatprep.mubr.f32.mxu1 %v10174_v8  ;;  %v13049_v34 = vand.u32 4294901760, %v6263_v54  ;;  %v6265_v23 = vmul.f32 %v6257_v56, %v6233_v10  ;;  %v13058_v39 = vand.u32 4294901760, %v6352_v17 }
 0x42b   :  { %v6282_v52 = vand.u32 4294901760, %v6264_v32  ;;  %v6266_v30 = vmul.f32 %v6258_v28, %v6234_v15 }
 0x42c   :  { %v6367_v25 = vsub.f32 %v6263_v54, %v13049_v34  ;;  %v13054_v24 = vand.u32 4294901760, %v6265_v23 }
 0x42d   :  { %v6361_v20 = vsub.f32 %v6264_v32, %v6282_v52  ;;  %v6747_v40 = vand.u32 4294901760, %v6266_v30  ;;  %6283 = vmatprep.subr.mxu0 %v6282_v52 }
 0x42e   :  { %v6832_v31 = vsub.f32 %v6265_v23, %v13054_v24  ;;  %v6368_v42 = vand.u32 4294901760, %v6367_v25 }
 0x42f   :  { %v6826_v37 = vsub.f32 %v6266_v30, %v6747_v40  ;;  %5734 = vmatmul.mubr.f32.vlgmr.msra.gmra.mrb[10].mxu0 %v12888_v27  ;;  %6748 = vmatprep.subr.mxu1 %v6747_v40  ;;  %v6362_v12 = vand.u32 4294901760, %v6361_v20 }
 0x430   :  { %6285 = vmatpush1.msra.mxu0 %v13049_v34  ;;  %6348 = vmatprep.mubr.f32.mxu0 %v10174_v8  ;;  %v6369_v19 = vsub.f32 %v6367_v25, %v6368_v42  ;;  %v6833_v6 = vand.u32 4294901760, %v6832_v31 }
 0x431   :  { %6225 = vmatmul.mubr.f32.vlgmr.msra.gmra.mrb[10].mxu1 %v12888_v27  ;;  %v6363_v46 = vsub.f32 %v6361_v20, %v6362_v12  ;;  %v6827_v36 = vand.u32 4294901760, %v6826_v37 }
 0x432   :  { %6750 = vmatpush1.msra.mxu1 %v13054_v24  ;;  %6813 = vmatprep.mubr.f32.mxu1 %v10174_v8  ;;  %v6370_v33 = vand.u32 4294901760, %v6369_v19  ;;  %v6834_v57 = vsub.f32 %v6832_v31, %v6833_v6 }
 0x433   :  { %6354 = vmatmul.mubr.f32.vlgmr.msra.gmra.mrb[12].mxu0 %v13058_v39  ;;  %v6364_v62 = vand.u32 4294901760, %v6363_v46  ;;  %v6828_v14 = vsub.f32 %v6826_v37, %v6827_v36 }
 0x434   :  { %6434 = vmatprep.mubr.f32.mxu0 %v10174_v8  ;;  %v6835_v7 = vand.u32 4294901760, %v6834_v57 }
 0x435   :  { %6819 = vmatmul.mubr.f32.vlgmr.msra.gmra.mrb[12].mxu1 %v13058_v39  ;;  %6365 = vmatprep.subr.mxu0 %v6364_v62  ;;  %v6829_v29 = vand.u32 4294901760, %v6828_v14 }
 0x436   :  { %6371 = vmatpush1.msra.mxu0 %v6370_v33  ;;  %6899 = vmatprep.mubr.f32.mxu1 %v10174_v8 }
 0x437   :  { %6830 = vmatprep.subr.mxu1 %v6829_v29  ;;  %6444 = vmatprep.subr.mxu0 %v6361_v20 }
 0x438   :  { %6836 = vmatpush1.msra.mxu1 %v6835_v7 }
 0x439   :  { %6909 = vmatprep.subr.mxu1 %v6826_v37 }
 0x43b   :  { %6436 = vmatmul.mubr.f32.vlgmr.msra.gmra.mrb[12].mxu0 %v13030_v21 }
 0x43c   :  { %6447 = vmatpush1.msra.mxu0 %v6367_v25  ;;  %6510 = vmatprep.mubr.f32.mxu0 %v10174_v8 }
 0x43d   :  { %6901 = vmatmul.mubr.f32.vlgmr.msra.gmra.mrb[12].mxu1 %v13030_v21  ;;  %6520 = vmatprep.subr.mxu0 %v6282_v52 }
 0x43e   :  { %6912 = vmatpush1.msra.mxu1 %v6832_v31  ;;  %6975 = vmatprep.mubr.f32.mxu1 %v10174_v8 }
 0x43f   :  { %6985 = vmatprep.subr.mxu1 %v6747_v40 }
 0x443   :  { %6513 = vmatmul.mubr.f32.vlgmr.msra.gmra.mrb[12].mxu0 %v13038_v26 }
 0x444   :  { %6522 = vmatpush1.msra.mxu0 %v13049_v34  ;;  %6585 = vmatprep.mubr.f32.mxu0 %v10174_v8 }
 0x445   :  { %6978 = vmatmul.mubr.f32.vlgmr.msra.gmra.mrb[12].mxu1 %v13038_v26  ;;  %6598 = vmatprep.subr.mxu0 %v6362_v12 }
 0x446   :  { %6987 = vmatpush1.msra.mxu1 %v13054_v24  ;;  %7050 = vmatprep.mubr.f32.mxu1 %v10174_v8 }
 0x447   :  { %7063 = vmatprep.subr.mxu1 %v6827_v36 }
 0x44b   :  { %6589 = vmatmul.mubr.f32.vlgmr.msra.gmra.mrb[12].mxu0 %v13042_v50 }
 0x44c   :  { %6602 = vmatpush1.msra.mxu0 %v6368_v42  ;;  %6665 = vmatprep.mubr.f32.mxu0 %v10174_v8 }
 0x44d   :  { %7054 = vmatmul.mubr.f32.vlgmr.msra.gmra.mrb[12].mxu1 %v13042_v50  ;;  %6674 = vmatprep.subr.mxu0 %v6282_v52 }
 0x44e   :  { %7067 = vmatpush1.msra.mxu1 %v6833_v6  ;;  %7130 = vmatprep.mubr.f32.mxu1 %v10174_v8 }
 0x44f   :  { %7139 = vmatprep.subr.mxu1 %v6747_v40 }
 0x453   :  { %6667 = vmatmul.mubr.f32.vlgmr.msra.gmra.mrb[12].mxu0 %v13030_v21 }
 0x454   :  { %6676 = vmatpush1.msra.mxu0 %v13049_v34  ;;  %6739 = vmatprep.mubr.f32.mxu0 %v10174_v8 }
 0x455   :  { %7132 = vmatmul.mubr.f32.vlgmr.msra.gmra.mrb[12].mxu1 %v13030_v21 }
 0x456   :  { %7141 = vmatpush1.msra.mxu1 %v13054_v24  ;;  %7204 = vmatprep.mubr.f32.mxu1 %v10174_v8 }
 0x45b   :  { %6741 = vmatmul.mubr.f32.vlgmr.msra.gmra.mrb[12].mxu0 %v13030_v21 }
 0x45c   :  { %7278 = vmatprep.mubr.f32.mxu0 %v10174_v8 }
 0x45d   :  { %7206 = vmatmul.mubr.f32.vlgmr.msra.gmra.mrb[12].mxu1 %v13030_v21 }
 0x45e   :  { %7743 = vmatprep.mubr.f32.mxu1 %v10174_v8 }
 0x502   :  { %v5735_v27 = vpop.f32.mrb[10].mxu0 }
 0x503   :  { %v9924_v13 = vadd.f32 %v5735_v27, %v13014_v16  ;;  %v5737_v49 = vpop.f32.mrb[11].mxu0 }
 0x504   :  { %v6226_v4 = vpop.f32.mrb[10].mxu1  ;;  %v9925_v55 = vadd.f32 %v5737_v49, %v13014_v16 }
 0x505   :  { %v6243_v60 = vmul.f32 0.70710677, %v9924_v13  ;;  %v9926_v38 = vadd.f32 %v6226_v4, %v13014_v16  ;;  %v6228_v2 = vpop.f32.mrb[11].mxu1  ;;  %v6235_v5 = vmul.f32 0.5, %v9924_v13 }
 0x506   :  { %v6244_v41 = vmul.f32 0.70710677, %v9925_v55  ;;  %v9927_v48 = vadd.f32 %v6228_v2, %v13014_v16  ;;  %v6236_v45 = vmul.f32 0.5, %v9925_v55 }
 0x507   :  { %10141 = verf.f32 %v6243_v60  ;;  %v6245_v11 = vmul.f32 0.70710677, %v9926_v38  ;;  %v6237_v53 = vmul.f32 0.5, %v9926_v38 }
 0x508   :  { %10143 = verf.f32 %v6244_v41  ;;  %v6246_v44 = vmul.f32 0.70710677, %v9927_v48  ;;  %v6238_v35 = vmul.f32 0.5, %v9927_v48 }
 0x509   :  { %10145 = verf.f32 %v6245_v11 }
 0x50a   :  { %10147 = verf.f32 %v6246_v44 }
 0x511   :  { %v10142_v22 = vpop.eup %10141 }
 0x512   :  { %v10144_v58 = vpop.eup %10143  ;;  %v6259_v0 = vadd.f32 1.0, %v10142_v22 }
 0x513   :  { %v10146_v63 = vpop.eup %10145  ;;  %v6260_v18 = vadd.f32 1.0, %v10144_v58 }
 0x514   :  { %v10148_v59 = vpop.eup %10147  ;;  %v6267_v47 = vmul.f32 %v6259_v0, %v6235_v5  ;;  %v6261_v3 = vadd.f32 1.0, %v10146_v63 }
 0x515   :  { %v6268_v51 = vmul.f32 %v6260_v18, %v6236_v45  ;;  %v6262_v16 = vadd.f32 1.0, %v10148_v59 }
 0x516   :  { %v13097_v9 = vand.u32 4294901760, %v6267_v47  ;;  %v6269_v10 = vmul.f32 %v6261_v3, %v6237_v53 }
 0x517   :  { %v13099_v61 = vand.u32 4294901760, %v6268_v51  ;;  %v6270_v43 = vmul.f32 %v6262_v16, %v6238_v35 }
 0x518   :  { %v7297_v15 = vsub.f32 %v6267_v47, %v13097_v9  ;;  %v13102_v1 = vand.u32 4294901760, %v6269_v10 }
 0x519   :  { %v7291_v54 = vsub.f32 %v6268_v51, %v13099_v61  ;;  %v13105_v56 = vand.u32 4294901760, %v6270_v43  ;;  %7213 = vmatprep.subr.mxu0 %v13099_v61 }
 0x51a   :  { %v7762_v32 = vsub.f32 %v6269_v10, %v13102_v1  ;;  %7215 = vmatpush1.msra.mxu0 %v13097_v9  ;;  %v7298_v28 = vand.u32 4294901760, %v7297_v15 }
 0x51b   :  { %v7756_v34 = vsub.f32 %v6270_v43, %v13105_v56  ;;  %7678 = vmatprep.subr.mxu1 %v13105_v56  ;;  %7284 = vmatmul.mubr.f32.vlgmr.msra.gmra.mrb[14].mxu0 %v13058_v39  ;;  %v7292_v23 = vand.u32 4294901760, %v7291_v54 }
 0x51c   :  { %7680 = vmatpush1.msra.mxu1 %v13102_v1  ;;  %v7299_v52 = vsub.f32 %v7297_v15, %v7298_v28  ;;  %7364 = vmatprep.mubr.f32.mxu0 %v10174_v8  ;;  %v7763_v30 = vand.u32 4294901760, %v7762_v32 }
 0x51d   :  { %7749 = vmatmul.mubr.f32.vlgmr.msra.gmra.mrb[14].mxu1 %v13058_v39  ;;  %v7293_v17 = vsub.f32 %v7291_v54, %v7292_v23  ;;  %v7757_v25 = vand.u32 4294901760, %v7756_v34  ;;  %v6276_v39 = vpop.permute.xlu1 %6275 }
 0x51e   :  { %v7764_v24 = vsub.f32 %v7762_v32, %v7763_v30  ;;  %7829 = vmatprep.mubr.f32.mxu1 %v10174_v8  ;;  %v7300_v31 = vand.u32 4294901760, %v7299_v52 }
 0x51f   :  { %v7294_v20 = vand.u32 4294901760, %v7293_v17  ;;  %v7758_v40 = vsub.f32 %v7756_v34, %v7757_v25 }
 0x520   :  { %v7765_v37 = vand.u32 4294901760, %v7764_v24 }
 0x521   :  { %7295 = vmatprep.subr.mxu0 %v7294_v20  ;;  %v7759_v42 = vand.u32 4294901760, %v7758_v40 }
 0x522   :  { %7301 = vmatpush1.msra.mxu0 %v7300_v31 }
 0x523   :  { %7760 = vmatprep.subr.mxu1 %v7759_v42  ;;  %7366 = vmatmul.mubr.f32.vlgmr.msra.gmra.mrb[14].mxu0 %v13030_v21 }
 0x524   :  { %7766 = vmatpush1.msra.mxu1 %v7765_v37  ;;  %7374 = vmatprep.subr.mxu0 %v7291_v54 }
 0x525   :  { %7831 = vmatmul.mubr.f32.vlgmr.msra.gmra.mrb[14].mxu1 %v13030_v21  ;;  %7839 = vmatprep.subr.mxu1 %v7756_v34 }
 0x526   :  { %7377 = vmatpush1.msra.mxu0 %v7297_v15  ;;  %7842 = vmatpush1.msra.mxu1 %v7762_v32 }
 0x527   :  { %7450 = vmatprep.subr.mxu0 %v13099_v61  ;;  %7915 = vmatprep.subr.mxu1 %v13105_v56 }
 0x528   :  { %7440 = vmatprep.mubr.f32.mxu0 %v10174_v8  ;;  %7905 = vmatprep.mubr.f32.mxu1 %v10174_v8 }
 0x52b   :  { %7443 = vmatmul.mubr.f32.vlgmr.msra.gmra.mrb[14].mxu0 %v13038_v26 }
 0x52c   :  { %7452 = vmatpush1.msra.mxu0 %v13097_v9  ;;  %7515 = vmatprep.mubr.f32.mxu0 %v10174_v8 }
 0x52d   :  { %7908 = vmatmul.mubr.f32.vlgmr.msra.gmra.mrb[14].mxu1 %v13038_v26  ;;  %7528 = vmatprep.subr.mxu0 %v7292_v23 }
 0x52e   :  { %7917 = vmatpush1.msra.mxu1 %v13102_v1  ;;  %v6742_v12 = vpop.f32.mrb[12].mxu0  ;;  %7980 = vmatprep.mubr.f32.mxu1 %v10174_v8 }
 0x52f   :  { %7993 = vmatprep.subr.mxu1 %v7757_v25  ;;  %v9928_v19 = vadd.f32 %v6742_v12, %v6276_v39  ;;  %v6744_v6 = vpop.f32.mrb[13].mxu0 }
 0x530   :  { %v7207_v46 = vpop.f32.mrb[12].mxu1  ;;  %v9929_v36 = vadd.f32 %v6744_v6, %v6276_v39 }
 0x531   :  { %v9930_v33 = vadd.f32 %v7207_v46, %v6276_v39  ;;  %v7209_v57 = vpop.f32.mrb[13].mxu1 }
 0x532   :  { %v8150_v62 = vcombine.low %v9928_v19, %v9929_v36  ;;  %v9931_v14 = vadd.f32 %v7209_v57, %v6276_v39 }
 0x533   :  { %7519 = vmatmul.mubr.f32.vlgmr.msra.gmra.mrb[14].mxu0 %v13042_v50 }
 0x534   :  { %8158 = vst [vmem:[#allocation2] sm:$0xff] %v8150_v62  ;;  %v8151_v26 = vcombine.low %v9930_v33, %v9931_v14  ;;  %7532 = vmatpush1.msra.mxu0 %v7298_v28  ;;  %7595 = vmatprep.mubr.f32.mxu0 %v10174_v8 }
 0x535   :  { %7984 = vmatmul.mubr.f32.vlgmr.msra.gmra.mrb[14].mxu1 %v13042_v50  ;;  %7604 = vmatprep.subr.mxu0 %v13099_v61 }
 0x536   :  { %8159 = vst [vmem:[#allocation2 + $0x8] sm:$0xff] %v8151_v26  ;;  %7997 = vmatpush1.msra.mxu1 %v7763_v30  ;;  %8060 = vmatprep.mubr.f32.mxu1 %v10174_v8 }
 0x537   :  { %8069 = vmatprep.subr.mxu1 %v13105_v56 }
 0x53b   :  { %7597 = vmatmul.mubr.f32.vlgmr.msra.gmra.mrb[14].mxu0 %v13030_v21 }
 0x53c   :  { %7606 = vmatpush1.msra.mxu0 %v13097_v9  ;;  %7669 = vmatprep.mubr.f32.mxu0 %v10174_v8 }
 0x53d   :  { %8062 = vmatmul.mubr.f32.vlgmr.msra.gmra.mrb[14].mxu1 %v13030_v21 }
 0x53e   :  { %8071 = vmatpush1.msra.mxu1 %v13102_v1  ;;  %8134 = vmatprep.mubr.f32.mxu1 %v10174_v8 }
 0x543   :  { %7671 = vmatmul.mubr.f32.vlgmr.msra.gmra.mrb[14].mxu0 %v13030_v21 }
 0x545   :  { %8136 = vmatmul.mubr.f32.vlgmr.msra.gmra.mrb[14].mxu1 %v13030_v21 }
 0x616   :  { %v7672_v50 = vpop.f32.mrb[14].mxu0 }
 0x617   :  { %v9932_v7 = vadd.f32 %v7672_v50, %v6276_v39  ;;  %v7674_v29 = vpop.f32.mrb[15].mxu0 }
 0x618   :  { %v8137_v27 = vpop.f32.mrb[14].mxu1  ;;  %v9933_v13 = vadd.f32 %v7674_v29, %v6276_v39 }
 0x619   :  { %v9934_v49 = vadd.f32 %v8137_v27, %v6276_v39  ;;  %v8139_v4 = vpop.f32.mrb[15].mxu1 }
 0x61a   :  { %v8152_v55 = vcombine.low %v9932_v7, %v9933_v13  ;;  %v9935_v60 = vadd.f32 %v8139_v4, %v6276_v39 }
 0x61c   :  { %8160 = vst [vmem:[#allocation2 + $0x10] sm:$0xff] %v8152_v55  ;;  %v8153_v38 = vcombine.low %v9934_v49, %v9935_v60 }
 0x61e   :  { %8161 = vst [vmem:[#allocation2 + $0x18] sm:$0xff] %v8153_v38 }
 0x61f   :  { %10160 = shalt.err (!%p10157_p4)
}
 0x620   :  { %s10161_s8 = scalar_lea.hbm %s13162_s7, 512 }
 0x621   :  { %p10162_p5 = scmp.ne.s32.totalorder %s13162_s7, %s10161_s8  ;;  %p10165_p6 = scmp.lt.u32.totalorder %s10161_s8, %s13162_s7 }
 0x623   :  { %p10167_p7 = pnand %p10165_p6, %p10162_p5 }
 0x625   :  { %10170 = shalt.err (!%p10167_p7)
}
 0x626   :  { %8171 = dma.vmem_to_hbm [thread:$0]  %s8169_s27, 512, %s13162_s7, [#allocation3]  }
 0x627   :  { %10171 = dma.done.wait [#allocation3], 512  }
 0x628   :  { %10172 = vsyncadd [#allocation3], 4294966784 }
 0x629   :  { %8175 = vsyncpa [#allocation3], 1 }

</bundles_post_ra>
